<compile_context>
chip_gen: v7x
topology: tpu7x:2x2x1
jax: 0.10.0
libtpu: 0.0.40
codegen_flags: <defaults>
</compile_context>

<pallas_src>
import functools
import math

import jax
import jax.numpy as jnp
from jax.experimental import pallas as pl
from jax.experimental.pallas import tpu as pltpu

_LANES = 128
_SUBLANES = 8


def _round_up(n, m):
    return ((n + m - 1) // m) * m


def _cdiv(a, b):
    return -(-a // b)


def _mbconv_kernel(x_ref, w_exp_ref, bn1s_ref, bn1b_ref,
                   w_dw_ref, bn2s_ref, bn2b_ref,
                   w_se1_ref, b_se1_ref, w_se2_ref, b_se2_ref,
                   w_proj_ref, bnps_ref, bnpb_ref,
                   o_ref, pad_ref, hdw_ref,
                   *, ksize, stride, expand, residual,
                   rs_dw, rs_exp, rs_proj):
    _, H, W, Cp = x_ref.shape
    Ep = w_dw_ref.shape[-1]
    Op = w_proj_ref.shape[-1]
    p = ksize // 2
    Hpad, Wpad, _ = pad_ref.shape
    Hout, Wout, _ = hdw_ref.shape
    Wfull = Wout * stride if stride > 1 else Wout

    adt = x_ref.dtype          # activation / MXU-operand dtype
    f32 = jnp.float32

    # ---- zero only the padding halo; the interior (rows [p, p+H) x cols
    # [0, W)) is fully overwritten below.  Re-done per grid step so it is
    # correct with per-core scratch under "parallel" batch sharding.
    if p:
        pad_ref[0:p, :, :] = jnp.zeros((p, Wpad, Ep), adt)
        pad_ref[p + H:, :, :] = jnp.zeros((Hpad - p - H, Wpad, Ep), adt)
    if Wpad > W:
        pad_ref[p:p + H, W:, :] = jnp.zeros((H, Wpad - W, Ep), adt)

    # ---- 1) pointwise expansion (1x1 conv) + BN + Swish, by H strip ----
    if expand:
        w_exp = w_exp_ref[...]
        bn1s = bn1s_ref[...].astype(f32)
        bn1b = bn1b_ref[...].astype(f32)
        for r in range(0, H, rs_exp):
            rs = min(rs_exp, H - r)
            xs = x_ref[:, r:r + rs, :, :].reshape(rs * W, Cp)
            hs = jnp.dot(xs, w_exp, preferred_element_type=f32)
            hs = hs * bn1s + bn1b
            hs = hs * jax.nn.sigmoid(hs)
            pad_ref[p + r:p + r + rs, 0:W, :] = (
                hs.reshape(rs, W, Ep).astype(adt))
    else:
        # expand_ratio == 1 => E == Cin: plain copy, no cast round-trip.
        pad_ref[p:p + H, 0:W, :] = x_ref[0]

    # ---- 2) depthwise kxk conv (groups == channels) + BN + Swish ----
    # out[y, x, c] = sum_{dy,dx} in_padded[y*s+dy, x*s+dx, c] * w[dy, dx, c]
    # Scratch columns [0, W) hold the input, [W, Wpad) are zeros; the left
    # padding is realised by the circular wrap of the sublane roll into that
    # zero region (Wpad - W >= p), so no per-tap misaligned slices are needed.
    wdw = w_dw_ref[...].astype(f32)
    bn2s = bn2s_ref[...].astype(f32).reshape(1, 1, Ep)
    bn2b = bn2b_ref[...].astype(f32).reshape(1, 1, Ep)
    se_sum = jnp.zeros((1, Ep), f32)

    for r0 in range(0, Hout, rs_dw):
        rs = min(rs_dw, Hout - r0)
        if stride == 1:
            # One super-band load + f32 cast per strip; the dy row offset is
            # folded into the roll shift on the merged (rows*Wpad) axis.
            nrows = rs + ksize - 1
            L = nrows * Wpad
            sb2 = pad_ref[r0:r0 + nrows, :, :].astype(f32).reshape(L, Ep)
            acc = jnp.zeros((rs, Wout, Ep), f32)
            for dy in range(ksize):
                for dx in range(ksize):
                    shift = (p - dx - dy * Wpad) % L
                    sh = pltpu.roll(sb2, shift=shift, axis=0) if shift else sb2
                    tap = sh.reshape(nrows, Wpad, Ep)[:rs, :Wout, :]
                    acc = acc + tap * wdw[dy:dy + 1, dx:dx + 1, :]
        else:
            # Strided row bands per dy; accumulate at full column resolution
            # and subsample the columns ONCE per strip (hoisted phase
            # extraction instead of k^2 strided gathers).
            L = rs * Wpad
            acc_full = jnp.zeros((rs, Wfull, Ep), f32)
            for dy in range(ksize):
                row0 = r0 * stride + dy
                band2 = pad_ref[pl.ds(row0, rs, stride=stride), :, :].astype(
                    f32).reshape(L, Ep)
                for dx in range(ksize):
                    shift = (p - dx) % L
                    sh = (pltpu.roll(band2, shift=shift, axis=0)
                          if shift else band2)
                    tap = sh.reshape(rs, Wpad, Ep)[:, :Wfull, :]
                    acc_full = acc_full + tap * wdw[dy:dy + 1, dx:dx + 1, :]
            acc = acc_full.reshape(rs, Wout, stride, Ep)[:, :, 0, :]

        acc = acc * bn2s + bn2b
        acc = acc * jax.nn.sigmoid(acc)
        se_sum = se_sum + acc.reshape(rs * Wout, Ep).sum(axis=0, keepdims=True)
        hdw_ref[r0:r0 + rs, :, :] = acc.astype(adt)

    # ---- 3) squeeze-and-excite gate, folded into the projection weights ----
    m = se_sum * (1.0 / float(Hout * Wout))                         # (1, Ep)
    sdt = w_se1_ref.dtype                                           # MXU dtype
    z = (jnp.dot(m.astype(sdt), w_se1_ref[...], preferred_element_type=f32)
         + b_se1_ref[...].astype(f32))
    z = z * jax.nn.sigmoid(z)
    g = jax.nn.sigmoid(
        jnp.dot(z.astype(sdt), w_se2_ref[...], preferred_element_type=f32)
        + b_se2_ref[...].astype(f32))                               # (1, Ep)
    # dot(h * g, Wp) == dot(h, diag(g) @ Wp): one Ep x Op scale, done once.
    w_proj = (jnp.transpose(g) * w_proj_ref[...].astype(f32)).astype(adt)

    # ---- 4) pointwise projection + BN (+ residual), by strip ----
    # TODO(synk): training-mode stochastic depth (_DropPath) not implemented;
    # eval semantics (identity).
    bnps = bnps_ref[...].astype(f32)
    bnpb = bnpb_ref[...].astype(f32)
    for r0 in range(0, Hout, rs_proj):
        rs = min(rs_proj, Hout - r0)
        hs = hdw_ref[r0:r0 + rs, :, :].reshape(rs * Wout, Ep)
        out = jnp.dot(hs, w_proj, preferred_element_type=f32)
        out = out * bnps + bnpb
        if residual:
            out = out + x_ref[:, r0:r0 + rs, :, :].reshape(
                rs * Wout, Op).astype(f32)
        o_ref[:, r0:r0 + rs, :, :] = out.reshape(
            1, rs, Wout, Op).astype(o_ref.dtype)


def _full_spec(shape):
    nd = len(shape)
    return pl.BlockSpec(shape, lambda n, _nd=nd: (0,) * _nd)


def _pad_to(a, shape):
    pads = [(0, t - s) for s, t in zip(a.shape, shape)]
    if not any(hi for _, hi in pads):
        return a
    return jnp.pad(a, pads)


def mbconv_pallas(x_nhwc, params, *, ksize, stride, expand, residual,
                  mxu_dtype=None):
    """Eval-mode MBConvBlock forward (NHWC).  mxu_dtype=jnp.bfloat16 enables
    the fast bf16 MXU path on v6e/v7x (activations + matmul weights cast)."""
    out_dtype = x_nhwc.dtype
    if mxu_dtype is not None:
        x_nhwc = x_nhwc.astype(mxu_dtype)
        params = {k: (v.astype(mxu_dtype) if k.startswith("w_") else v)
                  for k, v in params.items()}

    N, H, W, Cin = x_nhwc.shape
    E = params["w_dw"].shape[-1]
    S = params["w_se1"].shape[-1]
    Cout = params["w_proj"].shape[-1]
    if not expand:
        assert E == Cin, "expand_ratio==1 requires E == Cin"
    p = ksize // 2
    Hout = (H + 2 * p - ksize) // stride + 1
    Wout = (W + 2 * p - ksize) // stride + 1
    Wfull = Wout * stride if stride > 1 else Wout

    # Lane-dense zero padding of every channel axis (free in vector cycles,
    # makes every load/store full-width and the output store unmasked).
    Cp = _round_up(Cin, _LANES)
    Ep = _round_up(E, _LANES)
    Sp = _round_up(S, _LANES)
    Op = _round_up(Cout, _LANES)
    Hpad = H + 2 * p
    Wpad = _round_up(max(W, Wfull) + p, _SUBLANES)

    # Invariants the roll-based depthwise taps rely on.
    assert Wpad - W >= p, "left-edge wrap needs >= p zero columns on the right"
    assert Wfull + p <= Wpad, "right taps (dx > p) must not run into next row"

    # Stage-specific strip sizes.
    #  * depthwise: keep the f32 accumulator (rs * Wfull * Ep * 4B) under
    #    ~half the 256 KB vreg file to avoid accumulator spills.
    #  * 1x1 matmuls: target M = rs * W >= 256 so the MXU is filled.
    rs_dw = max(1, min(Hout, (128 * 1024) // max(1, Wfull * Ep * 4)))
    rs_exp = min(H, max(1, _cdiv(256, W)))
    rs_proj = min(Hout, max(1, _cdiv(256, Wout)))

    args = (
        _pad_to(x_nhwc, (N, H, W, Cp)),
        _pad_to(params["w_exp"], (Cp, Ep)),
        _pad_to(params["bn1_scale"], (1, Ep)),
        _pad_to(params["bn1_bias"], (1, Ep)),
        _pad_to(params["w_dw"], (ksize, ksize, Ep)),
        _pad_to(params["bn2_scale"], (1, Ep)),
        _pad_to(params["bn2_bias"], (1, Ep)),
        _pad_to(params["w_se1"], (Ep, Sp)),
        _pad_to(params["b_se1"], (1, Sp)),
        _pad_to(params["w_se2"], (Sp, Ep)),
        _pad_to(params["b_se2"], (1, Ep)),
        _pad_to(params["w_proj"], (Ep, Op)),
        _pad_to(params["bnp_scale"], (1, Op)),
        _pad_to(params["bnp_bias"], (1, Op)),
    )

    # Request only what is resident (+ margin), instead of the whole v7x VMEM.
    adt = x_nhwc.dtype
    asz = jnp.dtype(adt).itemsize

    def nbytes(a):
        return int(math.prod(a.shape)) * jnp.dtype(a.dtype).itemsize

    resident = (2 * H * W * Cp * asz                 # x block (double-buffered)
                + 2 * Hout * Wout * Op * asz         # out block
                + 2 * sum(nbytes(a) for a in args[1:])   # weights / BN vectors
                + Hpad * Wpad * Ep * asz             # padded dw-input scratch
                + Hout * Wout * Ep * asz)            # dw-output scratch
    vmem_limit = int(min(96 * 1024 * 1024,
                         max(32 * 1024 * 1024, resident + 8 * 1024 * 1024)))

    kernel = functools.partial(_mbconv_kernel, ksize=ksize, stride=stride,
                               expand=expand, residual=residual,
                               rs_dw=rs_dw, rs_exp=rs_exp, rs_proj=rs_proj)

    in_specs = [pl.BlockSpec((1, H, W, Cp), lambda n: (n, 0, 0, 0))]
    in_specs += [_full_spec(a.shape) for a in args[1:]]
    out_specs = pl.BlockSpec((1, Hout, Wout, Op), lambda n: (n, 0, 0, 0))

    # NOTE: grid = (N,) only.  The SE global mean needs the full image per
    # step, so H is not tiled into the grid; for small N the image/output DMA
    # is largely exposed (no pipelining) -- acceptable at these demo shapes.
    out_padded = pl.pallas_call(
        kernel,
        out_shape=jax.ShapeDtypeStruct((N, Hout, Wout, Op), out_dtype),
        grid_spec=pltpu.PrefetchScalarGridSpec(
            num_scalar_prefetch=0,
            grid=(N,),
            in_specs=in_specs,
            out_specs=out_specs,
            scratch_shapes=[
                pltpu.VMEM((Hpad, Wpad, Ep), adt),   # padded dw input
                pltpu.VMEM((Hout, Wout, Ep), adt),   # dw output
            ],
        ),
        compiler_params=pltpu.CompilerParams(
            dimension_semantics=("parallel",),   # v7x: shard batch on 2 TCs
            vmem_limit_bytes=vmem_limit,
        ),
    )(*args)
    return out_padded[..., :Cout]


def mbconv_reference(x, params, *, ksize, stride, expand, residual):
    """Pure-JAX reference (NHWC) of the eval-mode MBConvBlock forward."""
    E = params["w_dw"].shape[-1]
    p = ksize // 2
    h = x
    if expand:
        h = jnp.einsum("nhwc,ce->nhwe", h, params["w_exp"])
        h = h * params["bn1_scale"] + params["bn1_bias"]
        h = h * jax.nn.sigmoid(h)
    dw = params["w_dw"][:, :, None, :]  # (k, k, 1, E) HWIO
    h = jax.lax.conv_general_dilated(
        h, dw, window_strides=(stride, stride),
        padding=[(p, p), (p, p)],
        dimension_numbers=("NHWC", "HWIO", "NHWC"),
        feature_group_count=E)
    h = h * params["bn2_scale"] + params["bn2_bias"]
    h = h * jax.nn.sigmoid(h)
    m = jnp.mean(h, axis=(1, 2), keepdims=True)
    z = jnp.einsum("nhwe,es->nhws", m, params["w_se1"]) + params["b_se1"]
    z = z * jax.nn.sigmoid(z)
    g = jax.nn.sigmoid(jnp.einsum("nhws,se->nhwe", z, params["w_se2"])
                       + params["b_se2"])
    h = h * g
    out = jnp.einsum("nhwe,eo->nhwo", h, params["w_proj"])
    out = out * params["bnp_scale"] + params["bnp_bias"]
    if residual:
        out = out + x
    return out


def _fold_bn(gamma, beta, mean, var, eps=1e-3):
    scale = gamma / jnp.sqrt(var + eps)
    bias = beta - mean * scale
    return scale[None, :], bias[None, :]


if __name__ == "__main__":
    # MBConvBlock(in=8, out=8, kernel_size=3, stride=1, expand_ratio=4,
    #             se_ratio=0.25, drop_path_rate=0.2), eval mode.
    N, Cin, H, W = 2, 8, 16, 16
    Cout = 8
    ksize, stride = 3, 1
    expand_ratio, se_ratio = 4, 0.25
    E = Cin * expand_ratio
    S = int(Cin * se_ratio)
    expand = expand_ratio != 1
    residual = (stride == 1) and (Cin == Cout)

    key = jax.random.PRNGKey(0)
    ks = jax.random.split(key, 24)

    x_nchw = jax.random.normal(ks[0], (N, Cin, H, W), jnp.float32)
    x = jnp.transpose(x_nchw, (0, 2, 3, 1))  # NCHW -> NHWC

    def bn_params(k, c):
        k1, k2, k3, k4 = jax.random.split(k, 4)
        gamma = 1.0 + 0.1 * jax.random.normal(k1, (c,), jnp.float32)
        beta = 0.1 * jax.random.normal(k2, (c,), jnp.float32)
        mean = 0.1 * jax.random.normal(k3, (c,), jnp.float32)
        var = 0.5 + jax.random.uniform(k4, (c,), jnp.float32)
        return _fold_bn(gamma, beta, mean, var, eps=1e-3)

    bn1_scale, bn1_bias = bn_params(ks[1], E)
    bn2_scale, bn2_bias = bn_params(ks[2], E)
    bnp_scale, bnp_bias = bn_params(ks[3], Cout)

    params = {
        "w_exp": 0.1 * jax.random.normal(ks[4], (Cin, E), jnp.float32),
        "bn1_scale": bn1_scale, "bn1_bias": bn1_bias,
        "w_dw": 0.1 * jax.random.normal(ks[5], (ksize, ksize, E), jnp.float32),
        "bn2_scale": bn2_scale, "bn2_bias": bn2_bias,
        "w_se1": 0.1 * jax.random.normal(ks[6], (E, S), jnp.float32),
        "b_se1": 0.1 * jax.random.normal(ks[7], (1, S), jnp.float32),
        "w_se2": 0.1 * jax.random.normal(ks[8], (S, E), jnp.float32),
        "b_se2": 0.1 * jax.random.normal(ks[9], (1, E), jnp.float32),
        "w_proj": 0.1 * jax.random.normal(ks[10], (E, Cout), jnp.float32),
        "bnp_scale": bnp_scale, "bnp_bias": bnp_bias,
    }

    out_nhwc = mbconv_pallas(x, params, ksize=ksize, stride=stride,
                             expand=expand, residual=residual)
    out_nhwc = jax.block_until_ready(out_nhwc)

    ref_nhwc = mbconv_reference(x, params, ksize=ksize, stride=stride,
                                expand=expand, residual=residual)
    max_err = float(jnp.max(jnp.abs(out_nhwc - ref_nhwc)))
    assert max_err < 1e-3, f"Pallas vs reference mismatch: {max_err}"

    # Present result in the module's native NCHW convention.
    out_nchw = jnp.transpose(out_nhwc, (0, 3, 1, 2))
    assert out_nchw.shape == (N, Cout, H, W)

    print("KERNEL_OK")
</pallas_src>

<mosaic_0001>
module attributes {stable_mosaic.version = 11 : i64} {
  func.func @_mbconv_kernel(%arg0: i32, %arg1: memref<1x16x16x128xf32, #tpu.memory_space<vmem>>, %arg2: memref<128x128xf32, #tpu.memory_space<vmem>>, %arg3: memref<1x128xf32, #tpu.memory_space<vmem>>, %arg4: memref<1x128xf32, #tpu.memory_space<vmem>>, %arg5: memref<3x3x128xf32, #tpu.memory_space<vmem>>, %arg6: memref<1x128xf32, #tpu.memory_space<vmem>>, %arg7: memref<1x128xf32, #tpu.memory_space<vmem>>, %arg8: memref<128x128xf32, #tpu.memory_space<vmem>>, %arg9: memref<1x128xf32, #tpu.memory_space<vmem>>, %arg10: memref<128x128xf32, #tpu.memory_space<vmem>>, %arg11: memref<1x128xf32, #tpu.memory_space<vmem>>, %arg12: memref<128x128xf32, #tpu.memory_space<vmem>>, %arg13: memref<1x128xf32, #tpu.memory_space<vmem>>, %arg14: memref<1x128xf32, #tpu.memory_space<vmem>>, %arg15: memref<1x16x16x128xf32, #tpu.memory_space<vmem>>, %arg16: memref<18x24x128xf32, #tpu.memory_space<vmem>>, %arg17: memref<16x16x128xf32, #tpu.memory_space<vmem>>) attributes {dimension_semantics = [#tpu.dimension_semantics<parallel>], iteration_bounds = array<i64: 2>, scalar_prefetch = 0 : i64, scratch_operands = 2 : i64, tpu.core_type = #tpu.core_type<tc>, window_params = [{transform_indices = @transform_0, window_bounds = array<i64: 1, 16, 16, 128>}, {pipeline_mode = #tpu.pipeline_mode<synchronous>, transform_indices = @transform_1, window_bounds = array<i64: 128, 128>}, {pipeline_mode = #tpu.pipeline_mode<synchronous>, transform_indices = @transform_2, window_bounds = array<i64: 1, 128>}, {pipeline_mode = #tpu.pipeline_mode<synchronous>, transform_indices = @transform_3, window_bounds = array<i64: 1, 128>}, {pipeline_mode = #tpu.pipeline_mode<synchronous>, transform_indices = @transform_4, window_bounds = array<i64: 3, 3, 128>}, {pipeline_mode = #tpu.pipeline_mode<synchronous>, transform_indices = @transform_5, window_bounds = array<i64: 1, 128>}, {pipeline_mode = #tpu.pipeline_mode<synchronous>, transform_indices = @transform_6, window_bounds = array<i64: 1, 128>}, {pipeline_mode = #tpu.pipeline_mode<synchronous>, transform_indices = @transform_7, window_bounds = array<i64: 128, 128>}, {pipeline_mode = #tpu.pipeline_mode<synchronous>, transform_indices = @transform_8, window_bounds = array<i64: 1, 128>}, {pipeline_mode = #tpu.pipeline_mode<synchronous>, transform_indices = @transform_9, window_bounds = array<i64: 128, 128>}, {pipeline_mode = #tpu.pipeline_mode<synchronous>, transform_indices = @transform_10, window_bounds = array<i64: 1, 128>}, {pipeline_mode = #tpu.pipeline_mode<synchronous>, transform_indices = @transform_11, window_bounds = array<i64: 128, 128>}, {pipeline_mode = #tpu.pipeline_mode<synchronous>, transform_indices = @transform_12, window_bounds = array<i64: 1, 128>}, {pipeline_mode = #tpu.pipeline_mode<synchronous>, transform_indices = @transform_13, window_bounds = array<i64: 1, 128>}, {transform_indices = @transform_14, window_bounds = array<i64: 1, 16, 16, 128>}]} {
    %cst = arith.constant 0.000000e+00 : f32
    %0 = vector.broadcast %cst : f32 to vector<1x24x128xf32>
    %c0 = arith.constant 0 : index
    %c0_0 = arith.constant 0 : index
    %c0_1 = arith.constant 0 : index
    %1 = vector.load %arg16[%c0, %c0_0, %c0_1] : memref<18x24x128xf32, #tpu.memory_space<vmem>>, vector<1x24x128xf32>
    tpu.vector_store %arg16[%c0, %c0_0, %c0_1], %0 {strides = array<i32>} : memref<18x24x128xf32, #tpu.memory_space<vmem>>, vector<1x24x128xf32>,
    %cst_2 = arith.constant 0.000000e+00 : f32
    %2 = vector.broadcast %cst_2 : f32 to vector<1x24x128xf32>
    %c17 = arith.constant 17 : index
    %c0_3 = arith.constant 0 : index
    %c0_4 = arith.constant 0 : index
    %3 = vector.load %arg16[%c17, %c0_3, %c0_4] : memref<18x24x128xf32, #tpu.memory_space<vmem>>, vector<1x24x128xf32>
    tpu.vector_store %arg16[%c17, %c0_3, %c0_4], %2 {strides = array<i32>} : memref<18x24x128xf32, #tpu.memory_space<vmem>>, vector<1x24x128xf32>,
    %cst_5 = arith.constant 0.000000e+00 : f32
    %4 = vector.broadcast %cst_5 : f32 to vector<16x8x128xf32>
    %c1 = arith.constant 1 : index
    %c16 = arith.constant 16 : index
    %c0_6 = arith.constant 0 : index
    %5 = vector.load %arg16[%c1, %c16, %c0_6] : memref<18x24x128xf32, #tpu.memory_space<vmem>>, vector<16x8x128xf32>
    tpu.vector_store %arg16[%c1, %c16, %c0_6], %4 {strides = array<i32>} : memref<18x24x128xf32, #tpu.memory_space<vmem>>, vector<16x8x128xf32>,
    %c0_7 = arith.constant 0 : index
    %c0_8 = arith.constant 0 : index
    %6 = vector.load %arg2[%c0_7, %c0_8] : memref<128x128xf32, #tpu.memory_space<vmem>>, vector<128x128xf32>
    %c0_9 = arith.constant 0 : index
    %c0_10 = arith.constant 0 : index
    %7 = vector.load %arg3[%c0_9, %c0_10] : memref<1x128xf32, #tpu.memory_space<vmem>>, vector<1x128xf32>
    %c0_11 = arith.constant 0 : index
    %c0_12 = arith.constant 0 : index
    %8 = vector.load %arg4[%c0_11, %c0_12] : memref<1x128xf32, #tpu.memory_space<vmem>>, vector<1x128xf32>
    %c0_13 = arith.constant 0 : index
    %c0_14 = arith.constant 0 : index
    %c0_15 = arith.constant 0 : index
    %c0_16 = arith.constant 0 : index
    %9 = vector.load %arg1[%c0_13, %c0_14, %c0_15, %c0_16] : memref<1x16x16x128xf32, #tpu.memory_space<vmem>>, vector<1x16x16x128xf32>
    %10 = vector.shape_cast %9 : vector<1x16x16x128xf32> to vector<256x128xf32>
    %cst_17 = arith.constant dense<0.000000e+00> : vector<256x128xf32>
    %11 = tpu.matmul %10, %6, %cst_17 {dimension_numbers = #tpu.dot_dimension_numbers<[1], [0], [0], [1], [0, 0, 1, 1], [], []>} : vector<256x128xf32>, vector<128x128xf32>, vector<256x128xf32> -> vector<256x128xf32>
    %12 = vector.broadcast %7 : vector<1x128xf32> to vector<256x128xf32>
    %13 = arith.mulf %11, %12 : vector<256x128xf32>
    %14 = vector.broadcast %8 : vector<1x128xf32> to vector<256x128xf32>
    %15 = arith.addf %13, %14 : vector<256x128xf32>
    %16 = arith.negf %15 : vector<256x128xf32>
    %17 = math.exp %16 : vector<256x128xf32>
    %cst_18 = arith.constant 1.000000e+00 : f32
    %18 = vector.broadcast %cst_18 : f32 to vector<256x128xf32>
    %19 = arith.addf %18, %17 : vector<256x128xf32>
    %20 = arith.divf %18, %19 : vector<256x128xf32>
    %21 = arith.mulf %15, %20 : vector<256x128xf32>
    %22 = vector.shape_cast %21 : vector<256x128xf32> to vector<16x16x128xf32>
    %c1_19 = arith.constant 1 : index
    %c0_20 = arith.constant 0 : index
    %c0_21 = arith.constant 0 : index
    %23 = vector.load %arg16[%c1_19, %c0_20, %c0_21] : memref<18x24x128xf32, #tpu.memory_space<vmem>>, vector<16x16x128xf32>
    tpu.vector_store %arg16[%c1_19, %c0_20, %c0_21], %22 {strides = array<i32>} : memref<18x24x128xf32, #tpu.memory_space<vmem>>, vector<16x16x128xf32>,
    %c0_22 = arith.constant 0 : index
    %c0_23 = arith.constant 0 : index
    %c0_24 = arith.constant 0 : index
    %24 = vector.load %arg5[%c0_22, %c0_23, %c0_24] : memref<3x3x128xf32, #tpu.memory_space<vmem>>, vector<3x3x128xf32>
    %c0_25 = arith.constant 0 : index
    %c0_26 = arith.constant 0 : index
    %25 = vector.load %arg6[%c0_25, %c0_26] : memref<1x128xf32, #tpu.memory_space<vmem>>, vector<1x128xf32>
    %26 = vector.shape_cast %25 : vector<1x128xf32> to vector<1x1x128xf32>
    %c0_27 = arith.constant 0 : index
    %c0_28 = arith.constant 0 : index
    %27 = vector.load %arg7[%c0_27, %c0_28] : memref<1x128xf32, #tpu.memory_space<vmem>>, vector<1x128xf32>
    %28 = vector.shape_cast %27 : vector<1x128xf32> to vector<1x1x128xf32>
    %cst_29 = arith.constant 0.000000e+00 : f32
    %29 = vector.broadcast %cst_29 : f32 to vector<1x128xf32>
    %c0_30 = arith.constant 0 : index
    %c0_31 = arith.constant 0 : index
    %c0_32 = arith.constant 0 : index
    %30 = vector.load %arg16[%c0_30, %c0_31, %c0_32] : memref<18x24x128xf32, #tpu.memory_space<vmem>>, vector<18x24x128xf32>
    %31 = vector.shape_cast %30 : vector<18x24x128xf32> to vector<432x128xf32>
    %cst_33 = arith.constant 0.000000e+00 : f32
    %32 = vector.broadcast %cst_33 : f32 to vector<16x16x128xf32>
    %c1_i32 = arith.constant 1 : i32
    %33 = tpu.dynamic_rotate %31 by %c1_i32 dim 0 : vector<432x128xf32>, i32 -> vector<432x128xf32>
    %34 = vector.shape_cast %33 : vector<432x128xf32> to vector<18x24x128xf32>
    %35 = vector.extract_strided_slice %34 {offsets = [0, 0, 0], sizes = [16, 16, 128], strides = [1, 1, 1]} : vector<18x24x128xf32> to vector<16x16x128xf32>
    %36 = vector.extract_strided_slice %24 {offsets = [0, 0, 0], sizes = [1, 1, 128], strides = [1, 1, 1]} : vector<3x3x128xf32> to vector<1x1x128xf32>
    %37 = vector.broadcast %36 : vector<1x1x128xf32> to vector<16x16x128xf32>
    %38 = arith.mulf %35, %37 : vector<16x16x128xf32>
    %39 = arith.addf %32, %38 : vector<16x16x128xf32>
    %40 = vector.shape_cast %31 : vector<432x128xf32> to vector<18x24x128xf32>
    %41 = vector.extract_strided_slice %40 {offsets = [0, 0, 0], sizes = [16, 16, 128], strides = [1, 1, 1]} : vector<18x24x128xf32> to vector<16x16x128xf32>
    %42 = vector.extract_strided_slice %24 {offsets = [0, 1, 0], sizes = [1, 1, 128], strides = [1, 1, 1]} : vector<3x3x128xf32> to vector<1x1x128xf32>
    %43 = vector.broadcast %42 : vector<1x1x128xf32> to vector<16x16x128xf32>
    %44 = arith.mulf %41, %43 : vector<16x16x128xf32>
    %45 = arith.addf %39, %44 : vector<16x16x128xf32>
    %c431_i32 = arith.constant 431 : i32
    %46 = tpu.dynamic_rotate %31 by %c431_i32 dim 0 : vector<432x128xf32>, i32 -> vector<432x128xf32>
    %47 = vector.shape_cast %46 : vector<432x128xf32> to vector<18x24x128xf32>
    %48 = vector.extract_strided_slice %47 {offsets = [0, 0, 0], sizes = [16, 16, 128], strides = [1, 1, 1]} : vector<18x24x128xf32> to vector<16x16x128xf32>
    %49 = vector.extract_strided_slice %24 {offsets = [0, 2, 0], sizes = [1, 1, 128], strides = [1, 1, 1]} : vector<3x3x128xf32> to vector<1x1x128xf32>
    %50 = vector.broadcast %49 : vector<1x1x128xf32> to vector<16x16x128xf32>
    %51 = arith.mulf %48, %50 : vector<16x16x128xf32>
    %52 = arith.addf %45, %51 : vector<16x16x128xf32>
    %c409_i32 = arith.constant 409 : i32
    %53 = tpu.dynamic_rotate %31 by %c409_i32 dim 0 : vector<432x128xf32>, i32 -> vector<432x128xf32>
    %54 = vector.shape_cast %53 : vector<432x128xf32> to vector<18x24x128xf32>
    %55 = vector.extract_strided_slice %54 {offsets = [0, 0, 0], sizes = [16, 16, 128], strides = [1, 1, 1]} : vector<18x24x128xf32> to vector<16x16x128xf32>
    %56 = vector.extract_strided_slice %24 {offsets = [1, 0, 0], sizes = [1, 1, 128], strides = [1, 1, 1]} : vector<3x3x128xf32> to vector<1x1x128xf32>
    %57 = vector.broadcast %56 : vector<1x1x128xf32> to vector<16x16x128xf32>
    %58 = arith.mulf %55, %57 : vector<16x16x128xf32>
    %59 = arith.addf %52, %58 : vector<16x16x128xf32>
    %c408_i32 = arith.constant 408 : i32
    %60 = tpu.dynamic_rotate %31 by %c408_i32 dim 0 : vector<432x128xf32>, i32 -> vector<432x128xf32>
    %61 = vector.shape_cast %60 : vector<432x128xf32> to vector<18x24x128xf32>
    %62 = vector.extract_strided_slice %61 {offsets = [0, 0, 0], sizes = [16, 16, 128], strides = [1, 1, 1]} : vector<18x24x128xf32> to vector<16x16x128xf32>
    %63 = vector.extract_strided_slice %24 {offsets = [1, 1, 0], sizes = [1, 1, 128], strides = [1, 1, 1]} : vector<3x3x128xf32> to vector<1x1x128xf32>
    %64 = vector.broadcast %63 : vector<1x1x128xf32> to vector<16x16x128xf32>
    %65 = arith.mulf %62, %64 : vector<16x16x128xf32>
    %66 = arith.addf %59, %65 : vector<16x16x128xf32>
    %c407_i32 = arith.constant 407 : i32
    %67 = tpu.dynamic_rotate %31 by %c407_i32 dim 0 : vector<432x128xf32>, i32 -> vector<432x128xf32>
    %68 = vector.shape_cast %67 : vector<432x128xf32> to vector<18x24x128xf32>
    %69 = vector.extract_strided_slice %68 {offsets = [0, 0, 0], sizes = [16, 16, 128], strides = [1, 1, 1]} : vector<18x24x128xf32> to vector<16x16x128xf32>
    %70 = vector.extract_strided_slice %24 {offsets = [1, 2, 0], sizes = [1, 1, 128], strides = [1, 1, 1]} : vector<3x3x128xf32> to vector<1x1x128xf32>
    %71 = vector.broadcast %70 : vector<1x1x128xf32> to vector<16x16x128xf32>
    %72 = arith.mulf %69, %71 : vector<16x16x128xf32>
    %73 = arith.addf %66, %72 : vector<16x16x128xf32>
    %c385_i32 = arith.constant 385 : i32
    %74 = tpu.dynamic_rotate %31 by %c385_i32 dim 0 : vector<432x128xf32>, i32 -> vector<432x128xf32>
    %75 = vector.shape_cast %74 : vector<432x128xf32> to vector<18x24x128xf32>
    %76 = vector.extract_strided_slice %75 {offsets = [0, 0, 0], sizes = [16, 16, 128], strides = [1, 1, 1]} : vector<18x24x128xf32> to vector<16x16x128xf32>
    %77 = vector.extract_strided_slice %24 {offsets = [2, 0, 0], sizes = [1, 1, 128], strides = [1, 1, 1]} : vector<3x3x128xf32> to vector<1x1x128xf32>
    %78 = vector.broadcast %77 : vector<1x1x128xf32> to vector<16x16x128xf32>
    %79 = arith.mulf %76, %78 : vector<16x16x128xf32>
    %80 = arith.addf %73, %79 : vector<16x16x128xf32>
    %c384_i32 = arith.constant 384 : i32
    %81 = tpu.dynamic_rotate %31 by %c384_i32 dim 0 : vector<432x128xf32>, i32 -> vector<432x128xf32>
    %82 = vector.shape_cast %81 : vector<432x128xf32> to vector<18x24x128xf32>
    %83 = vector.extract_strided_slice %82 {offsets = [0, 0, 0], sizes = [16, 16, 128], strides = [1, 1, 1]} : vector<18x24x128xf32> to vector<16x16x128xf32>
    %84 = vector.extract_strided_slice %24 {offsets = [2, 1, 0], sizes = [1, 1, 128], strides = [1, 1, 1]} : vector<3x3x128xf32> to vector<1x1x128xf32>
    %85 = vector.broadcast %84 : vector<1x1x128xf32> to vector<16x16x128xf32>
    %86 = arith.mulf %83, %85 : vector<16x16x128xf32>
    %87 = arith.addf %80, %86 : vector<16x16x128xf32>
    %c383_i32 = arith.constant 383 : i32
    %88 = tpu.dynamic_rotate %31 by %c383_i32 dim 0 : vector<432x128xf32>, i32 -> vector<432x128xf32>
    %89 = vector.shape_cast %88 : vector<432x128xf32> to vector<18x24x128xf32>
    %90 = vector.extract_strided_slice %89 {offsets = [0, 0, 0], sizes = [16, 16, 128], strides = [1, 1, 1]} : vector<18x24x128xf32> to vector<16x16x128xf32>
    %91 = vector.extract_strided_slice %24 {offsets = [2, 2, 0], sizes = [1, 1, 128], strides = [1, 1, 1]} : vector<3x3x128xf32> to vector<1x1x128xf32>
    %92 = vector.broadcast %91 : vector<1x1x128xf32> to vector<16x16x128xf32>
    %93 = arith.mulf %90, %92 : vector<16x16x128xf32>
    %94 = arith.addf %87, %93 : vector<16x16x128xf32>
    %95 = vector.broadcast %26 : vector<1x1x128xf32> to vector<16x16x128xf32>
    %96 = arith.mulf %94, %95 : vector<16x16x128xf32>
    %97 = vector.broadcast %28 : vector<1x1x128xf32> to vector<16x16x128xf32>
    %98 = arith.addf %96, %97 : vector<16x16x128xf32>
    %99 = arith.negf %98 : vector<16x16x128xf32>
    %100 = math.exp %99 : vector<16x16x128xf32>
    %cst_34 = arith.constant 1.000000e+00 : f32
    %101 = vector.broadcast %cst_34 : f32 to vector<16x16x128xf32>
    %102 = arith.addf %101, %100 : vector<16x16x128xf32>
    %103 = arith.divf %101, %102 : vector<16x16x128xf32>
    %104 = arith.mulf %98, %103 : vector<16x16x128xf32>
    %105 = vector.shape_cast %104 : vector<16x16x128xf32> to vector<256x128xf32>
    %cst_35 = arith.constant dense<0.000000e+00> : vector<128xf32>
    %106 = vector.multi_reduction <add>, %105, %cst_35 [0] : vector<256x128xf32> to vector<128xf32>
    %107 = vector.shape_cast %106 : vector<128xf32> to vector<1x128xf32>
    %108 = arith.addf %29, %107 : vector<1x128xf32>
    %c0_36 = arith.constant 0 : index
    %c0_37 = arith.constant 0 : index
    %c0_38 = arith.constant 0 : index
    %109 = vector.load %arg17[%c0_36, %c0_37, %c0_38] : memref<16x16x128xf32, #tpu.memory_space<vmem>>, vector<16x16x128xf32>
    tpu.vector_store %arg17[%c0_36, %c0_37, %c0_38], %104 {strides = array<i32>} : memref<16x16x128xf32, #tpu.memory_space<vmem>>, vector<16x16x128xf32>,
    %cst_39 = arith.constant 3.906250e-03 : f32
    %110 = vector.broadcast %cst_39 : f32 to vector<1x128xf32>
    %111 = arith.mulf %108, %110 : vector<1x128xf32>
    %c0_40 = arith.constant 0 : index
    %c0_41 = arith.constant 0 : index
    %112 = vector.load %arg8[%c0_40, %c0_41] : memref<128x128xf32, #tpu.memory_space<vmem>>, vector<128x128xf32>
    %cst_42 = arith.constant dense<0.000000e+00> : vector<1x128xf32>
    %113 = tpu.matmul %111, %112, %cst_42 {dimension_numbers = #tpu.dot_dimension_numbers<[1], [0], [0], [1], [0, 0, 1, 1], [], []>} : vector<1x128xf32>, vector<128x128xf32>, vector<1x128xf32> -> vector<1x128xf32>
    %c0_43 = arith.constant 0 : index
    %c0_44 = arith.constant 0 : index
    %114 = vector.load %arg9[%c0_43, %c0_44] : memref<1x128xf32, #tpu.memory_space<vmem>>, vector<1x128xf32>
    %115 = arith.addf %113, %114 : vector<1x128xf32>
    %116 = arith.negf %115 : vector<1x128xf32>
    %117 = math.exp %116 : vector<1x128xf32>
    %cst_45 = arith.constant 1.000000e+00 : f32
    %118 = vector.broadcast %cst_45 : f32 to vector<1x128xf32>
    %119 = arith.addf %118, %117 : vector<1x128xf32>
    %120 = arith.divf %118, %119 : vector<1x128xf32>
    %121 = arith.mulf %115, %120 : vector<1x128xf32>
    %c0_46 = arith.constant 0 : index
    %c0_47 = arith.constant 0 : index
    %122 = vector.load %arg10[%c0_46, %c0_47] : memref<128x128xf32, #tpu.memory_space<vmem>>, vector<128x128xf32>
    %cst_48 = arith.constant dense<0.000000e+00> : vector<1x128xf32>
    %123 = tpu.matmul %121, %122, %cst_48 {dimension_numbers = #tpu.dot_dimension_numbers<[1], [0], [0], [1], [0, 0, 1, 1], [], []>} : vector<1x128xf32>, vector<128x128xf32>, vector<1x128xf32> -> vector<1x128xf32>
    %c0_49 = arith.constant 0 : index
    %c0_50 = arith.constant 0 : index
    %124 = vector.load %arg11[%c0_49, %c0_50] : memref<1x128xf32, #tpu.memory_space<vmem>>, vector<1x128xf32>
    %125 = arith.addf %123, %124 : vector<1x128xf32>
    %126 = arith.negf %125 : vector<1x128xf32>
    %127 = math.exp %126 : vector<1x128xf32>
    %cst_51 = arith.constant 1.000000e+00 : f32
    %128 = vector.broadcast %cst_51 : f32 to vector<1x128xf32>
    %129 = arith.addf %128, %127 : vector<1x128xf32>
    %130 = arith.divf %128, %129 : vector<1x128xf32>
    %131 = tpu.transpose %130, [1, 0] : vector<1x128xf32> -> vector<128x1xf32>
    %c0_52 = arith.constant 0 : index
    %c0_53 = arith.constant 0 : index
    %132 = vector.load %arg12[%c0_52, %c0_53] : memref<128x128xf32, #tpu.memory_space<vmem>>, vector<128x128xf32>
    %133 = vector.broadcast %131 : vector<128x1xf32> to vector<128x128xf32>
    %134 = arith.mulf %133, %132 : vector<128x128xf32>
    %c0_54 = arith.constant 0 : index
    %c0_55 = arith.constant 0 : index
    %135 = vector.load %arg13[%c0_54, %c0_55] : memref<1x128xf32, #tpu.memory_space<vmem>>, vector<1x128xf32>
    %c0_56 = arith.constant 0 : index
    %c0_57 = arith.constant 0 : index
    %136 = vector.load %arg14[%c0_56, %c0_57] : memref<1x128xf32, #tpu.memory_space<vmem>>, vector<1x128xf32>
    %c0_58 = arith.constant 0 : index
    %c0_59 = arith.constant 0 : index
    %c0_60 = arith.constant 0 : index
    %137 = vector.load %arg17[%c0_58, %c0_59, %c0_60] : memref<16x16x128xf32, #tpu.memory_space<vmem>>, vector<16x16x128xf32>
    %138 = vector.shape_cast %137 : vector<16x16x128xf32> to vector<256x128xf32>
    %cst_61 = arith.constant dense<0.000000e+00> : vector<256x128xf32>
    %139 = tpu.matmul %138, %134, %cst_61 {dimension_numbers = #tpu.dot_dimension_numbers<[1], [0], [0], [1], [0, 0, 1, 1], [], []>} : vector<256x128xf32>, vector<128x128xf32>, vector<256x128xf32> -> vector<256x128xf32>
    %140 = vector.broadcast %135 : vector<1x128xf32> to vector<256x128xf32>
    %141 = arith.mulf %139, %140 : vector<256x128xf32>
    %142 = vector.broadcast %136 : vector<1x128xf32> to vector<256x128xf32>
    %143 = arith.addf %141, %142 : vector<256x128xf32>
    %c0_62 = arith.constant 0 : index
    %c0_63 = arith.constant 0 : index
    %c0_64 = arith.constant 0 : index
    %c0_65 = arith.constant 0 : index
    %144 = vector.load %arg1[%c0_62, %c0_63, %c0_64, %c0_65] : memref<1x16x16x128xf32, #tpu.memory_space<vmem>>, vector<1x16x16x128xf32>
    %145 = vector.shape_cast %144 : vector<1x16x16x128xf32> to vector<256x128xf32>
    %146 = arith.addf %143, %145 : vector<256x128xf32>
    %147 = vector.shape_cast %146 : vector<256x128xf32> to vector<1x16x16x128xf32>
    %c0_66 = arith.constant 0 : index
    %c0_67 = arith.constant 0 : index
    %c0_68 = arith.constant 0 : index
    %c0_69 = arith.constant 0 : index
    %148 = vector.load %arg15[%c0_66, %c0_67, %c0_68, %c0_69] : memref<1x16x16x128xf32, #tpu.memory_space<vmem>>, vector<1x16x16x128xf32>
    tpu.vector_store %arg15[%c0_66, %c0_67, %c0_68, %c0_69], %147 {strides = array<i32>} : memref<1x16x16x128xf32, #tpu.memory_space<vmem>>, vector<1x16x16x128xf32>,
    return
  }
  func.func @transform_0(%arg0: i32) -> (i32, i32, i32, i32) {
    %c0_i32 = arith.constant 0 : i32
    %c0_i32_0 = arith.constant 0 : i32
    %c0_i32_1 = arith.constant 0 : i32
    %c0_i32_2 = arith.constant 0 : i32
    return %arg0, %c0_i32, %c0_i32_0, %c0_i32_1 : i32, i32, i32, i32
  }
  func.func @transform_1(%arg0: i32) -> (i32, i32) {
    %c0_i32 = arith.constant 0 : i32
    %c0_i32_0 = arith.constant 0 : i32
    %c0_i32_1 = arith.constant 0 : i32
    return %c0_i32, %c0_i32_0 : i32, i32
  }
  func.func @transform_2(%arg0: i32) -> (i32, i32) {
    %c0_i32 = arith.constant 0 : i32
    %c0_i32_0 = arith.constant 0 : i32
    %c0_i32_1 = arith.constant 0 : i32
    return %c0_i32, %c0_i32_0 : i32, i32
  }
  func.func @transform_3(%arg0: i32) -> (i32, i32) {
    %c0_i32 = arith.constant 0 : i32
    %c0_i32_0 = arith.constant 0 : i32
    %c0_i32_1 = arith.constant 0 : i32
    return %c0_i32, %c0_i32_0 : i32, i32
  }
  func.func @transform_4(%arg0: i32) -> (i32, i32, i32) {
    %c0_i32 = arith.constant 0 : i32
    %c0_i32_0 = arith.constant 0 : i32
    %c0_i32_1 = arith.constant 0 : i32
    %c0_i32_2 = arith.constant 0 : i32
    return %c0_i32, %c0_i32_0, %c0_i32_1 : i32, i32, i32
  }
  func.func @transform_5(%arg0: i32) -> (i32, i32) {
    %c0_i32 = arith.constant 0 : i32
    %c0_i32_0 = arith.constant 0 : i32
    %c0_i32_1 = arith.constant 0 : i32
    return %c0_i32, %c0_i32_0 : i32, i32
  }
  func.func @transform_6(%arg0: i32) -> (i32, i32) {
    %c0_i32 = arith.constant 0 : i32
    %c0_i32_0 = arith.constant 0 : i32
    %c0_i32_1 = arith.constant 0 : i32
    return %c0_i32, %c0_i32_0 : i32, i32
  }
  func.func @transform_7(%arg0: i32) -> (i32, i32) {
    %c0_i32 = arith.constant 0 : i32
    %c0_i32_0 = arith.constant 0 : i32
    %c0_i32_1 = arith.constant 0 : i32
    return %c0_i32, %c0_i32_0 : i32, i32
  }
  func.func @transform_8(%arg0: i32) -> (i32, i32) {
    %c0_i32 = arith.constant 0 : i32
    %c0_i32_0 = arith.constant 0 : i32
    %c0_i32_1 = arith.constant 0 : i32
    return %c0_i32, %c0_i32_0 : i32, i32
  }
  func.func @transform_9(%arg0: i32) -> (i32, i32) {
    %c0_i32 = arith.constant 0 : i32
    %c0_i32_0 = arith.constant 0 : i32
    %c0_i32_1 = arith.constant 0 : i32
    return %c0_i32, %c0_i32_0 : i32, i32
  }
  func.func @transform_10(%arg0: i32) -> (i32, i32) {
    %c0_i32 = arith.constant 0 : i32
    %c0_i32_0 = arith.constant 0 : i32
    %c0_i32_1 = arith.constant 0 : i32
    return %c0_i32, %c0_i32_0 : i32, i32
  }
  func.func @transform_11(%arg0: i32) -> (i32, i32) {
    %c0_i32 = arith.constant 0 : i32
    %c0_i32_0 = arith.constant 0 : i32
    %c0_i32_1 = arith.constant 0 : i32
    return %c0_i32, %c0_i32_0 : i32, i32
  }
  func.func @transform_12(%arg0: i32) -> (i32, i32) {
    %c0_i32 = arith.constant 0 : i32
    %c0_i32_0 = arith.constant 0 : i32
    %c0_i32_1 = arith.constant 0 : i32
    return %c0_i32, %c0_i32_0 : i32, i32
  }
  func.func @transform_13(%arg0: i32) -> (i32, i32) {
    %c0_i32 = arith.constant 0 : i32
    %c0_i32_0 = arith.constant 0 : i32
    %c0_i32_1 = arith.constant 0 : i32
    return %c0_i32, %c0_i32_0 : i32, i32
  }
  func.func @transform_14(%arg0: i32) -> (i32, i32, i32, i32) {
    %c0_i32 = arith.constant 0 : i32
    %c0_i32_0 = arith.constant 0 : i32
    %c0_i32_1 = arith.constant 0 : i32
    %c0_i32_2 = arith.constant 0 : i32
    return %arg0, %c0_i32, %c0_i32_0, %c0_i32_1 : i32, i32, i32, i32
  }
}

</mosaic_0001>

<bundles_post_ra>
// kernel: tpu_custom_call.1
= control target key start
LH: loop header
LB: loop body
LE: loop exit
PB: predicated region body
PF: predicated region fallthrough
CT: control target
= control target key end

     0   :  { %s6817_s0 = inlined_call_operand.hbm [shape: f32[2,16,16,128], index: 0, kind: input, shape index: {}]   ;;  %s6818_s1 = inlined_call_operand.hbm [shape: f32[128,128], index: 1, kind: input, shape index: {}]   ;;  %s6819_s2 = inlined_call_operand.vmem [shape: f32[1,128], index: 2, kind: input, shape index: {}]   ;;  %s6820_s3 = inlined_call_operand.vmem [shape: f32[1,128], index: 3, kind: input, shape index: {}]   ;;  %s6821_s4 = inlined_call_operand.vmem [shape: f32[3,3,128], index: 4, kind: input, shape index: {}]   ;;  %s6822_s5 = inlined_call_operand.vmem [shape: f32[1,128], index: 5, kind: input, shape index: {}]   ;;  %s6823_s6 = inlined_call_operand.vmem [shape: f32[1,128], index: 6, kind: input, shape index: {}]   ;;  %s6824_s7 = inlined_call_operand.hbm [shape: f32[128,128], index: 7, kind: input, shape index: {}]   ;;  %s6825_s8 = inlined_call_operand.vmem [shape: f32[1,128], index: 8, kind: input, shape index: {}]   ;;  %s6826_s9 = inlined_call_operand.hbm [shape: f32[128,128], index: 9, kind: input, shape index: {}]   ;;  %s6827_s10 = inlined_call_operand.vmem [shape: f32[1,128], index: 10, kind: input, shape index: {}]   ;;  %s6828_s11 = inlined_call_operand.hbm [shape: f32[128,128], index: 11, kind: input, shape index: {}]   ;;  %s6829_s12 = inlined_call_operand.vmem [shape: f32[1,128], index: 12, kind: input, shape index: {}]   ;;  %s6830_s13 = inlined_call_operand.vmem [shape: f32[1,128], index: 13, kind: input, shape index: {}]   ;;  %s6831_s14 = inlined_call_operand.hbm [shape: f32[2,16,16,128], index: 14, kind: output, shape index: {}]  }
   0x1   :  { %6926 = sst [smem:[#allocation79_spill]] %s6823_s6 }
   0x2   :  { %6927 = sst [smem:[#allocation80_spill]] %s6825_s8 }
   0x3   :  { %6928 = sst [smem:[#allocation81_spill]] %s6827_s10 }
   0x4   :  { %6929 = sst [smem:[#allocation82_spill]] %s6829_s12 }
   0x5   :  { %6930 = sst [smem:[#allocation83_spill]] %s6830_s13 }
   0x6   :  { %6931 = sst [smem:[#allocation84_spill]] %s6831_s14 }
   0x7   :  { %19 = vsyncpa [#allocation5], 0 }
   0x8   :  { %21 = vsyncpa [#allocation5 + $0x1], 0 }
   0x9   :  { %22 = vsyncpa [#allocation8], 0 }
   0xa   :  { %23 = vsyncpa [#allocation11], 0 }
   0xb   :  { %24 = vsyncpa [#allocation6], 0 }
   0xc   :  { %26 = vsyncpa [#allocation6 + $0x1], 0  ;;  %s4542_s29 = smov 0   ;;  %s4544_s30 = smov 0  }
   0xd   :  { %s4546_s15 = smov 0   ;;  %s4548_s16 = smov 0  }
   0xe LB: > { %6932 = sst [smem:[#allocation18_spill]] %s4439_s29  ;;  %s4563_s17 = sadd.s32 4294967295, %s4451_s16   ;;  %s4451_s16 = sphi %s4548_s16, %s7182_s16   ;;  %s4447_s15 = sphi %s4546_s15, %s7181_s15   ;;  %s4443_s30 = sphi %s4544_s30, %s7180_s30   ;;  %s4439_s29 = sphi %s4542_s29, %s7179_s29  }
   0xf   : > { %s3288_s18 = sadd.s32 4294967294, %s4451_s16   ;;  %p52_p0 = scmp.ne.s32.totalorder %s4443_s30, %s4439_s29 }
  0x10   : > { %p6835_p1 = scmp.eq.s32.totalorder %s4563_s17, 0  ;;  %p355_p3 = scmp.eq.s32.totalorder %s3288_s18, 1 }
  0x11   : > { %p3289_p5 = scmp.ge.s32.totalorder %s4451_s16, 1  ;;  %p362_p7 = scmp.lt.s32.totalorder %s4451_s16, 3 }
  0x12   : > { %p4572_p4 = por %p6835_p1, %p52_p0  ;;  %p4577_p6 = por %p355_p3, %p52_p0 }
  0x13   : > { %p4582_p8 = pnand %p3289_p5, %p362_p7  ;;  %s4453_s22 = smov [#allocation7]  }
  0x14   : > { %s6933_s19 = scalar_select %p4572_p4, 1, 0 }
  0x15   : > { %s6934_s20 = scalar_select %p4577_p6, 1, 0 }
  0x16   : > { %s6936_s21 = scalar_select %p4582_p8, 1, 0 }
  0x17   : > { %6935 = sst [smem:[#allocation19_spill]] %s6934_s20  ;;  %s374_s23 = sshll.u32 %s4453_s22, 4  ;;  %s4586_s23 = int_to_ptr.vmem [resolvable:$true] %s374_s23 }
  0x18   : > { %p3892_p9 = pneg %p4582_p8  ;;  %s4454_s25 = smov [#allocation10]  }
  0x19   : > { %s418_s26 = sshll.u32 %s4454_s25, 4  ;;  %s4455_s27 = smov [#allocation9]   ;;  %s4597_s26 = int_to_ptr.vmem [resolvable:$true] %s418_s26 }
  0x1a   : > { %p4593_p11 = pnand %p3892_p9, %p6835_p1  ;;  %s4599_s28 = sshll.u32 %s4455_s27, 4  ;;  %s403_s28 = int_to_ptr.vmem [resolvable:$true] %s4599_s28 }
  0x1b   : > { %s4235_s20 = scalar_lea.hbm %s6818_s1, 2048 }
  0x1c   : > { %p4236_p12 = scmp.ne.s32.totalorder %s6818_s1, %s4235_s20  ;;  %p4609_p13 = pneg %p4593_p11 }
  0x1d   : > { %p4242_p5 = scmp.lt.u32.totalorder %s4235_s20, %s6818_s1 }
  0x1e   : > { %p4238_p0 = pnand %p4609_p13, %p4236_p12 }
  0x20   : > { %p4239_p3 = pneg %p4238_p0 }
  0x22   : > { %p4244_p7 = pnand %p4242_p5, %p4239_p3 }
  0x24   : > { %4247 = shalt.err (!%p4244_p7)
}
  0x25   : > { %s4248_s14 = scalar_lea.vmem %s4586_s23, 2048  ;;  %p4256_p2 = scmp.lt.s32.totalorder %s4586_s23, %s4586_s23 }
  0x26   : > { %p4249_p9 = scmp.ne.s32.totalorder %s4586_s23, %s4248_s14  ;;  %p4257_p6 = scmp.lt.s32.totalorder %s4248_s14, %s4248_s14 }
  0x28   : > { %p4251_p10 = pnand %p4249_p9, %p4609_p13  ;;  %p4258_p12 = por %p4257_p6, %p4256_p2 }
  0x2a   : > { %p4252_p1 = pneg %p4251_p10 }
  0x2c   : > { %p4259_p0 = pnand %p4258_p12, %p4252_p1 }
  0x2e   : > { %4262 = shalt.err (!%p4259_p0)
}
  0x2f   : > { %s4456_s29 = smov 128   ;;  %s4457_s20 = smov 8  }
  0x30   : > { %3895 = dma.hbm_to_vmem [thread:$0]  (!%p4593_p11), %s6818_s1, 2048, %s4586_s23, [#allocation8], %s4456_s29, %s4456_s29, %s4457_s20  }
  0x31   : > { %s4263_s14 = scalar_lea.hbm %s6826_s9, 2048 }
  0x32   : > { %p4264_p1 = scmp.ne.s32.totalorder %s6826_s9, %s4263_s14  ;;  %p4270_p10 = scmp.lt.u32.totalorder %s4263_s14, %s6826_s9 }
  0x34   : > { %p4266_p2 = pnand %p4264_p1, %p4609_p13 }
  0x36   : > { %p4267_p6 = pneg %p4266_p2 }
  0x38   : > { %p4272_p3 = pnand %p4270_p10, %p4267_p6 }
  0x3a   : > { %4275 = shalt.err (!%p4272_p3)
}
  0x3b   : > { %s4276_s23 = scalar_lea.vmem %s4597_s26, 2048  ;;  %p4284_p12 = scmp.lt.s32.totalorder %s4597_s26, %s4597_s26 }
  0x3c   : > { %p4277_p5 = scmp.ne.s32.totalorder %s4597_s26, %s4276_s23  ;;  %p4285_p0 = scmp.lt.s32.totalorder %s4276_s23, %s4276_s23 }
  0x3e   : > { %p4279_p7 = pnand %p4277_p5, %p4609_p13  ;;  %p4286_p1 = por %p4285_p0, %p4284_p12 }
  0x40   : > { %p4280_p9 = pneg %p4279_p7 }
  0x42   : > { %p4287_p2 = pnand %p4286_p1, %p4280_p9 }
  0x44   : > { %4290 = shalt.err (!%p4287_p2)
}
  0x45   : > { %3901 = dma.hbm_to_vmem [thread:$0]  (!%p4593_p11), %s6826_s9, 2048, %s4597_s26, [#allocation11], %s4456_s29, %s4456_s29, %s4457_s20  }
  0x46   : > { %s4291_s18 = scalar_lea.hbm %s6824_s7, 2048 }
  0x47   : > { %p4292_p6 = scmp.ne.s32.totalorder %s6824_s7, %s4291_s18  ;;  %p4298_p5 = scmp.lt.u32.totalorder %s4291_s18, %s6824_s7 }
  0x49   : > { %p4294_p10 = pnand %p4292_p6, %p4609_p13 }
  0x4b   : > { %p4295_p3 = pneg %p4294_p10 }
  0x4d   : > { %p4300_p7 = pnand %p4298_p5, %p4295_p3 }
  0x4f   : > { %4303 = shalt.err (!%p4300_p7)
}
  0x50   : > { %s4304_s23 = scalar_lea.vmem %s403_s28, 2048  ;;  %p4312_p1 = scmp.lt.s32.totalorder %s403_s28, %s403_s28 }
  0x51   : > { %p4305_p9 = scmp.ne.s32.totalorder %s403_s28, %s4304_s23  ;;  %p4313_p2 = scmp.lt.s32.totalorder %s4304_s23, %s4304_s23 }
  0x53   : > { %p4307_p12 = pnand %p4305_p9, %p4609_p13  ;;  %p4314_p4 = por %p4313_p2, %p4312_p1 }
  0x55   : > { %p4308_p0 = pneg %p4307_p12 }
  0x57   : > { %p4315_p8 = pnand %p4314_p4, %p4308_p0 }
  0x59   : > { %4318 = shalt.err (!%p4315_p8)
}
  0x5a   : > { %3898 = dma.hbm_to_vmem [thread:$0]  (!%p4593_p11), %s6824_s7, 2048, %s403_s28, [#allocation8], %s4456_s29, %s4456_s29, %s4457_s20  }
  0x5b   : > { %s4458_s8 = smov [#allocation12]   ;;  %s4319_s22 = scalar_lea.hbm %s6828_s11, 2048 }
  0x5c   : > { %s434_s10 = sshll.u32 %s4458_s8, 4  ;;  %p4320_p4 = scmp.ne.s32.totalorder %s6828_s11, %s4319_s22  ;;  %s435_s10 = int_to_ptr.vmem [resolvable:$true] %s434_s10 }
  0x5d   : > { %p4326_p10 = scmp.lt.u32.totalorder %s4319_s22, %s6828_s11 }
  0x5e   : > { %p4322_p8 = pnand %p4320_p4, %p4609_p13 }
  0x60   : > { %p4323_p6 = pneg %p4322_p8 }
  0x62   : > { %p4328_p3 = pnand %p4326_p10, %p4323_p6 }
  0x64   : > { %4331 = shalt.err (!%p4328_p3)
}
  0x65   : > { %s4332_s28 = scalar_lea.vmem %s435_s10, 2048  ;;  %p4340_p12 = scmp.lt.s32.totalorder %s435_s10, %s435_s10 }
  0x66   : > { %p4333_p5 = scmp.ne.s32.totalorder %s435_s10, %s4332_s28  ;;  %p4341_p0 = scmp.lt.s32.totalorder %s4332_s28, %s4332_s28 }
  0x68   : > { %p4335_p7 = pnand %p4333_p5, %p4609_p13  ;;  %p4342_p1 = por %p4341_p0, %p4340_p12 }
  0x6a   : > { %p4336_p9 = pneg %p4335_p7 }
  0x6c   : > { %p4343_p2 = pnand %p4342_p1, %p4336_p9 }
  0x6e   : > { %4346 = shalt.err (!%p4343_p2)
}
  0x6f   : > { %3904 = dma.hbm_to_vmem [thread:$0]  (!%p4593_p11), %s6828_s11, 2048, %s435_s10, [#allocation11], %s4456_s29, %s4456_s29, %s4457_s20  }
  0x70   : > { %s4703_s13 = sadd.s32 1, %s4451_s16   ;;  %s39_s24 = sadd.s32 1, %s4447_s15 }
  0x71   : > { %s36_s8 = ssub.s32 %s4451_s16, %s4703_s13  ;;  %p46_p13 = scmp.ne.s32.totalorder %s4447_s15, %s4443_s30 }
  0x72   : > { %p37_p4 = scmp.eq.s32.totalorder %s36_s8, 0  ;;  %p47_p8 = scmp.eq.s32.totalorder %s4451_s16, 0 }
  0x73   : > { %p6939_p6 = scmp.eq.s32.totalorder %s4563_s17, 1  ;;  %p3917_p3 = scmp.lt.s32.totalorder %s4451_s16, 2 }
  0x74   : > { %s4719_s18 = scalar_select %p37_p4, %s4447_s15, %s39_s24  }
  0x75   : > { %p4713_p10 = por %p6939_p6, %p46_p13  ;;  %p48_p5 = por %p47_p8, %p46_p13 }
  0x76   : > { %s454_s22 = sand.u32 1, %s4447_s15   ;;  %s3382_s10 = sshll.u32 %s4451_s16, 12 }
  0x77   : > { %s3295_s25 = sshll.u32 %s454_s22, 8  ;;  %s4726_s23 = scalar_lea.hbm %s6817_s0, %s3382_s10 }
  0x78   : > { %s458_s28 = scalar_lea.vmem [#allocation4], %s3295_s25  ;;  %p4730_p11 = pnand %p3917_p3, %p48_p5 }
  0x79   : > { %s465_s26 = sshll.u32 %s458_s28, 4  ;;  %s4734_s24 = scalar_lea.sflag [#allocation5], %s454_s22  ;;  %s4728_s26 = int_to_ptr.vmem [resolvable:$true] %s465_s26 }
  0x7a   : > { %s4347_s8 = scalar_lea.hbm %s4726_s23, 4096  ;;  %p4349_p9 = pneg %p4730_p11 }
  0x7b   : > { %p4348_p7 = scmp.ne.s32.totalorder %s4726_s23, %s4347_s8  ;;  %s4352_s27 = scalar_lea.hbm %s6817_s0, 8192 }
  0x7c   : > { %p4353_p1 = scmp.lt.u32.totalorder %s4726_s23, %s6817_s0  ;;  %p4354_p2 = scmp.lt.u32.totalorder %s4352_s27, %s4347_s8 }
  0x7d   : > { %p4350_p12 = pnand %p4349_p9, %p4348_p7  ;;  %p4356_p4 = scmp.lt.u32.totalorder %s4347_s8, %s4726_s23 }
  0x7e   : > { %p4355_p13 = por %p4354_p2, %p4353_p1 }
  0x7f   : > { %p4351_p0 = pneg %p4350_p12 }
  0x80   : > { %p4357_p8 = por %p4356_p4, %p4355_p13 }
  0x82   : > { %p4358_p6 = pnand %p4357_p8, %p4351_p0 }
  0x84   : > { %4361 = shalt.err (!%p4358_p6)
}
  0x85   : > { %s4362_s22 = scalar_lea.vmem %s4728_s26, 4096  ;;  %s4459_s25 = smov [#allocation4]  }
  0x86   : > { %p4363_p3 = scmp.ne.s32.totalorder %s4728_s26, %s4362_s22  ;;  %s4367_s10 = sshll.u32 %s4459_s25, 4  ;;  %s4368_s10 = int_to_ptr.vmem [resolvable:$false] %s4367_s10 }
  0x87   : > { %s4369_s14 = scalar_lea.vmem %s4368_s10, 8192  ;;  %p4370_p12 = scmp.lt.s32.totalorder %s4728_s26, %s4368_s10 }
  0x88   : > { %p4365_p5 = pnand %p4363_p3, %p4349_p9  ;;  %p4371_p1 = scmp.lt.s32.totalorder %s4369_s14, %s4362_s22 }
  0x8a   : > { %p4366_p7 = pneg %p4365_p5  ;;  %p4372_p2 = por %p4371_p1, %p4370_p12 }
  0x8c   : > { %p4373_p13 = pnand %p4372_p2, %p4366_p7 }
  0x8e   : > { %4376 = shalt.err (!%p4373_p13)
}
  0x8f   : > { %3908 = dma.hbm_to_vmem [thread:$0]  (!%p4730_p11), %s4726_s23, 4096, %s4728_s26, %s4734_s24, %s4456_s29, %s4456_s29, %s4457_s20  }
  0x90   : > { %p6942_p9 = scmp.ne.s32.totalorder %s6936_s21, 0 }
  0x92   : > { %477 = sbr.rel (%p6942_p9) target bundleno = 1865 (0x749), region = 76 }
  0x99   : > { %s4768_s8 = sand.u32 1, %s4443_s30   ;;  %p6943_p0 = scmp.ne.s32.totalorder %s6933_s19, 0 }
  0x9a   : > { %s3299_s27 = sshll.u32 %s4768_s8, 8  ;;  %s480_s28 = scalar_lea.sflag [#allocation5], %s4768_s8 }
  0x9b   : > { %s4774_s6 = scalar_lea.vmem [#allocation4], %s3299_s27 }
  0x9c   : > { %4422 = dma.done.wait (%p6943_p0), %s480_s28, 4096  }
  0x9d   : > { %4424 = vsyncadd (%p6943_p0), %s480_s28, 4294963200  ;;  %p6944_p11 = scmp.eq.s32.totalorder %s4563_s17, 0 }
  0x9f   : > { %4426 = dma.done.wait (%p6944_p11), [#allocation8], 4096   ;;  %p6945_p4 = pmov %p6944_p11 }
  0xa1   : > { %4428 = vsyncadd (%p6945_p4), [#allocation8], 4294963200  ;;  %p6946_p8 = pmov %p6945_p4 }
  0xa2   : > { %p6947_p6 = pmov %p6945_p4 }
  0xa3   : > { %4430 = dma.done.wait (%p6946_p8), [#allocation11], 4096  }
  0xa4   : > { %4432 = vsyncadd (%p6947_p6), [#allocation11], 4294963200  ;;  %v568_v0 = vld [vmem:[#allocation7] sm:$0xff]  ;;  %v569_v1 = vld [vmem:[#allocation7 + $0x8] sm:$0xff]  ;;  %s7119_s24 = sld [smem:[#allocation79_spill]]  ;;  %vm4462_vm2 = vmmov 0  }
  0xa5   : > { %v570_v2 = vld [vmem:[#allocation7 + $0x10] sm:$0xff]  ;;  %v3744_v3 = vpack.c.bf16 %v569_v1, %v568_v0  ;;  %v571_v4 = vld [vmem:[#allocation7 + $0x18] sm:$0xff]  ;;  %v572_v6 = vld [vmem:[#allocation7 + $0x20] sm:$0xff]  ;;  %s7170_s10 = sld [smem:[#allocation80_spill]]  ;;  %s7171_s19 = sld [smem:[#allocation81_spill]] }
  0xa6   : > { %v3748_v5 = vpack.c.bf16 %v571_v4, %v570_v2  ;;  %v573_v7 = vld [vmem:[#allocation7 + $0x28] sm:$0xff]  ;;  %v586_v9 = vld [vmem:[%s4774_s6] sm:$0xff]  ;;  %v574_v11 = vld [vmem:[#allocation7 + $0x30] sm:$0xff]  ;;  %s7172_s20 = sld [smem:[#allocation82_spill]]  ;;  %s6645_s22 = scalar_lea.vmem [#allocation13], %s3299_s27 }
  0xa7   : > { %3745 = vmatprep.subr.bf16.mxu0 %v3744_v3  ;;  %3856 = vmatprep.subr.bf16.mxu1 %v3744_v3  ;;  %v3752_v8 = vpack.c.bf16 %v573_v7, %v572_v6  ;;  %v602_v10 = vld [vmem:[%s4774_s6 + $0x80] sm:$0xff]  ;;  %v575_v12 = vld [vmem:[#allocation7 + $0x38] sm:$0xff]  ;;  %v577_v15 = vld [vmem:[#allocation7 + $0x48] sm:$0xff]  ;;  %s3383_s27 = sshll.u32 %s4563_s17, 12  ;;  %s3177_s25 = sshll.u32 %s6645_s22, 4  ;;  %s6771_s25 = int_to_ptr.vmem [resolvable:$true] %s3177_s25 }
  0xa8   : > { %3747 = vmatpush3.bf16.msra.mxu0 %v3744_v3  ;;  %3864 = vmatpush3.bf16.msra.mxu1 %v3744_v3  ;;  %v3756_v13 = vpack.c.bf16 %v575_v12, %v574_v11  ;;  %v576_v14 = vld [vmem:[#allocation7 + $0x40] sm:$0xff]  ;;  %v578_v17 = vld [vmem:[#allocation7 + $0x50] sm:$0xff]  ;;  %v579_v18 = vld [vmem:[#allocation7 + $0x58] sm:$0xff]  ;;  %s7174_s28 = sld [smem:[#allocation84_spill]]  ;;  %s3164_s17 = scalar_lea.sflag [#allocation6], %s4768_s8 }
  0xa9   : > { %3749 = vmatprep.subr.bf16.mxu0 %v3748_v5  ;;  %3857 = vmatprep.subr.bf16.mxu1 %v3748_v5  ;;  %v3760_v16 = vpack.c.bf16 %v577_v15, %v576_v14  ;;  %v3764_v19 = vpack.c.bf16 %v579_v18, %v578_v17  ;;  %v580_v20 = vld [vmem:[#allocation7 + $0x60] sm:$0xff]  ;;  %v581_v21 = vld [vmem:[#allocation7 + $0x68] sm:$0xff]  ;;  %v582_v23 = vld [vmem:[#allocation7 + $0x70] sm:$0xff]  ;;  %s4377_s21 = scalar_lea.vmem %s6771_s25, 4096 }
  0xaa   : > { %3546 = vmatprep.mubr.f32.mxu0 %v586_v9  ;;  %3570 = vmatprep.mubr.f32.mxu1 %v602_v10  ;;  %v3768_v22 = vpack.c.bf16 %v581_v21, %v580_v20  ;;  %v583_v24 = vld [vmem:[#allocation7 + $0x78] sm:$0xff]  ;;  %v587_v26 = vld [vmem:[%s4774_s6 + $0x8] sm:$0xff]  ;;  %v588_v28 = vld [vmem:[%s4774_s6 + $0x10] sm:$0xff]  ;;  %p4378_p3 = scmp.ne.s32.totalorder %s6771_s25, %s4377_s21 }
  0xab   : > { %v3772_v25 = vpack.c.bf16 %v583_v24, %v582_v23  ;;  %v603_v27 = vld [vmem:[%s4774_s6 + $0x88] sm:$0xff]  ;;  %v604_v29 = vld [vmem:[%s4774_s6 + $0x90] sm:$0xff]  ;;  %v589_v30 = vld [vmem:[%s4774_s6 + $0x18] sm:$0xff] }
  0xac   : > { %3751 = vmatpush3.bf16.msra.mxu0 %v3748_v5  ;;  %3865 = vmatpush3.bf16.msra.mxu1 %v3748_v5  ;;  %v605_v31 = vld [vmem:[%s4774_s6 + $0x98] sm:$0xff]  ;;  %v590_v32 = vld [vmem:[%s4774_s6 + $0x20] sm:$0xff]  ;;  %v591_v34 = vld [vmem:[%s4774_s6 + $0x28] sm:$0xff]  ;;  %p4379_p5 = pnand %p4378_p3, %p4713_p10 }
  0xad   : > { %3753 = vmatprep.subr.bf16.mxu0 %v3752_v8  ;;  %3858 = vmatprep.subr.bf16.mxu1 %v3752_v8  ;;  %v606_v33 = vld [vmem:[%s4774_s6 + $0xa0] sm:$0xff]  ;;  %v607_v35 = vld [vmem:[%s4774_s6 + $0xa8] sm:$0xff]  ;;  %v592_v36 = vld [vmem:[%s4774_s6 + $0x30] sm:$0xff] }
  0xae   : > { %v608_v37 = vld [vmem:[%s4774_s6 + $0xb0] sm:$0xff]  ;;  %v593_v38 = vld [vmem:[%s4774_s6 + $0x38] sm:$0xff]  ;;  %v594_v40 = vld [vmem:[%s4774_s6 + $0x40] sm:$0xff]  ;;  %p4380_p7 = pneg %p4379_p5 }
  0xaf   : > { %v609_v39 = vld [vmem:[%s4774_s6 + $0xb8] sm:$0xff]  ;;  %v610_v41 = vld [vmem:[%s4774_s6 + $0xc0] sm:$0xff]  ;;  %v595_v42 = vld [vmem:[%s4774_s6 + $0x48] sm:$0xff] }
  0xb0   : > { %3755 = vmatpush3.bf16.msra.mxu0 %v3752_v8  ;;  %3866 = vmatpush3.bf16.msra.mxu1 %v3752_v8  ;;  %v611_v43 = vld [vmem:[%s4774_s6 + $0xc8] sm:$0xff]  ;;  %v596_v44 = vld [vmem:[%s4774_s6 + $0x50] sm:$0xff]  ;;  %v597_v46 = vld [vmem:[%s4774_s6 + $0x58] sm:$0xff] }
  0xb1   : > { %3757 = vmatprep.subr.bf16.mxu0 %v3756_v13  ;;  %3859 = vmatprep.subr.bf16.mxu1 %v3756_v13  ;;  %v612_v45 = vld [vmem:[%s4774_s6 + $0xd0] sm:$0xff]  ;;  %v613_v47 = vld [vmem:[%s4774_s6 + $0xd8] sm:$0xff]  ;;  %v598_v48 = vld [vmem:[%s4774_s6 + $0x60] sm:$0xff] }
  0xb2   : > { %v614_v49 = vld [vmem:[%s4774_s6 + $0xe0] sm:$0xff]  ;;  %v599_v50 = vld [vmem:[%s4774_s6 + $0x68] sm:$0xff]  ;;  %v600_v52 = vld [vmem:[%s4774_s6 + $0x70] sm:$0xff] }
  0xb3   : > { %v615_v51 = vld [vmem:[%s4774_s6 + $0xe8] sm:$0xff]  ;;  %v616_v53 = vld [vmem:[%s4774_s6 + $0xf0] sm:$0xff]  ;;  %v601_v54 = vld [vmem:[%s4774_s6 + $0x78] sm:$0xff] }
  0xb4   : > { %3759 = vmatpush3.bf16.msra.mxu0 %v3756_v13  ;;  %3867 = vmatpush3.bf16.msra.mxu1 %v3756_v13  ;;  %v617_v55 = vld [vmem:[%s4774_s6 + $0xf8] sm:$0xff]  ;;  %v4823_v56 = vld [vmem:[%s6819_s2] ss:$0 sm:$0xff] }
  0xb5   : > { %3761 = vmatprep.subr.bf16.mxu0 %v3760_v16  ;;  %3860 = vmatprep.subr.bf16.mxu1 %v3760_v16  ;;  %v4828_v57 = vld [vmem:[%s6820_s3] ss:$0 sm:$0xff] }
  0xb8   : > { %3763 = vmatpush3.bf16.msra.mxu0 %v3760_v16  ;;  %3868 = vmatpush3.bf16.msra.mxu1 %v3760_v16 }
  0xb9   : > { %3765 = vmatprep.subr.bf16.mxu0 %v3764_v19  ;;  %3861 = vmatprep.subr.bf16.mxu1 %v3764_v19 }
  0xbc   : > { %3767 = vmatpush3.bf16.msra.mxu0 %v3764_v19  ;;  %3869 = vmatpush3.bf16.msra.mxu1 %v3764_v19 }
  0xbd   : > { %3769 = vmatprep.subr.bf16.mxu0 %v3768_v22  ;;  %3862 = vmatprep.subr.bf16.mxu1 %v3768_v22 }
  0xc0   : > { %3771 = vmatpush3.bf16.msra.mxu0 %v3768_v22  ;;  %3870 = vmatpush3.bf16.msra.mxu1 %v3768_v22 }
  0xc1   : > { %3773 = vmatprep.subr.bf16.mxu0 %v3772_v25  ;;  %3863 = vmatprep.subr.bf16.mxu1 %v3772_v25 }
  0xc4   : > { %3775 = vmatpush3.bf16.msra.mxu0 %v3772_v25  ;;  %3871 = vmatpush3.bf16.msra.mxu1 %v3772_v25 }
  0xc7   : > { %3547 = vmatmul.mubr.f32.vlgmr.msra.gmra.mrb[0].mxu0 %v587_v26  ;;  %3571 = vmatmul.mubr.f32.vlgmr.msra.gmra.mrb[0].mxu1 %v603_v27 }
  0xc8   : > { %3549 = vmatprep.mubr.f32.mxu0 %v588_v28  ;;  %3573 = vmatprep.mubr.f32.mxu1 %v604_v29 }
  0xcb   : > { %3550 = vmatmul.mubr.f32.gmra.mrb[2].mxu0 %v589_v30  ;;  %3574 = vmatmul.mubr.f32.gmra.mrb[2].mxu1 %v605_v31 }
  0xcc   : > { %3552 = vmatprep.mubr.f32.mxu0 %v590_v32  ;;  %3576 = vmatprep.mubr.f32.mxu1 %v606_v33 }
  0xcf   : > { %3553 = vmatmul.mubr.f32.gmra.mrb[4].mxu0 %v591_v34  ;;  %3577 = vmatmul.mubr.f32.gmra.mrb[4].mxu1 %v607_v35 }
  0xd0   : > { %3555 = vmatprep.mubr.f32.mxu0 %v592_v36  ;;  %3579 = vmatprep.mubr.f32.mxu1 %v608_v37 }
  0xd3   : > { %3556 = vmatmul.mubr.f32.gmra.mrb[6].mxu0 %v593_v38  ;;  %3580 = vmatmul.mubr.f32.gmra.mrb[6].mxu1 %v609_v39 }
  0xd4   : > { %3558 = vmatprep.mubr.f32.mxu0 %v594_v40  ;;  %3582 = vmatprep.mubr.f32.mxu1 %v610_v41 }
  0xd7   : > { %3559 = vmatmul.mubr.f32.gmra.mrb[8].mxu0 %v595_v42  ;;  %3583 = vmatmul.mubr.f32.gmra.mrb[8].mxu1 %v611_v43 }
  0xd8   : > { %3561 = vmatprep.mubr.f32.mxu0 %v596_v44  ;;  %3585 = vmatprep.mubr.f32.mxu1 %v612_v45 }
  0xdb   : > { %3562 = vmatmul.mubr.f32.gmra.mrb[10].mxu0 %v597_v46  ;;  %3586 = vmatmul.mubr.f32.gmra.mrb[10].mxu1 %v613_v47 }
  0xdc   : > { %3564 = vmatprep.mubr.f32.mxu0 %v598_v48  ;;  %3588 = vmatprep.mubr.f32.mxu1 %v614_v49 }
  0xdf   : > { %3565 = vmatmul.mubr.f32.gmra.mrb[12].mxu0 %v599_v50  ;;  %3589 = vmatmul.mubr.f32.gmra.mrb[12].mxu1 %v615_v51 }
  0xe0   : > { %3567 = vmatprep.mubr.f32.mxu0 %v600_v52  ;;  %3591 = vmatprep.mubr.f32.mxu1 %v616_v53  ;;  %v1282_v52 = vlaneseq }
  0xe3   : > { %3568 = vmatmul.mubr.f32.gmra.mrb[14].mxu0 %v601_v54  ;;  %3592 = vmatmul.mubr.f32.gmra.mrb[14].mxu1 %v617_v55 }
 0x19a   : > { %v3548_v58 = vpop.f32.mrb[0].mxu0  ;;  %v3572_v59 = vpop.f32.mrb[0].mxu1 }
 0x19b   : > { %v850_v60 = vmul.f32 %v3548_v58, %v4823_v56  ;;  %v866_v61 = vmul.f32 %v3572_v59, %v4823_v56  ;;  %v684_v62 = vpop.f32.mrb[1].mxu0  ;;  %v764_v63 = vpop.f32.mrb[1].mxu1 }
 0x19c   : > { %v849_v0 = vmul.f32 %v4823_v56, %v684_v62  ;;  %v865_v1 = vmul.f32 %v4823_v56, %v764_v63 }
 0x19d   : > { %v4835_v2 = vadd.f32 %v4828_v57, %v850_v60  ;;  %v4838_v3 = vadd.f32 %v4828_v57, %v866_v61 }
 0x19e   : > { %v4841_v4 = vadd.f32 %v4828_v57, %v849_v0  ;;  %v4844_v5 = vadd.f32 %v4828_v57, %v865_v1  ;;  %v3551_v6 = vpop.f32.mrb[2].mxu0  ;;  %v3575_v7 = vpop.f32.mrb[2].mxu1  ;;  %v4912_v0 = vshrl.u32 %v1282_v52, 7 }
 0x19f   : > { %v3308_v8 = vmul.f32 -1.442695, %v4835_v2  ;;  %v3324_v9 = vmul.f32 -1.442695, %v4838_v3  ;;  %v852_v10 = vmul.f32 %v3551_v6, %v4823_v56  ;;  %v868_v11 = vmul.f32 %v3575_v7, %v4823_v56  ;;  %v694_v12 = vpop.f32.mrb[3].mxu0  ;;  %v774_v13 = vpop.f32.mrb[3].mxu1 }
 0x1a0   : > { %v3307_v14 = vmul.f32 -1.442695, %v4841_v4  ;;  %v3323_v15 = vmul.f32 -1.442695, %v4844_v5  ;;  %v851_v16 = vmul.f32 %v4823_v56, %v694_v12  ;;  %v867_v17 = vmul.f32 %v4823_v56, %v774_v13 }
 0x1a1   : > { %3969 = vpow2.f32 %v3308_v8  ;;  %v4855_v18 = vadd.f32 %v4828_v57, %v852_v10  ;;  %v4858_v19 = vadd.f32 %v4828_v57, %v868_v11  ;;  %v4921_v13 = vsub.s32 1, %v4912_v0 }
 0x1a2   : > { %3971 = vpow2.f32 %v3324_v9  ;;  %v4861_v20 = vadd.f32 %v4828_v57, %v851_v16  ;;  %v3554_v21 = vpop.f32.mrb[4].mxu0  ;;  %v3578_v22 = vpop.f32.mrb[4].mxu1  ;;  %v4864_v23 = vadd.f32 %v4828_v57, %v867_v17  ;;  %v1175_v16 = vld [vmem:[%s6821_s4] sm:$0x7]  ;;  %vm1501_vm0 = vcmp.lt.s32.totalorder %v4912_v0, 7 }
 0x1a3   : > { %3973 = vpow2.f32 %v3307_v14  ;;  %v854_v24 = vmul.f32 %v3554_v21, %v4823_v56  ;;  %v704_v25 = vpop.f32.mrb[5].mxu0  ;;  %v784_v26 = vpop.f32.mrb[5].mxu1  ;;  %v3310_v27 = vmul.f32 -1.442695, %v4855_v18  ;;  %v870_v28 = vmul.f32 %v3578_v22, %v4823_v56 }
 0x1a4   : > { %3975 = vpow2.f32 %v3323_v15  ;;  %v3326_v29 = vmul.f32 -1.442695, %v4858_v19  ;;  %v3309_v31 = vmul.f32 -1.442695, %v4861_v20  ;;  %v3325_v35 = vmul.f32 -1.442695, %v4864_v23 }
 0x1a5   : > { %v4871_v30 = vadd.f32 %v4828_v57, %v854_v24  ;;  %v4875_v32 = vadd.f32 %v4828_v57, %v870_v28  ;;  %3977 = vpow2.f32 %v3310_v27  ;;  %v853_v47 = vmul.f32 %v4823_v56, %v704_v25 }
 0x1a6   : > { %v4877_v33 = vpop.f32.mrb[6].mxu0  ;;  %v4879_v34 = vpop.f32.mrb[6].mxu1  ;;  %3979 = vpow2.f32 %v3326_v29  ;;  %v869_v50 = vmul.f32 %v4823_v56, %v784_v26  ;;  %v4927_v22 = vsub.s32 2, %v4912_v0  ;;  %v4933_v29 = vrot.slane %v1175_v16, %v4921_v13 }
 0x1a7   : > { %v4882_v36 = vpop.f32.mrb[7].mxu0  ;;  %v4884_v37 = vpop.f32.mrb[7].mxu1  ;;  %v3312_v38 = vmul.f32 -1.442695, %v4871_v30  ;;  %v3328_v39 = vmul.f32 -1.442695, %v4875_v32  ;;  %3981 = vpow2.f32 %v3309_v31  ;;  %v4905_v60 = vadd.f32 %v4828_v57, %v853_v47 }
 0x1a8   : > { %3983 = vpow2.f32 %v3325_v35  ;;  %v4910_v62 = vadd.f32 %v4828_v57, %v869_v50  ;;  %6949 = vst [vmem:[#allocation21_spill] sm:$0xff] %v4933_v29  ;;  %v4936_v31 = vsub.s32 0, %v4912_v0  ;;  %vm1284_vm1 = vcmp.lt.s32.totalorder %v4912_v0, 1 }
 0x1a9   : > { %3985 = vpow2.f32 %v3312_v38  ;;  %v3311_v9 = vmul.f32 -1.442695, %v4905_v60 }
 0x1aa   : > { %v4888_v40 = vpop.f32.mrb[8].mxu0  ;;  %v4890_v41 = vpop.f32.mrb[8].mxu1  ;;  %3987 = vpow2.f32 %v3328_v39  ;;  %v3327_v11 = vmul.f32 -1.442695, %v4910_v62  ;;  %v6838_v39 = vmov 0.0  }
 0x1ab   : > { %v3970_v42 = vpop.eup %3969  ;;  %v4892_v43 = vpop.f32.mrb[9].mxu0  ;;  %v4950_v47 = vrot.slane %v6838_v39, 7 }
 0x1ac   : > { %v4894_v44 = vpop.f32.mrb[9].mxu1  ;;  %v3972_v45 = vpop.eup %3971  ;;  %v1016_v46 = vadd.f32 1.0, %v3970_v42  ;;  %v4939_v42 = vrot.slane %v6838_v39, 1 }
 0x1ad   : > { %v3974_v48 = vpop.eup %3973  ;;  %v1032_v49 = vadd.f32 1.0, %v3972_v45 }
 0x1ae   : > { %v3976_v51 = vpop.eup %3975  ;;  %3989 = vrcp.f32 %v1016_v46  ;;  %v1015_v53 = vadd.f32 1.0, %v3974_v48  ;;  %v4898_v54 = vpop.f32.mrb[10].mxu0  ;;  %6950 = vst [vmem:[#allocation22_spill] sm:$0xff] %v4939_v42  ;;  %v4947_v46 = vrot.slane %v1175_v16, %v4927_v22 }
 0x1af   : > { %v4900_v55 = vpop.f32.mrb[10].mxu1  ;;  %3991 = vrcp.f32 %v1032_v49  ;;  %v1031_v58 = vadd.f32 1.0, %v3976_v51  ;;  %v4902_v59 = vpop.f32.mrb[11].mxu0  ;;  %v4963_v51 = vrot.slane %v1175_v16, %v4936_v31 }
 0x1b0   : > { %3993 = vrcp.f32 %v1015_v53  ;;  %v4907_v61 = vpop.f32.mrb[11].mxu1  ;;  %v3978_v63 = vpop.eup %3977 }
 0x1b1   : > { %3995 = vrcp.f32 %v1031_v58  ;;  %v3980_v7 = vpop.eup %3979  ;;  %v1018_v14 = vadd.f32 1.0, %v3978_v63  ;;  %6955 = vst [vmem:[#allocation27_spill] sm:$0xff] %v4963_v51 }
 0x1b2   : > { %v4914_v1 = vpop.f32.mrb[12].mxu0  ;;  %v4916_v6 = vpop.f32.mrb[12].mxu1  ;;  %v1034_v17 = vadd.f32 1.0, %v3980_v7  ;;  %3997 = vpow2.f32 %v3311_v9 }
 0x1b3   : > { %v3982_v8 = vpop.eup %3981  ;;  %3999 = vpow2.f32 %v3327_v11  ;;  %v4952_v48 = vpop.f32.mrb[13].mxu0 }
 0x1b4   : > { %v3984_v10 = vpop.eup %3983  ;;  %v1017_v24 = vadd.f32 1.0, %v3982_v8  ;;  %4001 = vrcp.f32 %v1018_v14  ;;  %6952 = vst [vmem:[#allocation24_spill] sm:$0xff] %v4952_v48 }
 0x1b5   : > { %v3986_v12 = vpop.eup %3985  ;;  %v1033_v27 = vadd.f32 1.0, %v3984_v10  ;;  %4003 = vrcp.f32 %v1034_v17 }
 0x1b6   : > { %v3988_v15 = vpop.eup %3987  ;;  %v1020_v35 = vadd.f32 1.0, %v3986_v12  ;;  %4005 = vrcp.f32 %v1017_v24 }
 0x1b7   : > { %4007 = vrcp.f32 %v1033_v27  ;;  %v1036_v52 = vadd.f32 1.0, %v3988_v15  ;;  %v4991_v15 = vpop.f32.mrb[13].mxu1 }
 0x1b8   : > { %v3990_v21 = vpop.eup %3989  ;;  %4009 = vrcp.f32 %v1020_v35  ;;  %6958 = vst [vmem:[#allocation30_spill] sm:$0xff] %v4991_v15  ;;  %v1177_v15 = vld [vmem:[%s6821_s4 + $0x8] sm:$0x7] }
 0x1b9   : > { %v3992_v25 = vpop.eup %3991  ;;  %v4930_v26 = vmul.f32 %v3990_v21, %v4835_v2  ;;  %4011 = vrcp.f32 %v1036_v52  ;;  %v5066_v52 = vpop.f32.mrb[14].mxu0 }
 0x1ba   : > { %v3994_v28 = vpop.eup %3993  ;;  %v4943_v2 = vmul.f32 %v3992_v25, %v4838_v3  ;;  %6968 = vst [vmem:[#allocation40_spill] sm:$0xff] %v5066_v52 }
 0x1bb   : > { %6948 = vst [vmem:[#allocation20_spill] sm:$0xff] %v4930_v26  ;;  %v3996_v38 = vpop.eup %3995  ;;  %v1457_v45 = vrot.slane %v4930_v26, 1  ;;  %v1238_v49 = vrot.slane %v4930_v26, 7  ;;  %v4956_v50 = vmul.f32 %v3994_v28, %v4841_v4  ;;  %v1392_v53 = vmul.f32 %v4933_v29, %v4930_v26 }
 0x1bc   : > { %6951 = vst [vmem:[#allocation23_spill] sm:$0xff] %v4943_v2  ;;  %v4959_v3 = vmul.f32 %v3996_v38, %v4844_v5  ;;  %v1262_v58 = vrot.slane %v4943_v2, 7  ;;  %v1481_v63 = vrot.slane %v4943_v2, 1  ;;  %v1408_v7 = vmul.f32 %v4933_v29, %v4943_v2  ;;  %v3998_v16 = vpop.eup %3997 }
 0x1bd   : > { %6953 = vst [vmem:[#allocation25_spill] sm:$0xff] %v4956_v50  ;;  %v1237_v4 = vrot.slane %v4956_v50, 7  ;;  %v4973_v5 = vsel %vm1501_vm0, %v1457_v45, %v4939_v42  ;;  %v1456_v8 = vrot.slane %v4956_v50, 1  ;;  %v1391_v12 = vmul.f32 %v4933_v29, %v4956_v50  ;;  %v4000_v27 = vpop.eup %3999 }
 0x1be   : > { %6954 = vst [vmem:[#allocation26_spill] sm:$0xff] %v4959_v3  ;;  %6956 = vst [vmem:[#allocation28_spill] sm:$0xff] %v4973_v5  ;;  %v1261_v9 = vrot.slane %v4959_v3, 7  ;;  %v1480_v14 = vrot.slane %v4959_v3, 1  ;;  %v1407_v25 = vmul.f32 %v4933_v29, %v4959_v3  ;;  %v1541_v28 = vmul.f32 %v4947_v46, %v4973_v5 }
 0x1bf   : > { %v4981_v10 = vsel %vm1284_vm1, %v1237_v4, %v1238_v49  ;;  %v4986_v11 = vsel %vm1284_vm1, %v4950_v47, %v1237_v4  ;;  %v4999_v24 = vsel %vm1501_vm0, %v1456_v8, %v1457_v45  ;;  %v5008_v35 = vsel %vm1501_vm0, %v1481_v63, %v4939_v42  ;;  %v4002_v49 = vpop.eup %4001 }
 0x1c0   : > { %6957 = vst [vmem:[#allocation29_spill] sm:$0xff] %v4981_v10  ;;  %v1323_v17 = vmul.f32 %v4963_v51, %v4986_v11  ;;  %v1324_v21 = vmul.f32 %v4963_v51, %v4981_v10  ;;  %6959 = vst [vmem:[#allocation31_spill] sm:$0xff] %v4999_v24  ;;  %v5012_v38 = vsel %vm1284_vm1, %v1261_v9, %v1262_v58  ;;  %v4004_v2 = vpop.eup %4003  ;;  %v1176_v58 = vld [vmem:[%s6821_s4 + $0x4] sm:$0x7]  ;;  %v1035_v48 = vadd.f32 1.0, %v4000_v27 }
 0x1c1   : > { %6960 = vst [vmem:[#allocation32_spill] sm:$0xff] %v5008_v35  ;;  %6961 = vst [vmem:[#allocation33_spill] sm:$0xff] %v5012_v38  ;;  %v5017_v45 = vsel %vm1284_vm1, %v4950_v47, %v1261_v9  ;;  %v1540_v39 = vmul.f32 %v4947_v46, %v4999_v24  ;;  %v1340_v9 = vmul.f32 %v4963_v51, %v5012_v38 }
 0x1c2   : > { %6962 = vst [vmem:[#allocation34_spill] sm:$0xff] %v5017_v45  ;;  %v1423_v4 = vadd.f32 %v1391_v12, %v1323_v17  ;;  %v1424_v8 = vadd.f32 %v1392_v53, %v1324_v21  ;;  %v1339_v3 = vmul.f32 %v4963_v51, %v5017_v45  ;;  %v5033_v53 = vsel %vm1501_vm0, %v1480_v14, %v1481_v63  ;;  %v4006_v17 = vpop.eup %4005 }
 0x1c3   : > { %6963 = vst [vmem:[#allocation35_spill] sm:$0xff] %v5033_v53  ;;  %v1019_v12 = vadd.f32 1.0, %v3998_v16  ;;  %v4008_v5 = vpop.eup %4007  ;;  %v1557_v26 = vmul.f32 %v4947_v46, %v5008_v35  ;;  %v1440_v50 = vadd.f32 %v1408_v7, %v1340_v9  ;;  %v1556_v10 = vmul.f32 %v4947_v46, %v5033_v53  ;;  %v5148_v53 = vpop.f32.mrb[15].mxu0 }
 0x1c4   : > { %v5035_v21 = vadd.f32 %v1540_v39, %v1423_v4  ;;  %v1573_v45 = vadd.f32 %v1541_v28, %v1424_v8  ;;  %v1439_v24 = vadd.f32 %v1407_v25, %v1339_v3  ;;  %v5042_v38 = vmul.f32 %v4002_v49, %v4855_v18  ;;  %v4010_v63 = vpop.eup %4009  ;;  %6982 = vst [vmem:[#allocation54_spill] sm:$0xff] %v5148_v53 }
 0x1c5   : > { %v5045_v14 = vrot.slane %v1176_v58, %v4921_v13  ;;  %v5048_v39 = vrot.slane %v1176_v58, %v4927_v22  ;;  %v5051_v3 = vrot.slane %v1177_v15, %v4921_v13  ;;  %v5055_v7 = vmul.f32 %v4963_v51, %v4950_v47 }
 0x1c6   : > { %6964 = vst [vmem:[#allocation36_spill] sm:$0xff] %v5035_v21  ;;  %6965 = vst [vmem:[#allocation37_spill] sm:$0xff] %v5042_v38  ;;  %v1588_v16 = vadd.f32 %v1556_v10, %v1439_v24  ;;  %4013 = vrcp.f32 %v1019_v12  ;;  %v856_v18 = vmul.f32 %v4877_v33, %v4823_v56  ;;  %v5060_v25 = vmul.f32 %v4004_v2, %v4858_v19 }
 0x1c7   : > { %6966 = vst [vmem:[#allocation38_spill] sm:$0xff] %v5045_v14  ;;  %4015 = vrcp.f32 %v1035_v48  ;;  %v872_v27 = vmul.f32 %v4879_v34, %v4823_v56  ;;  %v855_v13 = vmul.f32 %v4823_v56, %v4882_v36  ;;  %v1241_v28 = vrot.slane %v5042_v38, 7 }
 0x1c8   : > { %6967 = vst [vmem:[#allocation39_spill] sm:$0xff] %v5060_v25  ;;  %v5070_v10 = vmul.f32 %v4006_v17, %v4861_v20  ;;  %v5073_v24 = vmul.f32 %v4008_v5, %v4864_v23  ;;  %v1589_v33 = vadd.f32 %v1557_v26, %v1440_v50  ;;  %v5076_v19 = vrot.slane %v1177_v15, %v4927_v22 }
 0x1c9   : > { %v5079_v2 = vmul.f32 0.0, %v4933_v29  ;;  %v1265_v34 = vrot.slane %v5060_v25, 7  ;;  %v1484_v36 = vrot.slane %v5060_v25, 1  ;;  %v5084_v48 = vrot.slane %v1176_v58, %v4936_v31 }
 0x1ca   : > { %6969 = vst [vmem:[#allocation41_spill] sm:$0xff] %v5070_v10  ;;  %6970 = vst [vmem:[#allocation42_spill] sm:$0xff] %v5073_v24  ;;  %v5087_v20 = vrot.slane %v1177_v15, %v4936_v31  ;;  %v6853_v23 = vrot.slane %v5070_v10, 7  ;;  %v5091_v26 = vadd.f32 %v4828_v57, %v856_v18  ;;  %v1264_v22 = vrot.slane %v5073_v24, 7 }
 0x1cb   : > { %6971 = vst [vmem:[#allocation43_spill] sm:$0xff] %v5084_v48  ;;  %v5095_v50 = vadd.f32 %v4828_v57, %v872_v27  ;;  %v5098_v5 = vadd.f32 %v4828_v57, %v855_v13  ;;  %v871_v49 = vmul.f32 %v4823_v56, %v4884_v37  ;;  %v1410_v31 = vmul.f32 %v4933_v29, %v5060_v25  ;;  %v5138_v27 = vpop.f32.mrb[14].mxu1  ;;  %v4012_v13 = vpop.eup %4011 }
 0x1cc   : > { %6972 = vst [vmem:[#allocation44_spill] sm:$0xff] %v5091_v26  ;;  %v5108_v15 = vsel %vm1284_vm1, %v6853_v23, %v1241_v28  ;;  %v1409_v4 = vmul.f32 %v4933_v29, %v5073_v24  ;;  %v5113_v8 = vmul.f32 %v4010_v63, %v4871_v30  ;;  %v5118_v58 = vsel %vm1501_vm0, %v1484_v36, %v4939_v42 }
 0x1cd   : > { %6973 = vst [vmem:[#allocation45_spill] sm:$0xff] %v5095_v50  ;;  %6974 = vst [vmem:[#allocation46_spill] sm:$0xff] %v5098_v5  ;;  %v1614_v37 = vmul.f32 %v5084_v48, %v5108_v15  ;;  %v5124_v9 = vsel %vm1284_vm1, %v1264_v22, %v1265_v34  ;;  %v5129_v12 = vsel %vm1284_vm1, %v4950_v47, %v1264_v22  ;;  %v1483_v63 = vrot.slane %v5073_v24, 1 }
 0x1ce   : > { %6975 = vst [vmem:[#allocation47_spill] sm:$0xff] %v5108_v15  ;;  %6976 = vst [vmem:[#allocation48_spill] sm:$0xff] %v5113_v8  ;;  %v1341_v30 = vmul.f32 %v4963_v51, %v5129_v12  ;;  %v1342_v17 = vmul.f32 %v4963_v51, %v5124_v9  ;;  %v1629_v18 = vmul.f32 %v5084_v48, %v5129_v12 }
 0x1cf   : > { %6977 = vst [vmem:[#allocation49_spill] sm:$0xff] %v5118_v58  ;;  %6978 = vst [vmem:[#allocation50_spill] sm:$0xff] %v5124_v9  ;;  %v1698_v28 = vmul.f32 %v5045_v14, %v5060_v25  ;;  %v5142_v34 = vadd.f32 %v1614_v37, %v1573_v45  ;;  %v1630_v22 = vmul.f32 %v5084_v48, %v5124_v9 }
 0x1d0   : > { %6979 = vst [vmem:[#allocation51_spill] sm:$0xff] %v5129_v12  ;;  %6980 = vst [vmem:[#allocation52_spill] sm:$0xff] %v5138_v27  ;;  %v1697_v23 = vmul.f32 %v5045_v14, %v5073_v24  ;;  %v4014_v35 = vpop.eup %4013  ;;  %v1441_v52 = vadd.f32 %v1409_v4, %v1341_v30  ;;  %v1442_v21 = vadd.f32 %v1410_v31, %v1342_v17  ;;  %v1463_v17 = vrot.slane %v5113_v8, 1 }
 0x1d1   : > { %6981 = vst [vmem:[#allocation53_spill] sm:$0xff] %v5142_v34  ;;  %v5152_v12 = vsel %vm1501_vm0, %v1483_v63, %v1484_v36  ;;  %v1661_v27 = vadd.f32 %v1629_v18, %v1588_v16  ;;  %v4016_v15 = vpop.eup %4015  ;;  %v1559_v45 = vmul.f32 %v4947_v46, %v5118_v58  ;;  %v1662_v25 = vadd.f32 %v1630_v22, %v1589_v33 }
 0x1d2   : > { %6983 = vst [vmem:[#allocation55_spill] sm:$0xff] %v5152_v12  ;;  %v1558_v37 = vmul.f32 %v4947_v46, %v5152_v12  ;;  %v1770_v24 = vmul.f32 %v5048_v39, %v5152_v12  ;;  %v5161_v4 = vadd.f32 %v4828_v57, %v871_v49  ;;  %v858_v36 = vmul.f32 %v4888_v40, %v4823_v56 }
 0x1d3   : > { %v1729_v9 = vadd.f32 %v1697_v23, %v1661_v27  ;;  %v5167_v16 = vmul.f32 %v4890_v41, %v4823_v56  ;;  %v1730_v30 = vadd.f32 %v1698_v28, %v1662_v25  ;;  %v3314_v33 = vmul.f32 -1.442695, %v5091_v26 }
 0x1d4   : > { %6984 = vst [vmem:[#allocation56_spill] sm:$0xff] %v5161_v4  ;;  %v1590_v31 = vadd.f32 %v1558_v37, %v1441_v52  ;;  %v1244_v18 = vrot.slane %v5113_v8, 7  ;;  %v1132_v23 = vmul.f32 %v4012_v13, %v4875_v32  ;;  %v5174_v49 = vmul.f32 -1.442695, %v5095_v50 }
 0x1d5   : > { %v1802_v63 = vadd.f32 %v1770_v24, %v1729_v9  ;;  %v5179_v40 = vsel %vm1501_vm0, %v1463_v17, %v4939_v42  ;;  %v5182_v41 = vmul.f32 %v4014_v35, %v4905_v60  ;;  %v1131_v25 = vmul.f32 %v4016_v15, %v4910_v62 }
 0x1d6   : > { %6985 = vst [vmem:[#allocation57_spill] sm:$0xff] %v5179_v40  ;;  %v1591_v52 = vadd.f32 %v1559_v45, %v1442_v21  ;;  %v5186_v24 = vmul.f32 -1.442695, %v5098_v5  ;;  %v5189_v9 = vmul.f32 -1.442695, %v5161_v4  ;;  %v5192_v32 = vadd.f32 %v4828_v57, %v858_v36  ;;  %v5201_v21 = vpop.f32.mrb[15].mxu1 }
 0x1d7   : > { %6986 = vst [vmem:[#allocation58_spill] sm:$0xff] %v5182_v41  ;;  %v5196_v27 = vmul.f32 %v4823_v56, %v4892_v43  ;;  %v1771_v60 = vmul.f32 %v5048_v39, %v5118_v58  ;;  %v1487_v35 = vrot.slane %v1132_v23, 1  ;;  %v1243_v62 = vrot.slane %v5182_v41, 7  ;;  %6987 = vst [vmem:[#allocation59_spill] sm:$0xff] %v5201_v21 }
 0x1d8   : > { %4017 = vpow2.f32 %v3314_v33  ;;  %v1396_v15 = vmul.f32 %v4933_v29, %v5113_v8  ;;  %v1545_v13 = vmul.f32 %v4947_v46, %v5179_v40  ;;  %v1268_v28 = vrot.slane %v1132_v23, 7 }
 0x1d9   : > { %v1462_v22 = vrot.slane %v5182_v41, 1  ;;  %v1510_v43 = vsel %vm1501_vm0, %v1487_v35, %v4939_v42  ;;  %v5213_v45 = vsel %vm1284_vm1, %v1243_v62, %v1244_v18  ;;  %v5218_v37 = vsel %vm1284_vm1, %v4950_v47, %v1243_v62 }
 0x1da   : > { %6988 = vst [vmem:[#allocation60_spill] sm:$0xff] %v5213_v45  ;;  %6989 = vst [vmem:[#allocation61_spill] sm:$0xff] %v5218_v37  ;;  %v1267_v36 = vrot.slane %v1131_v25, 7  ;;  %v1412_v33 = vmul.f32 %v4933_v29, %v1132_v23  ;;  %v1700_v58 = vmul.f32 %v5045_v14, %v1132_v23  ;;  %v1327_v12 = vmul.f32 %v4963_v51, %v5218_v37 }
 0x1db   : > { %v1395_v21 = vmul.f32 %v4933_v29, %v5182_v41  ;;  %v1561_v53 = vmul.f32 %v4947_v46, %v1510_v43  ;;  %v1912_v18 = vmul.f32 %v5051_v3, %v1132_v23  ;;  %v1328_v4 = vmul.f32 %v4963_v51, %v5213_v45 }
 0x1dc   : > { %v5232_v62 = vsel %vm1501_vm0, %v1462_v22, %v1463_v17  ;;  %v1773_v5 = vmul.f32 %v5048_v39, %v1510_v43  ;;  %v1293_v26 = vsel %vm1284_vm1, %v1267_v36, %v1268_v28  ;;  %v1294_v23 = vsel %vm1284_vm1, %v4950_v47, %v1267_v36 }
 0x1dd   : > { %6990 = vst [vmem:[#allocation62_spill] sm:$0xff] %v5232_v62  ;;  %v1427_v50 = vadd.f32 %v1395_v21, %v1327_v12  ;;  %v1544_v34 = vmul.f32 %v4947_v46, %v5232_v62  ;;  %v1428_v41 = vadd.f32 %v1396_v15, %v1328_v4  ;;  %v1344_v37 = vmul.f32 %v4963_v51, %v1293_v26 }
 0x1de   : > { %v1411_v40 = vmul.f32 %v4933_v29, %v1131_v25  ;;  %v1343_v22 = vmul.f32 %v4963_v51, %v1294_v23  ;;  %v1486_v12 = vrot.slane %v1131_v25, 1  ;;  %v1631_v21 = vmul.f32 %v5084_v48, %v1294_v23 }
 0x1df   : > { %v5244_v17 = vadd.f32 %v1544_v34, %v1427_v50  ;;  %v1444_v62 = vadd.f32 %v1412_v33, %v1344_v37  ;;  %v1632_v45 = vmul.f32 %v5084_v48, %v1293_v26  ;;  %v1699_v4 = vmul.f32 %v5045_v14, %v1131_v25 }
 0x1e0   : > { %v1803_v15 = vadd.f32 %v1771_v60, %v1730_v30  ;;  %v1443_v28 = vadd.f32 %v1411_v40, %v1343_v22  ;;  %v1511_v36 = vsel %vm1501_vm0, %v1486_v12, %v1487_v35  ;;  %v1663_v8 = vadd.f32 %v1631_v21, %v1590_v31 }
 0x1e1   : > { %6991 = vst [vmem:[#allocation63_spill] sm:$0xff] %v5244_v17  ;;  %v1843_v29 = vmul.f32 %v5087_v20, %v1294_v23  ;;  %v1560_v34 = vmul.f32 %v4947_v46, %v1511_v36  ;;  %v1664_v17 = vadd.f32 %v1632_v45, %v1591_v52  ;;  %v1772_v51 = vmul.f32 %v5048_v39, %v1511_v36 }
 0x1e2   : > { %v4018_v50 = vpop.eup %4017  ;;  %v1844_v37 = vmul.f32 %v5087_v20, %v1293_v26  ;;  %v1731_v33 = vadd.f32 %v1699_v4, %v1663_v8  ;;  %v1911_v14 = vmul.f32 %v5051_v3, %v1131_v25  ;;  %v1984_v30 = vmul.f32 %v5076_v19, %v1511_v36  ;;  %v6998_v36 = vld [vmem:[#allocation37_spill] sm:$0xff] }
 0x1e3   : > { %v1875_v38 = vadd.f32 %v1843_v29, %v1802_v63  ;;  %v1985_v40 = vmul.f32 %v5076_v19, %v1510_v43  ;;  %v5259_v60 = vadd.f32 %v1560_v34, %v1443_v28  ;;  %v1732_v31 = vadd.f32 %v1700_v58, %v1664_v17 }
 0x1e4   : > { %v1876_v35 = vadd.f32 %v1844_v37, %v1803_v15  ;;  %v5261_v23 = vadd.f32 %v1772_v51, %v1731_v33  ;;  %4019 = vpow2.f32 %v5174_v49  ;;  %v5264_v52 = vadd.f32 %v1545_v13, %v1428_v41  ;;  %v6999_v33 = vld [vmem:[#allocation29_spill] sm:$0xff] }
 0x1e5   : > { %v1943_v22 = vadd.f32 %v1911_v14, %v1875_v38  ;;  %v5266_v8 = vadd.f32 %v1561_v53, %v1444_v62  ;;  %v5268_v29 = vadd.f32 %v1773_v5, %v1732_v31  ;;  %v5272_v63 = vadd.f32 %v4828_v57, %v5167_v16 }
 0x1e6   : > { %v1944_v26 = vadd.f32 %v1912_v18, %v1876_v35  ;;  %4021 = vpow2.f32 %v5186_v24  ;;  %v873_v51 = vmul.f32 %v4823_v56, %v4894_v44  ;;  %v860_v38 = vmul.f32 %v4898_v54, %v4823_v56  ;;  %v7001_v35 = vld [vmem:[#allocation47_spill] sm:$0xff] }
 0x1e7   : > { %v5274_v25 = vadd.f32 %v1984_v30, %v1943_v22  ;;  %4023 = vpow2.f32 %v5189_v9  ;;  %v876_v53 = vmul.f32 %v4900_v55, %v4823_v56  ;;  %v859_v5 = vmul.f32 %v4823_v56, %v4902_v59 }
 0x1e8   : > { %v5281_v14 = vadd.f32 %v1985_v40, %v1944_v26  ;;  %v5290_v58 = vadd.f32 %v4828_v57, %v5196_v27  ;;  %v1421_v44 = vadd.f32 %v5079_v2, %v5055_v7  ;;  %v1538_v54 = vmul.f32 %v4947_v46, %v4939_v42 }
 0x1e9   : > { %6992 = vst [vmem:[#allocation64_spill] sm:$0xff] %v5274_v25  ;;  %v1022_v16 = vadd.f32 1.0, %v4018_v50  ;;  %v3316_v49 = vmul.f32 -1.442695, %v5192_v32  ;;  %v5298_v41 = vadd.f32 %v4828_v57, %v873_v51  ;;  %v5301_v55 = vadd.f32 %v4828_v57, %v860_v38  ;;  %v7002_v38 = vld [vmem:[#allocation25_spill] sm:$0xff]  ;;  %v7020_v25 = vld [vmem:[#allocation44_spill] sm:$0xff] }
 0x1ea   : > { %6993 = vst [vmem:[#allocation65_spill] sm:$0xff] %v5281_v14  ;;  %v3332_v59 = vmul.f32 -1.442695, %v5272_v63  ;;  %v5305_v24 = vadd.f32 %v4828_v57, %v876_v53  ;;  %v5308_v9 = vadd.f32 %v4828_v57, %v859_v5  ;;  %v3315_v7 = vmul.f32 -1.442695, %v5290_v58  ;;  %v7003_v53 = vld [vmem:[#allocation38_spill] sm:$0xff] }
 0x1eb   : > { %v875_v2 = vmul.f32 %v4823_v56, %v4907_v61  ;;  %v1570_v27 = vadd.f32 %v1538_v54, %v1421_v44  ;;  %4025 = vrcp.f32 %v1022_v16  ;;  %v862_v13 = vmul.f32 %v4914_v1, %v4823_v56  ;;  %v7004_v44 = vld [vmem:[#allocation21_spill] sm:$0xff] }
 0x1ec   : > { %6994 = vst [vmem:[#allocation66_spill] sm:$0xff] %v5305_v24  ;;  %v1611_v45 = vmul.f32 %v5084_v48, %v4986_v11  ;;  %4027 = vpow2.f32 %v3316_v49  ;;  %v3331_v18 = vmul.f32 -1.442695, %v5298_v41  ;;  %v3318_v62 = vmul.f32 -1.442695, %v5301_v55  ;;  %v7006_v49 = vld [vmem:[#allocation20_spill] sm:$0xff] }
 0x1ed   : > { %4029 = vpow2.f32 %v3332_v59  ;;  %v5320_v12 = vmul.f32 -1.442695, %v5305_v24  ;;  %v5323_v61 = vmul.f32 -1.442695, %v5308_v9  ;;  %v5326_v1 = vadd.f32 %v4828_v57, %v875_v2 }
 0x1ee   : > { %v4020_v43 = vpop.eup %4019  ;;  %4031 = vpow2.f32 %v3315_v7  ;;  %v878_v11 = vmul.f32 %v4916_v6, %v4823_v56  ;;  %v6996_v4 = vrot.slane %v5070_v10, 7  ;;  %v1460_v50 = vrot.slane %v6998_v36, 1  ;;  %v7000_v6 = vld [vmem:[#allocation27_spill] sm:$0xff] }
 0x1ef   : > { %v1038_v17 = vadd.f32 1.0, %v4020_v43  ;;  %6995 = vst [vmem:[#allocation67_spill] sm:$0xff] %v5326_v1  ;;  %v5339_v37 = vadd.f32 %v4828_v57, %v862_v13  ;;  %v1612_v30 = vmul.f32 %v5084_v48, %v6999_v33  ;;  %v1643_v40 = vadd.f32 %v1611_v45, %v1570_v27  ;;  %v7008_v13 = vld [vmem:[#allocation28_spill] sm:$0xff] }
 0x1f0   : > { %v4022_v21 = vpop.eup %4021  ;;  %v5335_v15 = vsel %vm1284_vm1, %v4950_v47, %v6996_v4  ;;  %v1326_v22 = vmul.f32 %v7000_v6, %v7001_v35  ;;  %v1459_v26 = vrot.slane %v5070_v10, 1  ;;  %v1679_v5 = vmul.f32 %v7003_v53, %v7002_v38  ;;  %v7012_v33 = vld [vmem:[#allocation48_spill] sm:$0xff] }
 0x1f1   : > { %6997 = vst [vmem:[#allocation68_spill] sm:$0xff] %v5335_v15  ;;  %v4024_v28 = vpop.eup %4023  ;;  %4033 = vrcp.f32 %v1038_v17  ;;  %v1021_v34 = vadd.f32 1.0, %v4022_v21  ;;  %v1325_v31 = vmul.f32 %v7000_v6, %v5335_v15  ;;  %v1393_v54 = vmul.f32 %v7004_v44, %v5070_v10 }
 0x1f2   : > { %4035 = vpow2.f32 %v3331_v18  ;;  %v1037_v51 = vadd.f32 1.0, %v4024_v28  ;;  %v5353_v16 = vadd.f32 %v4828_v57, %v878_v11  ;;  %v1680_v59 = vmul.f32 %v7003_v53, %v7006_v49 }
 0x1f3   : > { %4037 = vrcp.f32 %v1021_v34  ;;  %v1394_v7 = vmul.f32 %v7004_v44, %v6998_v36  ;;  %v5362_v2 = vsel %vm1501_vm0, %v1460_v50, %v4939_v42  ;;  %v5366_v43 = vmul.f32 %v5048_v39, %v7008_v13  ;;  %v7019_v13 = vld [vmem:[#allocation58_spill] sm:$0xff] }
 0x1f4   : > { %4039 = vpow2.f32 %v3318_v62  ;;  %7005 = vst [vmem:[#allocation29_spill] sm:$0xff] %v5353_v16  ;;  %7007 = vst [vmem:[#allocation27_spill] sm:$0xff] %v5362_v2  ;;  %v1644_v45 = vadd.f32 %v1612_v30, %v1570_v27  ;;  %v5368_v18 = vadd.f32 %v1679_v5, %v1643_v40  ;;  %v1425_v62 = vadd.f32 %v1393_v54, %v1325_v31  ;;  %v7014_v27 = vld [vmem:[#allocation60_spill] sm:$0xff]  ;;  %v7018_v54 = vld [vmem:[#allocation61_spill] sm:$0xff] }
 0x1f5   : > { %4041 = vrcp.f32 %v1037_v51  ;;  %7009 = vst [vmem:[#allocation25_spill] sm:$0xff] %v5366_v43  ;;  %v4026_v17 = vpop.eup %4025  ;;  %v1682_v21 = vmul.f32 %v7003_v53, %v6998_v36  ;;  %v1681_v11 = vmul.f32 %v7003_v53, %v5070_v10  ;;  %v1426_v4 = vadd.f32 %v1394_v7, %v1326_v22  ;;  %v7015_v22 = vld [vmem:[#allocation57_spill] sm:$0xff] }
 0x1f6   : > { %7010 = vst [vmem:[#allocation38_spill] sm:$0xff] %v5368_v18  ;;  %v5376_v28 = vsel %vm1501_vm0, %v1459_v26, %v1460_v50  ;;  %v4028_v34 = vpop.eup %4027  ;;  %v5380_v51 = vmul.f32 %v7003_v53, %v7012_v33  ;;  %v1616_v30 = vmul.f32 %v5084_v48, %v7014_v27  ;;  %v1543_v31 = vmul.f32 %v4947_v46, %v5362_v2 }
 0x1f7   : > { %7011 = vst [vmem:[#allocation21_spill] sm:$0xff] %v5376_v28  ;;  %v1542_v40 = vmul.f32 %v4947_v46, %v5376_v28  ;;  %v4030_v38 = vpop.eup %4029  ;;  %v5390_v5 = vmul.f32 %v5048_v39, %v7015_v22  ;;  %v5394_v50 = vmul.f32 %v5051_v3, %v7012_v33  ;;  %v1613_v26 = vmul.f32 %v5084_v48, %v5335_v15 }
 0x1f8   : > { %7013 = vst [vmem:[#allocation20_spill] sm:$0xff] %v5380_v51  ;;  %v1615_v49 = vmul.f32 %v5084_v48, %v7018_v54  ;;  %v4032_v7 = vpop.eup %4031  ;;  %v1683_v14 = vmul.f32 %v7003_v53, %v7019_v13  ;;  %v5403_v36 = vmul.f32 %v4026_v17, %v7020_v25  ;;  %v1575_v22 = vadd.f32 %v1543_v31, %v1426_v4  ;;  %v7024_v51 = vld [vmem:[#allocation24_spill] sm:$0xff] }
 0x1f9   : > { %7016 = vst [vmem:[#allocation28_spill] sm:$0xff] %v5390_v5  ;;  %7017 = vst [vmem:[#allocation48_spill] sm:$0xff] %v5394_v50  ;;  %v1574_v35 = vadd.f32 %v1542_v40, %v1425_v62  ;;  %v1024_v43 = vadd.f32 1.0, %v4028_v34  ;;  %v5406_v33 = vmul.f32 -1.442695, %v5326_v1  ;;  %v7022_v50 = vld [vmem:[#allocation36_spill] sm:$0xff]  ;;  %v5409_v15 = vadd.f32 %v1680_v59, %v1644_v45 }
 0x1fa   : > { %7021 = vst [vmem:[#allocation60_spill] sm:$0xff] %v5403_v36  ;;  %v1645_v18 = vadd.f32 %v1613_v26, %v7022_v50  ;;  %v1040_v54 = vadd.f32 1.0, %v4030_v38  ;;  %v5413_v28 = vmul.f32 %v4823_v56, %v7024_v51  ;;  %v5415_v25 = vadd.f32 %v1616_v30, %v1575_v22  ;;  %v7027_v34 = vld [vmem:[#allocation53_spill] sm:$0xff] }
 0x1fb   : > { %v4034_v5 = vpop.eup %4033  ;;  %7023 = vst [vmem:[#allocation44_spill] sm:$0xff] %v5409_v15  ;;  %v1647_v13 = vadd.f32 %v1615_v49, %v1574_v35  ;;  %v1023_v17 = vadd.f32 1.0, %v4032_v7  ;;  %4043 = vpow2.f32 %v5320_v12  ;;  %v5421_v40 = vadd.f32 %v1682_v21, %v7027_v34  ;;  %v7029_v51 = vld [vmem:[#allocation45_spill] sm:$0xff]  ;;  %v7032_v21 = vld [vmem:[#allocation56_spill] sm:$0xff] }
 0x1fc   : > { %v4036_v2 = vpop.eup %4035  ;;  %7025 = vst [vmem:[#allocation36_spill] sm:$0xff] %v5415_v25  ;;  %v5418_v4 = vadd.f32 %v1681_v11, %v1645_v18  ;;  %v1247_v45 = vrot.slane %v5403_v36, 7  ;;  %v1398_v31 = vmul.f32 %v7004_v44, %v5403_v36  ;;  %v1134_v38 = vmul.f32 %v4034_v5, %v7029_v51  ;;  %v7030_v18 = vld [vmem:[#allocation46_spill] sm:$0xff] }
 0x1fd   : > { %v4038_v62 = vpop.eup %4037  ;;  %7028 = vst [vmem:[#allocation53_spill] sm:$0xff] %v5421_v40  ;;  %4045 = vpow2.f32 %v5323_v61  ;;  %v6897_v30 = vrot.slane %v5403_v36, 1  ;;  %v1686_v12 = vmul.f32 %v7003_v53, %v5403_v36  ;;  %v5435_v50 = vadd.f32 1.0, %v4036_v2 }
 0x1fe   : > { %7026 = vst [vmem:[#allocation24_spill] sm:$0xff] %v5418_v4  ;;  %v4040_v59 = vpop.eup %4039  ;;  %v5432_v11 = vmul.f32 %v4038_v62, %v7030_v18  ;;  %4047 = vrcp.f32 %v1024_v43  ;;  %v5437_v26 = vadd.f32 %v1683_v14, %v1647_v13  ;;  %v1490_v5 = vrot.slane %v1134_v38, 1 }
 0x1ff   : > { %v4042_v35 = vpop.eup %4041  ;;  %4049 = vrcp.f32 %v1040_v54  ;;  %v5440_v49 = vadd.f32 1.0, %v4040_v59  ;;  %v1271_v7 = vrot.slane %v1134_v38, 7  ;;  %v1414_v34 = vmul.f32 %v7004_v44, %v1134_v38 }
 0x200   : > { %7031 = vst [vmem:[#allocation45_spill] sm:$0xff] %v5432_v11  ;;  %v1133_v22 = vmul.f32 %v4042_v35, %v7032_v21  ;;  %7033 = vst [vmem:[#allocation46_spill] sm:$0xff] %v5437_v26  ;;  %v1246_v61 = vrot.slane %v5432_v11, 7  ;;  %4051 = vrcp.f32 %v1023_v17  ;;  %v1702_v62 = vmul.f32 %v7003_v53, %v1134_v38 }
 0x201   : > { %v1465_v43 = vrot.slane %v5432_v11, 1  ;;  %v1397_v2 = vmul.f32 %v7004_v44, %v5432_v11  ;;  %v5471_v35 = vsel %vm1501_vm0, %v1490_v5, %v4939_v42  ;;  %v1914_v18 = vmul.f32 %v5051_v3, %v1134_v38 }
 0x202   : > { %v5447_v54 = vsel %vm1284_vm1, %v1246_v61, %v1247_v45  ;;  %v5452_v14 = vsel %vm1284_vm1, %v4950_v47, %v1246_v61  ;;  %v1270_v13 = vrot.slane %v1133_v22, 7  ;;  %v1685_v61 = vmul.f32 %v7003_v53, %v5432_v11 }
 0x203   : > { %7034 = vst [vmem:[#allocation56_spill] sm:$0xff] %v5447_v54  ;;  %7035 = vst [vmem:[#allocation69_spill] sm:$0xff] %v5452_v14  ;;  %v1329_v17 = vmul.f32 %v7000_v6, %v5452_v14  ;;  %v1330_v59 = vmul.f32 %v7000_v6, %v5447_v54  ;;  %v5464_v45 = vsel %vm1501_vm0, %v1465_v43, %v6897_v30  ;;  %v7037_v30 = vld [vmem:[#allocation63_spill] sm:$0xff]  ;;  %4053 = vrcp.f32 %v5435_v50 }
 0x204   : > { %7036 = vst [vmem:[#allocation70_spill] sm:$0xff] %v5464_v45  ;;  %v1617_v51 = vmul.f32 %v5084_v48, %v5452_v14  ;;  %v1618_v21 = vmul.f32 %v5084_v48, %v5447_v54  ;;  %v1546_v43 = vmul.f32 %v4947_v46, %v5464_v45  ;;  %v1758_v38 = vmul.f32 %v5048_v39, %v5464_v45 }
 0x205   : > { %v1429_v1 = vadd.f32 %v1397_v2, %v1329_v17  ;;  %v5478_v26 = vadd.f32 %v1398_v31, %v1330_v59  ;;  %v4044_v4 = vpop.eup %4043  ;;  %v1291_v25 = vsel %vm1284_vm1, %v1270_v13, %v1271_v7  ;;  %v1413_v54 = vmul.f32 %v7004_v44, %v1133_v22 }
 0x206   : > { %v1649_v40 = vadd.f32 %v1617_v51, %v7037_v30  ;;  %v1650_v15 = vadd.f32 %v1618_v21, %v5264_v52  ;;  %v1292_v17 = vsel %vm1284_vm1, %v4950_v47, %v1270_v13  ;;  %v1346_v30 = vmul.f32 %v7000_v6, %v1291_v25 }
 0x207   : > { %v4046_v11 = vpop.eup %4045  ;;  %v5489_v2 = vadd.f32 %v1546_v43, %v1429_v1  ;;  %v1345_v51 = vmul.f32 %v7000_v6, %v1292_v17  ;;  %v1489_v21 = vrot.slane %v1133_v22, 1  ;;  %v1633_v45 = vmul.f32 %v5084_v48, %v1292_v17 }
 0x208   : > { %v1717_v31 = vadd.f32 %v1685_v61, %v1649_v40  ;;  %v4048_v59 = vpop.eup %4047  ;;  %v1718_v52 = vadd.f32 %v1686_v12, %v1650_v15  ;;  %v5499_v24 = vadd.f32 %v1414_v34, %v1346_v30  ;;  %v1634_v1 = vmul.f32 %v5084_v48, %v1291_v25 }
 0x209   : > { %v4050_v7 = vpop.eup %4049  ;;  %v1701_v40 = vmul.f32 %v7003_v53, %v1133_v22  ;;  %v1445_v13 = vadd.f32 %v1413_v54, %v1345_v51  ;;  %v1509_v43 = vsel %vm1501_vm0, %v1489_v21, %v1490_v5  ;;  %v1665_v15 = vadd.f32 %v1633_v45, %v5259_v60 }
 0x20a   : > { %v5497_v14 = vadd.f32 %v1758_v38, %v1717_v31  ;;  %v4052_v61 = vpop.eup %4051  ;;  %v1845_v12 = vmul.f32 %v5087_v20, %v1292_v17  ;;  %v1562_v10 = vmul.f32 %v4947_v46, %v1509_v43  ;;  %v1666_v38 = vadd.f32 %v1634_v1, %v5266_v8 }
 0x20b   : > { %v1774_v34 = vmul.f32 %v5048_v39, %v1509_v43  ;;  %v1846_v31 = vmul.f32 %v5087_v20, %v1291_v25  ;;  %v1733_v30 = vadd.f32 %v1701_v40, %v1665_v15  ;;  %v1913_v54 = vmul.f32 %v5051_v3, %v1133_v22  ;;  %v7038_v40 = vld [vmem:[#allocation30_spill] sm:$0xff] }
 0x20c   : > { %v1877_v16 = vadd.f32 %v1845_v12, %v5261_v23  ;;  %v1986_v51 = vmul.f32 %v5076_v19, %v1509_v43  ;;  %v1987_v60 = vmul.f32 %v5076_v19, %v5471_v35  ;;  %v5516_v5 = vadd.f32 %v1562_v10, %v1445_v13 }
 0x20d   : > { %v5518_v45 = vadd.f32 %v1702_v62, %v1666_v38  ;;  %v1878_v8 = vadd.f32 %v1846_v31, %v5268_v29  ;;  %v5521_v17 = vadd.f32 %v1774_v34, %v1733_v30  ;;  %v1120_v25 = vmul.f32 %v4048_v59, %v5192_v32  ;;  %v7042_v32 = vld [vmem:[#allocation40_spill] sm:$0xff] }
 0x20e   : > { %v1945_v21 = vadd.f32 %v1913_v54, %v1877_v16  ;;  %v1042_v1 = vadd.f32 1.0, %v4044_v4  ;;  %v1025_v22 = vadd.f32 1.0, %v4046_v11  ;;  %v5527_v43 = vmul.f32 %v4823_v56, %v7038_v40 }
 0x20f   : > { %v1946_v23 = vadd.f32 %v1914_v18, %v1878_v8  ;;  %v7039_v10 = vrot.slane %v5403_v36, 1  ;;  %4055 = vpow2.f32 %v5406_v33  ;;  %v5541_v16 = vmul.f32 %v7042_v32, %v4823_v56  ;;  %v7045_v33 = vld [vmem:[#allocation52_spill] sm:$0xff] }
 0x210   : > { %v5536_v62 = vadd.f32 %v1986_v51, %v1945_v21  ;;  %v1119_v11 = vmul.f32 %v4052_v61, %v5290_v58  ;;  %4057 = vrcp.f32 %v5440_v49  ;;  %v5549_v50 = vadd.f32 %v4828_v57, %v5413_v28 }
 0x211   : > { %v5534_v29 = vsel %vm1501_vm0, %v7039_v10, %v4939_v42  ;;  %v5543_v4 = vadd.f32 %v1987_v60, %v1946_v23  ;;  %v1469_v18 = vrot.slane %v1120_v25, 1  ;;  %v5552_v59 = vmul.f32 %v4050_v7, %v5272_v63 }
 0x212   : > { %7040 = vst [vmem:[#allocation63_spill] sm:$0xff] %v5534_v29  ;;  %7041 = vst [vmem:[#allocation30_spill] sm:$0xff] %v5536_v62  ;;  %4059 = vrcp.f32 %v1042_v1  ;;  %v5556_v13 = vmul.f32 %v7045_v33, %v4823_v56  ;;  %v1547_v15 = vmul.f32 %v4947_v46, %v5534_v29  ;;  %v1759_v58 = vmul.f32 %v5048_v39, %v5534_v29  ;;  %v4054_v1 = vpop.eup %4053 }
 0x213   : > { %7043 = vst [vmem:[#allocation40_spill] sm:$0xff] %v5543_v4  ;;  %7044 = vst [vmem:[#allocation71_spill] sm:$0xff] %v5549_v50  ;;  %v1250_v49 = vrot.slane %v1120_v25, 7  ;;  %4061 = vrcp.f32 %v1025_v22  ;;  %v1563_v57 = vmul.f32 %v4947_v46, %v5471_v35  ;;  %v1775_v63 = vmul.f32 %v5048_v39, %v5471_v35 }
 0x214   : > { %v1400_v28 = vmul.f32 %v7004_v44, %v1120_v25  ;;  %v1493_v7 = vrot.slane %v5552_v59, 1  ;;  %v1688_v56 = vmul.f32 %v7003_v53, %v1120_v25  ;;  %v1900_v61 = vmul.f32 %v5051_v3, %v1120_v25 }
 0x215   : > { %v1249_v12 = vrot.slane %v1119_v11, 7  ;;  %v1468_v38 = vrot.slane %v1119_v11, 1  ;;  %v5573_v34 = vsel %vm1501_vm0, %v1469_v18, %v4939_v42  ;;  %v1274_v31 = vrot.slane %v5552_v59, 7 }
 0x216   : > { %7046 = vst [vmem:[#allocation52_spill] sm:$0xff] %v5573_v34  ;;  %v1579_v30 = vadd.f32 %v1547_v15, %v5478_v26  ;;  %v1791_v35 = vadd.f32 %v1759_v58, %v1718_v52  ;;  %v1416_v54 = vmul.f32 %v7004_v44, %v5552_v59  ;;  %v5589_v21 = vsel %vm1501_vm0, %v1493_v7, %v4939_v42 }
 0x217   : > { %v1305_v51 = vsel %vm1284_vm1, %v1249_v12, %v1250_v49  ;;  %v1306_v60 = vsel %vm1284_vm1, %v4950_v47, %v1249_v12  ;;  %v1523_v8 = vsel %vm1501_vm0, %v1468_v38, %v1469_v18  ;;  %v1399_v25 = vmul.f32 %v7004_v44, %v1119_v11 }
 0x218   : > { %v1331_v26 = vmul.f32 %v7000_v6, %v1306_v60  ;;  %v1332_v52 = vmul.f32 %v7000_v6, %v1305_v51  ;;  %v1548_v23 = vmul.f32 %v4947_v46, %v1523_v8  ;;  %v1619_v22 = vmul.f32 %v5084_v48, %v1306_v60 }
 0x219   : > { %v1620_v40 = vmul.f32 %v5084_v48, %v1305_v51  ;;  %v1687_v10 = vmul.f32 %v7003_v53, %v1119_v11  ;;  %v5598_v32 = vpop.eup %4055  ;;  %v1831_v15 = vmul.f32 %v5087_v20, %v1306_v60  ;;  %v1832_v58 = vmul.f32 %v5087_v20, %v1305_v51 }
 0x21a   : > { %v1431_v18 = vadd.f32 %v1399_v25, %v1331_v26  ;;  %v5600_v33 = vadd.f32 %v1400_v28, %v1332_v52  ;;  %v4058_v49 = vpop.eup %4057  ;;  %v1651_v12 = vadd.f32 %v1619_v22, %v5489_v2  ;;  %v1760_v4 = vmul.f32 %v5048_v39, %v1523_v8 }
 0x21b   : > { %v1652_v38 = vadd.f32 %v1620_v40, %v1579_v30  ;;  %v1899_v62 = vmul.f32 %v5051_v3, %v1119_v11  ;;  %v1863_v26 = vadd.f32 %v1831_v15, %v5497_v14  ;;  %v1864_v28 = vadd.f32 %v1832_v58, %v1791_v35 }
 0x21c   : > { %v5607_v29 = vpop.eup %4059  ;;  %v5609_v36 = vadd.f32 %v1548_v23, %v1431_v18  ;;  %v1135_v52 = vmul.f32 %v4054_v1, %v5298_v41  ;;  %v1719_v25 = vadd.f32 %v1687_v10, %v1651_v12  ;;  %v1595_v2 = vadd.f32 %v1563_v57, %v5499_v24 }
 0x21d   : > { %v4062_v60 = vpop.eup %4061  ;;  %v5613_v51 = vadd.f32 %v1688_v56, %v1652_v38  ;;  %v1807_v30 = vadd.f32 %v1775_v63, %v5518_v45  ;;  %v1931_v22 = vadd.f32 %v1899_v62, %v1863_v26  ;;  %v5617_v40 = vadd.f32 %v1900_v61, %v1864_v28 }
 0x21e   : > { %v1972_v11 = vmul.f32 %v5076_v19, %v1523_v8  ;;  %v1273_v23 = vrot.slane %v1135_v52, 7  ;;  %v1704_v14 = vmul.f32 %v7003_v53, %v5552_v59  ;;  %v5622_v35 = vadd.f32 %v1760_v4, %v1719_v25 }
 0x21f   : > { %7047 = vst [vmem:[#allocation72_spill] sm:$0xff] %v5617_v40  ;;  %v1415_v41 = vmul.f32 %v7004_v44, %v1135_v52  ;;  %v1492_v1 = vrot.slane %v1135_v52, 1  ;;  %v1703_v62 = vmul.f32 %v7003_v53, %v1135_v52  ;;  %v1916_v8 = vmul.f32 %v5051_v3, %v5552_v59 }
 0x220   : > { %v5625_v56 = vadd.f32 %v1972_v11, %v1931_v22  ;;  %v1289_v24 = vsel %vm1284_vm1, %v1273_v23, %v1274_v31  ;;  %v1290_v45 = vsel %vm1284_vm1, %v4950_v47, %v1273_v23  ;;  %v1915_v59 = vmul.f32 %v5051_v3, %v1135_v52  ;;  %v5665_v52 = vld [vmem:[%s6820_s3] ss:$0 sm:$0xff] }
 0x221   : > { %v1347_v57 = vmul.f32 %v7000_v6, %v1290_v45  ;;  %v1348_v63 = vmul.f32 %v7000_v6, %v1289_v24  ;;  %v1507_v4 = vsel %vm1501_vm0, %v1492_v1, %v1493_v7  ;;  %v1635_v61 = vmul.f32 %v5084_v48, %v1290_v45 }
 0x222   : > { %7048 = vst [vmem:[#allocation73_spill] sm:$0xff] %v5625_v56  ;;  %v1564_v31 = vmul.f32 %v4947_v46, %v1507_v4  ;;  %v1636_v10 = vmul.f32 %v5084_v48, %v1289_v24  ;;  %v1847_v18 = vmul.f32 %v5087_v20, %v1290_v45  ;;  %v1776_v38 = vmul.f32 %v5048_v39, %v1507_v4  ;;  %v5684_v45 = vld [vmem:[%s6819_s2] ss:$0 sm:$0xff]  ;;  %v7060_v56 = vld [vmem:[#allocation66_spill] sm:$0xff] }
 0x223   : > { %v1447_v15 = vadd.f32 %v1415_v41, %v1347_v57  ;;  %v5643_v58 = vadd.f32 %v1416_v54, %v1348_v63  ;;  %v1667_v12 = vadd.f32 %v1635_v61, %v5516_v5  ;;  %v1848_v7 = vmul.f32 %v5087_v20, %v1289_v24 }
 0x224   : > { %v1668_v26 = vadd.f32 %v1636_v10, %v1595_v2  ;;  %v1879_v28 = vadd.f32 %v1847_v18, %v5521_v17  ;;  %v1989_v25 = vmul.f32 %v5076_v19, %v5589_v21  ;;  %v1988_v54 = vmul.f32 %v5076_v19, %v1507_v4  ;;  %v7056_v18 = vld [vmem:[#allocation62_spill] sm:$0xff] }
 0x225   : > { %v5652_v22 = vadd.f32 %v1564_v31, %v1447_v15  ;;  %v1735_v11 = vadd.f32 %v1703_v62, %v1667_v12  ;;  %v1880_v5 = vadd.f32 %v1848_v7, %v1807_v30  ;;  %v1122_v2 = vmul.f32 %v4058_v49, %v5301_v55  ;;  %v7053_v62 = vld [vmem:[#allocation54_spill] sm:$0xff]  ;;  %v7059_v7 = vld [vmem:[#allocation41_spill] sm:$0xff] }
 0x226   : > { %v5655_v23 = vadd.f32 %v1704_v14, %v1668_v26  ;;  %v1947_v41 = vadd.f32 %v1915_v59, %v1879_v28  ;;  %v1549_v1 = vmul.f32 %v4947_v46, %v5573_v34  ;;  %v5669_v24 = vadd.f32 %v5665_v52, %v5527_v43 }
 0x227   : > { %v5660_v17 = vadd.f32 %v1776_v38, %v1735_v11  ;;  %v5673_v30 = vadd.f32 %v5665_v52, %v5541_v16  ;;  %v1948_v14 = vadd.f32 %v1916_v8, %v1880_v5  ;;  %v5679_v49 = vadd.f32 %v5665_v52, %v5556_v13  ;;  %v7055_v8 = vld [vmem:[#allocation29_spill] sm:$0xff]  ;;  %v7058_v38 = vld [vmem:[#allocation31_spill] sm:$0xff] }
 0x228   : > { %7049 = vst [vmem:[#allocation74_spill] sm:$0xff] %v5669_v24  ;;  %v5675_v55 = vadd.f32 %v1988_v54, %v1947_v41  ;;  %v863_v43 = vmul.f32 %v5684_v45, %v7053_v62  ;;  %v5690_v57 = vmul.f32 %v5087_v20, %v7014_v27  ;;  %v1121_v16 = vmul.f32 %v4062_v60, %v5308_v9 }
 0x229   : > { %7050 = vst [vmem:[#allocation75_spill] sm:$0xff] %v5673_v30  ;;  %7052 = vst [vmem:[#allocation77_spill] sm:$0xff] %v5679_v49  ;;  %v1581_v63 = vadd.f32 %v1549_v1, %v5600_v33  ;;  %v3320_v4 = vmul.f32 -1.442695, %v5339_v37  ;;  %v5695_v13 = vadd.f32 %v1989_v25, %v1948_v14  ;;  %v1472_v61 = vrot.slane %v1122_v2, 1 }
 0x22a   : > { %7051 = vst [vmem:[#allocation76_spill] sm:$0xff] %v5675_v55  ;;  %v3336_v31 = vmul.f32 -1.442695, %v7055_v8  ;;  %v5699_v10 = vmul.f32 -1.442695, %v5549_v50  ;;  %v5703_v15 = vmul.f32 %v5048_v39, %v7056_v18  ;;  %v1253_v27 = vrot.slane %v1122_v2, 7 }
 0x22b   : > { %7054 = vst [vmem:[#allocation54_spill] sm:$0xff] %v5695_v13  ;;  %v5706_v12 = vmul.f32 -1.442695, %v5669_v24  ;;  %v5709_v9 = vmul.f32 -1.442695, %v5673_v30  ;;  %v5715_v60 = vadd.f32 %v5665_v52, %v863_v43  ;;  %v5719_v26 = vmul.f32 %v5048_v39, %v7058_v38 }
 0x22c   : > { %v5712_v33 = vmul.f32 -1.442695, %v5679_v49  ;;  %v5723_v28 = vmul.f32 %v5051_v3, %v7059_v7  ;;  %v1252_v59 = vrot.slane %v1121_v16, 7  ;;  %v1471_v25 = vrot.slane %v1121_v16, 1 }
 0x22d   : > { %7057 = vst [vmem:[#allocation78_spill] sm:$0xff] %v5715_v60  ;;  %v1041_v11 = vadd.f32 1.0, %v5598_v32  ;;  %4063 = vpow2.f32 %v3320_v4  ;;  %v1761_v54 = vmul.f32 %v5048_v39, %v5573_v34  ;;  %v1565_v5 = vmul.f32 %v4947_v46, %v5589_v21 }
 0x22e   : > { %v1777_v41 = vmul.f32 %v5048_v39, %v5589_v21  ;;  %v1520_v1 = vsel %vm1501_vm0, %v1472_v61, %v4939_v42  ;;  %v1402_v14 = vmul.f32 %v7004_v44, %v1122_v2  ;;  %v1303_v62 = vsel %vm1284_vm1, %v1252_v59, %v1253_v27 }
 0x22f   : > { %v1304_v32 = vsel %vm1284_vm1, %v4950_v47, %v1252_v59  ;;  %v1521_v43 = vsel %vm1501_vm0, %v1471_v25, %v1472_v61  ;;  %v1690_v4 = vmul.f32 %v7003_v53, %v1122_v2  ;;  %v1902_v21 = vmul.f32 %v5051_v3, %v1122_v2 }
 0x230   : > { %v1333_v38 = vmul.f32 %v7000_v6, %v1304_v32  ;;  %v1401_v7 = vmul.f32 %v7004_v44, %v1121_v16  ;;  %v1551_v13 = vmul.f32 %v4947_v46, %v1520_v1  ;;  %v5750_v27 = vmul.f32 %v5607_v29, %v7060_v56 }
 0x231   : > { %v1334_v55 = vmul.f32 %v7000_v6, %v1303_v62  ;;  %v1621_v59 = vmul.f32 %v5084_v48, %v1304_v32  ;;  %v1763_v61 = vmul.f32 %v5048_v39, %v1520_v1  ;;  %v1550_v49 = vmul.f32 %v4947_v46, %v1521_v43 }
 0x232   : > { %v1433_v25 = vadd.f32 %v1401_v7, %v1333_v38  ;;  %v1622_v2 = vmul.f32 %v5084_v48, %v1303_v62  ;;  %v1689_v50 = vmul.f32 %v7003_v53, %v1121_v16  ;;  %v1793_v8 = vadd.f32 %v1761_v54, %v5613_v51 }
 0x233   : > { %v1434_v30 = vadd.f32 %v1402_v14, %v1334_v55  ;;  %v1653_v24 = vadd.f32 %v1621_v59, %v5609_v36  ;;  %v1833_v40 = vmul.f32 %v5087_v20, %v1304_v32  ;;  %v1834_v34 = vmul.f32 %v5087_v20, %v1303_v62  ;;  %v7069_v32 = vld [vmem:[#allocation20_spill] sm:$0xff] }
 0x234   : > { %v5760_v29 = vadd.f32 %v1550_v49, %v1433_v25  ;;  %v1654_v56 = vadd.f32 %v1622_v2, %v1581_v63  ;;  %v1762_v38 = vmul.f32 %v5048_v39, %v1521_v43  ;;  %v1901_v7 = vmul.f32 %v5051_v3, %v1121_v16  ;;  %v7071_v25 = vld [vmem:[#allocation38_spill] sm:$0xff] }
 0x235   : > { %v1721_v18 = vadd.f32 %v1689_v50, %v1653_v24  ;;  %4065 = vrcp.f32 %v1041_v11  ;;  %v1865_v36 = vadd.f32 %v1833_v40, %v5622_v35  ;;  %v1866_v14 = vadd.f32 %v1834_v34, %v1793_v8  ;;  %v7063_v35 = vld [vmem:[#allocation21_spill] sm:$0xff] }
 0x236   : > { %v1722_v55 = vadd.f32 %v1690_v4, %v1654_v56  ;;  %v5768_v59 = vadd.f32 %v1565_v5, %v5643_v58  ;;  %v1975_v49 = vmul.f32 %v5076_v19, %v1520_v1  ;;  %v1496_v63 = vrot.slane %v5750_v27, 1  ;;  %v7064_v8 = vld [vmem:[#allocation69_spill] sm:$0xff]  ;;  %v7070_v4 = vld [vmem:[#allocation27_spill] sm:$0xff]  ;;  %v7072_v56 = vld [vmem:[#allocation44_spill] sm:$0xff] }
 0x237   : > { %v4064_v51 = vpop.eup %4063  ;;  %v5772_v54 = vadd.f32 %v1762_v38, %v1721_v18  ;;  %v5775_v50 = vadd.f32 %v1777_v41, %v5655_v23  ;;  %v1933_v24 = vadd.f32 %v1901_v7, %v1865_v36  ;;  %v1934_v16 = vadd.f32 %v1902_v21, %v1866_v14  ;;  %v7065_v23 = vld [vmem:[#allocation56_spill] sm:$0xff]  ;;  %v7073_v38 = vld [vmem:[#allocation25_spill] sm:$0xff] }
 0x238   : > { %v1974_v11 = vmul.f32 %v5076_v19, %v1521_v43  ;;  %v5778_v62 = vadd.f32 %v1551_v13, %v1434_v30  ;;  %4067 = vpow2.f32 %v3336_v31  ;;  %v5780_v34 = vadd.f32 %v1763_v61, %v1722_v55  ;;  %v7068_v31 = vld [vmem:[#allocation36_spill] sm:$0xff] }
 0x239   : > { %7061 = vst [vmem:[#allocation31_spill] sm:$0xff] %v5772_v54  ;;  %v5783_v40 = vmul.f32 -1.442695, %v5715_v60  ;;  %v1754_v58 = vmul.f32 %v5048_v39, %v7063_v35  ;;  %v1829_v18 = vmul.f32 %v5087_v20, %v7064_v8  ;;  %v1830_v5 = vmul.f32 %v5087_v20, %v7065_v23  ;;  %v7074_v14 = vld [vmem:[#allocation24_spill] sm:$0xff] }
 0x23a   : > { %7062 = vst [vmem:[#allocation41_spill] sm:$0xff] %v5780_v34  ;;  %v5791_v41 = vadd.f32 %v1974_v11, %v1933_v24  ;;  %v5793_v1 = vadd.f32 %v1975_v49, %v1934_v16  ;;  %v1277_v30 = vrot.slane %v5750_v27, 7  ;;  %v1504_v13 = vsel %vm1501_vm0, %v1496_v63, %v4939_v42  ;;  %v7075_v24 = vld [vmem:[#allocation53_spill] sm:$0xff] }
 0x23b   : > { %v1716_v43 = vadd.f32 %v7069_v32, %v7068_v31  ;;  %v1755_v21 = vmul.f32 %v5048_v39, %v7070_v4  ;;  %v1418_v61 = vmul.f32 %v7004_v44, %v5750_v27  ;;  %4069 = vpow2.f32 %v5699_v10  ;;  %v7076_v10 = vld [vmem:[#allocation46_spill] sm:$0xff]  ;;  %v7078_v31 = vld [vmem:[#allocation68_spill] sm:$0xff] }
 0x23c   : > { %7066 = vst [vmem:[#allocation66_spill] sm:$0xff] %v5791_v41  ;;  %7067 = vst [vmem:[#allocation21_spill] sm:$0xff] %v5793_v1  ;;  %v1784_v2 = vadd.f32 %v5719_v26, %v7071_v25  ;;  %v1785_v7 = vadd.f32 %v7073_v38, %v7072_v56  ;;  %v1706_v55 = vmul.f32 %v7003_v53, %v5750_v27  ;;  %v7077_v26 = vld [vmem:[#allocation28_spill] sm:$0xff]  ;;  %v1028_v56 = vadd.f32 1.0, %v4064_v51  ;;  %v7079_v38 = vld [vmem:[#allocation47_spill] sm:$0xff] }
 0x23d   : > { %v1918_v36 = vmul.f32 %v5051_v3, %v5750_v27  ;;  %v1786_v49 = vadd.f32 %v1754_v58, %v7074_v14  ;;  %v1787_v16 = vadd.f32 %v1755_v21, %v7075_v24  ;;  %v5817_v11 = vmul.f32 %v4947_v46, %v1504_v13  ;;  %v7080_v1 = vld [vmem:[#allocation61_spill] sm:$0xff]  ;;  %v7081_v14 = vld [vmem:[#allocation67_spill] sm:$0xff] }
 0x23e   : > { %v1788_v8 = vadd.f32 %v5703_v15, %v7076_v10  ;;  %v1789_v23 = vadd.f32 %v7077_v26, %v1716_v43  ;;  %v1825_v32 = vmul.f32 %v5087_v20, %v7078_v31  ;;  %v1826_v27 = vmul.f32 %v5087_v20, %v7079_v38  ;;  %v7082_v31 = vld [vmem:[#allocation48_spill] sm:$0xff] }
 0x23f   : > { %v4066_v25 = vpop.eup %4065  ;;  %v1827_v58 = vmul.f32 %v5087_v20, %v7080_v1  ;;  %v1860_v21 = vadd.f32 %v5690_v57, %v1787_v16  ;;  %4071 = vpow2.f32 %v5706_v12  ;;  %v1779_v1 = vmul.f32 %v5048_v39, %v1504_v13 }
 0x240   : > { %v1137_v24 = vmul.f32 %v4066_v25, %v7081_v14  ;;  %v1857_v15 = vadd.f32 %v1825_v32, %v1784_v2  ;;  %v5831_v10 = vadd.f32 %v1829_v18, %v1788_v8  ;;  %v5833_v43 = vadd.f32 %v1826_v27, %v1785_v7 }
 0x241   : > { %v5835_v26 = vadd.f32 %v1827_v58, %v1786_v49  ;;  %v5837_v51 = vadd.f32 %v1830_v5, %v1789_v23  ;;  %v5840_v38 = vadd.f32 %v7082_v31, %v1860_v21  ;;  %v1991_v57 = vmul.f32 %v5076_v19, %v1504_v13 }
 0x242   : > { %v1276_v16 = vrot.slane %v1137_v24, 7  ;;  %v1495_v25 = vrot.slane %v1137_v24, 1  ;;  %v4068_v14 = vpop.eup %4067  ;;  %v1417_v12 = vmul.f32 %v7004_v44, %v1137_v24  ;;  %v1705_v18 = vmul.f32 %v7003_v53, %v1137_v24 }
 0x243   : > { %4073 = vrcp.f32 %v1028_v56  ;;  %v5847_v2 = vadd.f32 %v5723_v28, %v1857_v15  ;;  %v1917_v49 = vmul.f32 %v5051_v3, %v1137_v24  ;;  %v1044_v21 = vadd.f32 1.0, %v4068_v14 }
 0x244   : > { %v1287_v5 = vsel %vm1284_vm1, %v1276_v16, %v1277_v30  ;;  %v1288_v7 = vsel %vm1284_vm1, %v4950_v47, %v1276_v16  ;;  %v1505_v13 = vsel %vm1501_vm0, %v1495_v25, %v1496_v63  ;;  %4075 = vpow2.f32 %v5709_v9 }
 0x245   : > { %v1349_v8 = vmul.f32 %v7000_v6, %v1288_v7  ;;  %v1350_v23 = vmul.f32 %v7000_v6, %v1287_v5  ;;  %v1566_v32 = vmul.f32 %v4947_v46, %v1505_v13  ;;  %v1637_v28 = vmul.f32 %v5084_v48, %v1288_v7  ;;  %v4070_v56 = vpop.eup %4069 }
 0x246   : > { %v1638_v30 = vmul.f32 %v5084_v48, %v1287_v5  ;;  %v1849_v27 = vmul.f32 %v5087_v20, %v1288_v7  ;;  %v1850_v58 = vmul.f32 %v5087_v20, %v1287_v5  ;;  %v1778_v31 = vmul.f32 %v5048_v39, %v1505_v13 }
 0x247   : > { %v1449_v15 = vadd.f32 %v1417_v12, %v1349_v8  ;;  %v1450_v63 = vadd.f32 %v1418_v61, %v1350_v23  ;;  %v1669_v24 = vadd.f32 %v1637_v28, %v5652_v22  ;;  %v1990_v60 = vmul.f32 %v5076_v19, %v1505_v13  ;;  %v7090_v8 = vld [vmem:[#allocation32_spill] sm:$0xff] }
 0x248   : > { %v1670_v16 = vadd.f32 %v1638_v30, %v5768_v59  ;;  %v1881_v25 = vadd.f32 %v1849_v27, %v5660_v17  ;;  %v1882_v41 = vadd.f32 %v1850_v58, %v5775_v50  ;;  %v1027_v54 = vadd.f32 1.0, %v4070_v56 }
 0x249   : > { %v5870_v34 = vadd.f32 %v1566_v32, %v1449_v15  ;;  %v1737_v7 = vadd.f32 %v1705_v18, %v1669_v24  ;;  %v4072_v14 = vpop.eup %4071  ;;  %4077 = vpow2.f32 %v5712_v33  ;;  %v5882_v18 = vadd.f32 %v5817_v11, %v1450_v63  ;;  %v7091_v32 = vld [vmem:[#allocation60_spill] sm:$0xff]  ;;  %v7093_v63 = vld [vmem:[#allocation63_spill] sm:$0xff] }
 0x24a   : > { %v1738_v61 = vadd.f32 %v1706_v55, %v1670_v16  ;;  %v1949_v12 = vadd.f32 %v1917_v49, %v1881_v25  ;;  %v1950_v22 = vadd.f32 %v1918_v36, %v1882_v41  ;;  %4079 = vpow2.f32 %v5783_v40  ;;  %v7085_v55 = vld [vmem:[#allocation59_spill] sm:$0xff] }
 0x24b   : > { %v5874_v5 = vadd.f32 %v1778_v31, %v1737_v7  ;;  %4081 = vrcp.f32 %v1044_v21  ;;  %v879_v41 = vmul.f32 %v5684_v45, %v7085_v55  ;;  %v1043_v33 = vadd.f32 1.0, %v4072_v14  ;;  %v7086_v36 = vld [vmem:[#allocation23_spill] sm:$0xff]  ;;  %v7092_v21 = vld [vmem:[#allocation34_spill] sm:$0xff]  ;;  %v7095_v14 = vld [vmem:[#allocation52_spill] sm:$0xff] }
 0x24c   : > { %v5877_v17 = vadd.f32 %v1990_v60, %v1949_v12  ;;  %v5879_v59 = vadd.f32 %v1991_v57, %v1950_v22  ;;  %4083 = vrcp.f32 %v1027_v54  ;;  %v5884_v9 = vadd.f32 %v1779_v1, %v1738_v61  ;;  %v7087_v60 = vld [vmem:[#allocation37_spill] sm:$0xff]  ;;  %v7088_v57 = vld [vmem:[#allocation58_spill] sm:$0xff] }
 0x24d   : > { %v4074_v50 = vpop.eup %4073  ;;  %v5890_v13 = vmul.f32 %v7003_v53, %v7086_v36  ;;  %v1894_v40 = vmul.f32 %v5051_v3, %v7087_v60  ;;  %v1895_v49 = vmul.f32 %v5051_v3, %v7088_v57  ;;  %v7089_v54 = vld [vmem:[#allocation45_spill] sm:$0xff]  ;;  %v5900_v1 = vmul.f32 %v5048_v39, %v7090_v8 }
 0x24e   : > { %7083 = vst [vmem:[#allocation69_spill] sm:$0xff] %v5877_v17  ;;  %7084 = vst [vmem:[#allocation56_spill] sm:$0xff] %v5879_v59  ;;  %v1897_v11 = vmul.f32 %v5051_v3, %v7089_v54  ;;  %v5904_v45 = vmul.f32 %v5051_v3, %v7086_v36  ;;  %v5908_v23 = vmul.f32 %v5076_v19, %v7090_v8  ;;  %4085 = vrcp.f32 %v1043_v33  ;;  %v4076_v16 = vpop.eup %4075  ;;  %v7096_v12 = vld [vmem:[#allocation57_spill] sm:$0xff]  ;;  %v7113_v59 = vld [vmem:[#allocation74_spill] sm:$0xff] }
 0x24f   : > { %v1898_v28 = vmul.f32 %v5051_v3, %v7091_v32  ;;  %v5913_v56 = vadd.f32 %v5665_v52, %v879_v41  ;;  %v1926_v30 = vadd.f32 %v1894_v40, %v5833_v43  ;;  %v1927_v27 = vadd.f32 %v1895_v49, %v5835_v26  ;;  %v7104_v49 = vld [vmem:[#allocation72_spill] sm:$0xff]  ;;  %v7106_v8 = vld [vmem:[#allocation33_spill] sm:$0xff] }
 0x250   : > { %v1929_v58 = vadd.f32 %v1897_v11, %v5831_v10  ;;  %v5920_v15 = vmul.f32 %v5084_v48, %v7092_v21  ;;  %v1971_v24 = vmul.f32 %v5076_v19, %v7093_v63  ;;  %v1124_v52 = vmul.f32 %v4074_v50, %v5339_v37  ;;  %v7094_v10 = vld [vmem:[#allocation62_spill] sm:$0xff] }
 0x251   : > { %v1930_v31 = vadd.f32 %v1898_v28, %v5837_v51  ;;  %v1966_v43 = vmul.f32 %v5076_v19, %v7063_v35  ;;  %v1967_v26 = vmul.f32 %v5076_v19, %v7070_v4  ;;  %v1968_v25 = vmul.f32 %v5076_v19, %v7094_v10  ;;  %v7097_v51 = vld [vmem:[#allocation70_spill] sm:$0xff] }
 0x252   : > { %v1973_v61 = vmul.f32 %v5076_v19, %v7095_v14  ;;  %v1969_v22 = vmul.f32 %v5076_v19, %v7096_v12  ;;  %v1970_v55 = vmul.f32 %v5076_v19, %v7097_v51  ;;  %v3337_v35 = vmul.f32 -1.442695, %v5913_v56  ;;  %v7112_v14 = vld [vmem:[#allocation64_spill] sm:$0xff] }
 0x253   : > { %v4078_v7 = vpop.eup %4077  ;;  %v5938_v37 = vadd.f32 %v1971_v24, %v1930_v31  ;;  %v5942_v4 = vadd.f32 %v1966_v43, %v5847_v2  ;;  %v5944_v41 = vadd.f32 %v1967_v26, %v1926_v30  ;;  %v5946_v33 = vadd.f32 %v1968_v25, %v1927_v27  ;;  %v7107_v2 = vld [vmem:[#allocation26_spill] sm:$0xff]  ;;  %v7108_v24 = vld [vmem:[#allocation29_spill] sm:$0xff]  ;;  %v7110_v43 = vld [vmem:[#allocation35_spill] sm:$0xff] }
 0x254   : > { %v4080_v50 = vpop.eup %4079  ;;  %v1030_v60 = vadd.f32 1.0, %v4076_v16  ;;  %v5949_v40 = vadd.f32 %v1969_v22, %v5840_v38  ;;  %v5951_v57 = vadd.f32 %v1970_v55, %v1929_v58  ;;  %v5954_v54 = vadd.f32 %v1973_v61, %v7104_v49  ;;  %v7109_v58 = vld [vmem:[#allocation71_spill] sm:$0xff] }
 0x255   : > { %7098 = vst [vmem:[#allocation36_spill] sm:$0xff] %v5938_v37  ;;  %7099 = vst [vmem:[#allocation20_spill] sm:$0xff] %v5942_v4  ;;  %v4082_v36 = vpop.eup %4081  ;;  %v5958_v32 = vmul.f32 %v5084_v48, %v7106_v8  ;;  %v5962_v28 = vmul.f32 %v7003_v53, %v7107_v2  ;;  %v1256_v30 = vrot.slane %v1124_v52, 7  ;;  %v1046_v27 = vadd.f32 1.0, %v4078_v7  ;;  %v5983_v7 = vld [vmem:[%s6822_s5] ss:$0 sm:$0xff] }
 0x256   : > { %7100 = vst [vmem:[#allocation27_spill] sm:$0xff] %v5944_v41  ;;  %7101 = vst [vmem:[#allocation38_spill] sm:$0xff] %v5946_v33  ;;  %v4084_v11 = vpop.eup %4083  ;;  %v1475_v63 = vrot.slane %v1124_v52, 1  ;;  %v5965_v38 = vmul.f32 %v4082_v36, %v7108_v24  ;;  %v1029_v16 = vadd.f32 1.0, %v4080_v50  ;;  %v5970_v26 = vmul.f32 %v5048_v39, %v7110_v43  ;;  %v7114_v33 = vld [vmem:[#allocation31_spill] sm:$0xff] }
 0x257   : > { %7102 = vst [vmem:[#allocation44_spill] sm:$0xff] %v5949_v40  ;;  %7103 = vst [vmem:[#allocation25_spill] sm:$0xff] %v5951_v57  ;;  %v1123_v31 = vmul.f32 %v4084_v11, %v7109_v58  ;;  %v5974_v10 = vmul.f32 %v5087_v20, %v7092_v21  ;;  %v5978_v25 = vmul.f32 %v5087_v20, %v7106_v8  ;;  %4087 = vpow2.f32 %v3337_v35 }
 0x258   : > { %7105 = vst [vmem:[#allocation24_spill] sm:$0xff] %v5954_v54  ;;  %7111 = vst [vmem:[#allocation53_spill] sm:$0xff] %v5983_v7  ;;  %v5987_v61 = vmul.f32 %v5983_v7, %v7112_v14  ;;  %4089 = vrcp.f32 %v1030_v60  ;;  %v1404_v21 = vmul.f32 %v7004_v44, %v1124_v52  ;;  %v1692_v51 = vmul.f32 %v7003_v53, %v1124_v52  ;;  %v4086_v50 = vpop.eup %4085 }
 0x259   : > { %v1255_v12 = vrot.slane %v1123_v31, 7  ;;  %v1474_v22 = vrot.slane %v1123_v31, 1  ;;  %v1904_v55 = vmul.f32 %v5051_v3, %v1124_v52  ;;  %4091 = vrcp.f32 %v1046_v27 }
 0x25a   : > { %v5995_v36 = vsel %vm1501_vm0, %v1475_v63, %v4939_v42  ;;  %v1280_v35 = vrot.slane %v5965_v38, 7  ;;  %4093 = vrcp.f32 %v1029_v16  ;;  %v1403_v24 = vmul.f32 %v7004_v44, %v1123_v31 }
 0x25b   : > { %v1301_v49 = vsel %vm1284_vm1, %v1255_v12, %v1256_v30  ;;  %v1302_v60 = vsel %vm1284_vm1, %v4950_v47, %v1255_v12  ;;  %v1519_v52 = vsel %vm1501_vm0, %v1474_v22, %v1475_v63  ;;  %v1691_v30 = vmul.f32 %v7003_v53, %v1123_v31 }
 0x25c   : > { %v1336_v11 = vmul.f32 %v7000_v6, %v1301_v49  ;;  %v1624_v8 = vmul.f32 %v5084_v48, %v1301_v49  ;;  %v1335_v27 = vmul.f32 %v7000_v6, %v1302_v60  ;;  %v1623_v58 = vmul.f32 %v5084_v48, %v1302_v60 }
 0x25d   : > { %v1835_v12 = vmul.f32 %v5087_v20, %v1302_v60  ;;  %v1139_v17 = vmul.f32 %v4086_v50, %v7113_v59  ;;  %v1552_v63 = vmul.f32 %v4947_v46, %v1519_v52  ;;  %v1836_v37 = vmul.f32 %v5087_v20, %v1301_v49  ;;  %v7115_v50 = vld [vmem:[#allocation41_spill] sm:$0xff] }
 0x25e   : > { %v1436_v16 = vadd.f32 %v1404_v21, %v1336_v11  ;;  %v1656_v14 = vadd.f32 %v1624_v8, %v5778_v62  ;;  %v1435_v54 = vadd.f32 %v1403_v24, %v1335_v27  ;;  %v1655_v22 = vadd.f32 %v1623_v58, %v5760_v29 }
 0x25f   : > { %v1499_v57 = vrot.slane %v5965_v38, 1  ;;  %v1867_v41 = vadd.f32 %v1835_v12, %v7114_v33  ;;  %v1903_v21 = vmul.f32 %v5051_v3, %v1123_v31  ;;  %v1764_v59 = vmul.f32 %v5048_v39, %v1519_v52 }
 0x260   : > { %v6018_v40 = vadd.f32 %v1692_v51, %v1656_v14  ;;  %v6022_v62 = vadd.f32 %v1552_v63, %v1435_v54  ;;  %v1723_v60 = vadd.f32 %v1691_v30, %v1655_v22  ;;  %v1868_v11 = vadd.f32 %v1836_v37, %v7115_v50 }
 0x261   : > { %v4088_v8 = vpop.eup %4087  ;;  %v1935_v27 = vadd.f32 %v1903_v21, %v1867_v41  ;;  %v1976_v29 = vmul.f32 %v5076_v19, %v1519_v52  ;;  %v1279_v49 = vrot.slane %v1139_v17, 7  ;;  %v1498_v24 = vrot.slane %v1139_v17, 1 }
 0x262   : > { %v4090_v58 = vpop.eup %4089  ;;  %v1553_v51 = vmul.f32 %v4947_v46, %v5995_v36  ;;  %v1977_v33 = vmul.f32 %v5076_v19, %v5995_v36  ;;  %v6031_v54 = vadd.f32 %v1764_v59, %v1723_v60  ;;  %v1936_v31 = vadd.f32 %v1904_v55, %v1868_v11 }
 0x263   : > { %v4092_v30 = vpop.eup %4091  ;;  %v6033_v14 = vadd.f32 %v1976_v29, %v1935_v27  ;;  %v1285_v37 = vsel %vm1284_vm1, %v1279_v49, %v1280_v35  ;;  %v1286_v41 = vsel %vm1284_vm1, %v4950_v47, %v1279_v49  ;;  %v6042_v52 = vsel %vm1501_vm0, %v1498_v24, %v1499_v57 }
 0x264   : > { %v4094_v12 = vpop.eup %4093  ;;  %v6044_v63 = vadd.f32 %v1977_v33, %v1936_v31  ;;  %v1639_v22 = vmul.f32 %v5084_v48, %v1286_v41  ;;  %v1707_v55 = vmul.f32 %v7003_v53, %v1139_v17  ;;  %v1045_v21 = vadd.f32 1.0, %v4088_v8 }
 0x265   : > { %7116 = vst [vmem:[#allocation46_spill] sm:$0xff] %v6033_v14  ;;  %v6051_v35 = vsel %vm1501_vm0, %v1499_v57, %v4939_v42  ;;  %v1640_v60 = vmul.f32 %v5084_v48, %v1285_v37  ;;  %v1851_v59 = vmul.f32 %v5087_v20, %v1286_v41  ;;  %v1852_v50 = vmul.f32 %v5087_v20, %v1285_v37  ;;  %v6065_v57 = vld [vmem:[%s7119_s24] ss:$0 sm:$0xff]  ;;  %v7124_v14 = vld [vmem:[#allocation75_spill] sm:$0xff]  ;;  %s7173_s24 = sld [smem:[#allocation83_spill]] }
 0x266   : > { %7117 = vst [vmem:[#allocation28_spill] sm:$0xff] %v6044_v63  ;;  %7118 = vst [vmem:[#allocation68_spill] sm:$0xff] %v6051_v35  ;;  %v1920_v11 = vmul.f32 %v5051_v3, %v5965_v38  ;;  %v1993_v27 = vmul.f32 %v5076_v19, %v6051_v35  ;;  %v1671_v29 = vadd.f32 %v1639_v22, %v5870_v34  ;;  %4095 = vrcp.f32 %v1045_v21 }
 0x267   : > { %v1919_v8 = vmul.f32 %v5051_v3, %v1139_v17  ;;  %7120 = vst [vmem:[#allocation47_spill] sm:$0xff] %v6065_v57  ;;  %v6068_v49 = vadd.f32 %v1640_v60, %v5882_v18  ;;  %v1883_v24 = vadd.f32 %v1851_v59, %v5874_v5  ;;  %v1884_v33 = vadd.f32 %v1852_v50, %v5884_v9 }
 0x268   : > { %v1992_v31 = vmul.f32 %v5076_v19, %v6042_v52  ;;  %v6076_v34 = vmul.f32 %v5051_v3, %v7107_v2  ;;  %v6080_v22 = vadd.f32 %v6065_v57, %v5987_v61  ;;  %v6082_v63 = vadd.f32 %v1707_v55, %v1671_v29  ;;  %v7126_v61 = vld [vmem:[#allocation51_spill] sm:$0xff] }
 0x269   : > { %7121 = vst [vmem:[#allocation61_spill] sm:$0xff] %v6068_v49  ;;  %v1126_v18 = vmul.f32 %v4090_v58, %v7124_v14  ;;  %v6087_v5 = vmul.f32 %v5076_v19, %v7110_v43  ;;  %v1951_v9 = vadd.f32 %v1919_v8, %v1883_v24  ;;  %v1952_v60 = vadd.f32 %v1920_v11, %v1884_v33  ;;  %v7125_v49 = vld [vmem:[#allocation78_spill] sm:$0xff] }
 0x26a   : > { %7122 = vst [vmem:[#allocation67_spill] sm:$0xff] %v6080_v22  ;;  %7123 = vst [vmem:[#allocation48_spill] sm:$0xff] %v6082_v63  ;;  %v1585_v59 = vadd.f32 %v1553_v51, %v1436_v16  ;;  %v1351_v50 = vmul.f32 %v7000_v6, %v1286_v41  ;;  %v1419_v2 = vmul.f32 %v7004_v44, %v1139_v17  ;;  %v7129_v43 = vld [vmem:[#allocation50_spill] sm:$0xff]  ;;  %v6105_v16 = vmul.f32 -1.442695, %v6080_v22  ;;  %v7130_v51 = vld [vmem:[#allocation77_spill] sm:$0xff] }
 0x26b   : > { %v1478_v4 = vrot.slane %v1126_v18, 1  ;;  %v1125_v7 = vmul.f32 %v4094_v12, %v7125_v49  ;;  %v6094_v55 = vmul.f32 %v5087_v20, %v7126_v61  ;;  %v6096_v29 = vadd.f32 %v1992_v31, %v1951_v9 }
 0x26c   : > { %v6098_v58 = vadd.f32 %v1993_v27, %v1952_v60  ;;  %v6102_v14 = vmul.f32 %v5087_v20, %v7129_v43  ;;  %v1259_v17 = vrot.slane %v1126_v18, 7  ;;  %v6108_v41 = vmul.f32 %v4092_v30, %v7130_v51 }
 0x26d   : > { %7127 = vst [vmem:[#allocation59_spill] sm:$0xff] %v6096_v29  ;;  %v1765_v12 = vmul.f32 %v5048_v39, %v5995_v36  ;;  %v1420_v11 = vmul.f32 %v7004_v44, %v5965_v38  ;;  %v1569_v21 = vmul.f32 %v4947_v46, %v6051_v35  ;;  %v1352_v27 = vmul.f32 %v7000_v6, %v1285_v37 }
 0x26e   : > { %7128 = vst [vmem:[#allocation23_spill] sm:$0xff] %v6098_v58  ;;  %7131 = vst [vmem:[#allocation37_spill] sm:$0xff] %v6108_v41  ;;  %v1451_v8 = vadd.f32 %v1419_v2, %v1351_v50  ;;  %v1516_v49 = vsel %vm1501_vm0, %v1478_v4, %v4939_v42  ;;  %v6915_v24 = vrot.slane %v6108_v41, 1  ;;  %v1258_v30 = vrot.slane %v1125_v7, 7 }
 0x26f   : > { %v1406_v33 = vmul.f32 %v7004_v44, %v1126_v18  ;;  %v1694_v36 = vmul.f32 %v7003_v53, %v1126_v18  ;;  %v1906_v31 = vmul.f32 %v5051_v3, %v1126_v18  ;;  %v1477_v9 = vrot.slane %v1125_v7, 1 }
 0x270   : > { %v6129_v37 = vsel %vm1501_vm0, %v6915_v24, %v4939_v42  ;;  %v1299_v60 = vsel %vm1284_vm1, %v1258_v30, %v1259_v17  ;;  %v1300_v50 = vsel %vm1284_vm1, %v4950_v47, %v1258_v30  ;;  %v1797_v2 = vadd.f32 %v1765_v12, %v6018_v40  ;;  %v4096_v57 = vpop.eup %4095 }
 0x271   : > { %7132 = vst [vmem:[#allocation58_spill] sm:$0xff] %v6129_v37  ;;  %v1555_v61 = vmul.f32 %v4947_v46, %v1516_v49  ;;  %v1604_v18 = vrot.slane %v6108_v41, 7  ;;  %v1337_v43 = vmul.f32 %v7000_v6, %v1300_v50  ;;  %v1405_v51 = vmul.f32 %v7004_v44, %v1125_v7 }
 0x272   : > { %v1338_v24 = vmul.f32 %v7000_v6, %v1299_v60  ;;  %v1517_v22 = vsel %vm1501_vm0, %v1477_v9, %v1478_v4  ;;  %v1625_v17 = vmul.f32 %v5084_v48, %v1300_v50  ;;  %v1626_v58 = vmul.f32 %v5084_v48, %v1299_v60 }
 0x273   : > { %v1767_v30 = vmul.f32 %v5048_v39, %v1516_v49  ;;  %v1979_v40 = vmul.f32 %v5076_v19, %v1516_v49  ;;  %v1437_v12 = vadd.f32 %v1405_v51, %v1337_v43  ;;  %v1554_v42 = vmul.f32 %v4947_v46, %v1517_v22 }
 0x274   : > { %v1438_v29 = vadd.f32 %v1406_v33, %v1338_v24  ;;  %v1657_v63 = vadd.f32 %v1625_v17, %v6022_v62  ;;  %v1658_v44 = vadd.f32 %v1626_v58, %v1585_v59  ;;  %v1693_v6 = vmul.f32 %v7003_v53, %v1125_v7  ;;  %v7138_v17 = vld [vmem:[#allocation53_spill] sm:$0xff] }
 0x275   : > { %v1586_v37 = vadd.f32 %v1554_v42, %v1437_v12  ;;  %v1766_v4 = vmul.f32 %v5048_v39, %v1517_v22  ;;  %v1837_v9 = vmul.f32 %v5087_v20, %v1300_v50  ;;  %v1838_v41 = vmul.f32 %v5087_v20, %v1299_v60 }
 0x276   : > { %v1587_v48 = vadd.f32 %v1555_v61, %v1438_v29  ;;  %v1725_v35 = vadd.f32 %v1693_v6, %v1657_v63  ;;  %v1726_v49 = vadd.f32 %v1694_v36, %v1658_v44  ;;  %v1905_v43 = vmul.f32 %v5051_v3, %v1125_v7 }
 0x277   : > { %v1659_v24 = vadd.f32 %v5920_v15, %v1586_v37  ;;  %v1869_v62 = vadd.f32 %v1837_v9, %v6031_v54  ;;  %v1870_v59 = vadd.f32 %v1838_v41, %v1797_v2  ;;  %v1978_v58 = vmul.f32 %v5076_v19, %v1517_v22  ;;  %v7136_v2 = vld [vmem:[#allocation49_spill] sm:$0xff] }
 0x278   : > { %v1660_v42 = vadd.f32 %v5958_v32, %v1587_v48  ;;  %v1798_v33 = vadd.f32 %v1766_v4, %v1725_v35  ;;  %v1799_v51 = vadd.f32 %v1767_v30, %v1726_v49  ;;  %v1141_v50 = vmul.f32 %v4096_v57, %v5913_v56 }
 0x279   : > { %v1727_v60 = vadd.f32 %v5962_v28, %v1659_v24  ;;  %v1937_v29 = vadd.f32 %v1905_v43, %v1869_v62  ;;  %v1938_v63 = vadd.f32 %v1906_v31, %v1870_v59  ;;  %v1452_v36 = vadd.f32 %v1420_v11, %v1352_v27  ;;  %v7134_v27 = vld [vmem:[#allocation39_spill] sm:$0xff]  ;;  %v7142_v43 = vld [vmem:[#allocation61_spill] sm:$0xff]  ;;  %v7143_v62 = vld [vmem:[#allocation30_spill] sm:$0xff] }
 0x27a   : > { %v1728_v7 = vadd.f32 %v5890_v13, %v1660_v42  ;;  %v1871_v15 = vadd.f32 %v5974_v10, %v1798_v33  ;;  %v1872_v54 = vadd.f32 %v5978_v25, %v1799_v51  ;;  %v1568_v22 = vmul.f32 %v4947_v46, %v6042_v52  ;;  %v7133_v10 = vld [vmem:[#allocation42_spill] sm:$0xff] }
 0x27b   : > { %v1800_v48 = vadd.f32 %v5970_v26, %v1727_v60  ;;  %v6167_v32 = vadd.f32 %v1978_v58, %v1937_v29  ;;  %v6169_v35 = vadd.f32 %v1979_v40, %v1938_v63  ;;  %v1601_v56 = vadd.f32 %v1569_v21, %v1452_v36  ;;  %v7144_v42 = vld [vmem:[#allocation58_spill] sm:$0xff]  ;;  %v7145_v63 = vld [vmem:[#allocation47_spill] sm:$0xff] }
 0x27c   : > { %v1801_v28 = vadd.f32 %v5900_v1, %v1728_v7  ;;  %v1939_v57 = vadd.f32 %v6076_v34, %v1871_v15  ;;  %v1940_v13 = vadd.f32 %v5904_v45, %v1872_v54  ;;  %v1600_v41 = vadd.f32 %v1568_v22, %v1451_v8  ;;  %v7135_v34 = vld [vmem:[#allocation55_spill] sm:$0xff]  ;;  %v7146_v54 = vld [vmem:[#allocation40_spill] sm:$0xff] }
 0x27d   : > { %v1909_v25 = vmul.f32 %v5051_v3, %v7133_v10  ;;  %v1873_v11 = vadd.f32 %v6094_v55, %v1800_v48  ;;  %v1603_v46 = vrot.slane %v1141_v50, 7  ;;  %v1910_v26 = vmul.f32 %v5051_v3, %v7134_v27 }
 0x27e   : > { %v1874_v31 = vadd.f32 %v6102_v14, %v1801_v28  ;;  %v6181_v21 = vadd.f32 %v6087_v5, %v1939_v57  ;;  %v6184_v1 = vadd.f32 %v5908_v23, %v1940_v13  ;;  %v1982_v45 = vmul.f32 %v5076_v19, %v7135_v34  ;;  %v7137_v14 = vld [vmem:[#allocation65_spill] sm:$0xff]  ;;  %v7148_v57 = vld [vmem:[#allocation48_spill] sm:$0xff] }
 0x27f   : > { %v1708_v8 = vmul.f32 %v7003_v53, %v5965_v38  ;;  %v1941_v37 = vadd.f32 %v1909_v25, %v1873_v11  ;;  %v1605_v55 = vsel %vm1284_vm1, %v1603_v46, %v1604_v18  ;;  %v1983_v61 = vmul.f32 %v5076_v19, %v7136_v2  ;;  %v7139_v38 = vld [vmem:[#allocation68_spill] sm:$0xff]  ;;  %v7140_v18 = vld [vmem:[#allocation43_spill] sm:$0xff] }
 0x280   : > { %4097 = vpow2.f32 %v6105_v16  ;;  %v1942_v5 = vadd.f32 %v1910_v26, %v1874_v31  ;;  %v2055_v23 = vmul.f32 %v7138_v17, %v7137_v14  ;;  %v1606_v40 = vsel %vm1284_vm1, %v4950_v47, %v1603_v46  ;;  %v7141_v16 = vld [vmem:[#allocation37_spill] sm:$0xff]  ;;  %v7150_v2 = vld [vmem:[#allocation20_spill] sm:$0xff] }
 0x281   : > { %v6197_v30 = vadd.f32 %v1982_v45, %v1941_v37  ;;  %v1781_v12 = vmul.f32 %v5048_v39, %v7139_v38  ;;  %v1641_v6 = vmul.f32 %v7140_v18, %v1606_v40  ;;  %v1642_v4 = vmul.f32 %v7140_v18, %v1605_v55  ;;  %v7152_v18 = vld [vmem:[#allocation38_spill] sm:$0xff] }
 0x282   : > { %v6204_v44 = vadd.f32 %v1983_v61, %v1942_v5  ;;  %v1710_v9 = vmul.f32 %v7003_v53, %v7141_v16  ;;  %v1709_v49 = vmul.f32 %v7003_v53, %v1141_v50  ;;  %v1740_v24 = vadd.f32 %v1708_v8, %v7142_v43 }
 0x283   : > { %v2056_v59 = vmul.f32 %v7138_v17, %v7143_v62  ;;  %v1673_v58 = vadd.f32 %v1641_v6, %v1600_v41  ;;  %v1783_v33 = vmul.f32 %v5048_v39, %v7144_v42  ;;  %v1674_v51 = vadd.f32 %v1642_v4, %v1601_v56  ;;  %v7149_v41 = vld [vmem:[#allocation76_spill] sm:$0xff] }
 0x284   : > { %v1743_v60 = vrot.slane %v1141_v50, 1  ;;  %v1780_v29 = vmul.f32 %v5048_v39, %v6042_v52  ;;  %v6219_v36 = vadd.f32 %v7145_v63, %v2055_v23  ;;  %v1813_v15 = vadd.f32 %v1781_v12, %v1740_v24  ;;  %v7151_v23 = vld [vmem:[#allocation27_spill] sm:$0xff]  ;;  %v7154_v24 = vld [vmem:[#allocation25_spill] sm:$0xff] }
 0x285   : > { %v1741_v7 = vadd.f32 %v1709_v49, %v1673_v58  ;;  %v1853_v53 = vmul.f32 %v5087_v20, %v1606_v40  ;;  %v2057_v22 = vmul.f32 %v7138_v17, %v7146_v54  ;;  %v1742_v48 = vadd.f32 %v1710_v9, %v1674_v51  ;;  %v7153_v9 = vld [vmem:[#allocation44_spill] sm:$0xff] }
 0x286   : > { %v7147_v28 = vrot.slane %v7141_v16, 1  ;;  %v1812_v13 = vadd.f32 %v1780_v29, %v7148_v57  ;;  %v6230_v52 = vadd.f32 %v7145_v63, %v2056_v59  ;;  %v2058_v10 = vmul.f32 %v7138_v17, %v7149_v41  ;;  %v7158_v54 = vld [vmem:[#allocation24_spill] sm:$0xff] }
 0x287   : > { %v1854_v11 = vmul.f32 %v5087_v20, %v1605_v55  ;;  %v6236_v46 = vadd.f32 %v1783_v33, %v1742_v48  ;;  %v1921_v26 = vmul.f32 %v5051_v3, %v1141_v50  ;;  %v1922_v34 = vmul.f32 %v5051_v3, %v7141_v16 }
 0x288   : > { %v1747_v56 = vsel %vm1501_vm0, %v1743_v60, %v7147_v28  ;;  %v1885_v27 = vadd.f32 %v1853_v53, %v1812_v13  ;;  %v1995_v45 = vmul.f32 %v5076_v19, %v7144_v42  ;;  %v2036_v61 = vmul.f32 %v7138_v17, %v7150_v2  ;;  %v7155_v42 = vld [vmem:[#allocation36_spill] sm:$0xff]  ;;  %v7156_v60 = vld [vmem:[#allocation73_spill] sm:$0xff]  ;;  %v7159_v28 = vld [vmem:[#allocation66_spill] sm:$0xff] }
 0x289   : > { %v1782_v25 = vmul.f32 %v5048_v39, %v1747_v56  ;;  %v1994_v0 = vmul.f32 %v5076_v19, %v1747_v56  ;;  %v1886_v37 = vadd.f32 %v1854_v11, %v1813_v15  ;;  %v6247_v39 = vadd.f32 %v7145_v63, %v2057_v22  ;;  %v7157_v15 = vld [vmem:[#allocation46_spill] sm:$0xff] }
 0x28a   : > { %v4098_v31 = vpop.eup %4097  ;;  %v1953_v55 = vadd.f32 %v1921_v26, %v1885_v27  ;;  %v3360_v50 = vmul.f32 -1.442695, %v6219_v36  ;;  %v6253_v5 = vadd.f32 %v7145_v63, %v2058_v10  ;;  %v2037_v40 = vmul.f32 %v7138_v17, %v7151_v23  ;;  %v2403_v23 = vld [vmem:[#allocation9 + $0x10] sm:$0xff] }
 0x28b   : > { %v6244_v8 = vadd.f32 %v1782_v25, %v1741_v7  ;;  %v1954_v14 = vadd.f32 %v1922_v34, %v1886_v37  ;;  %v2220_v38 = vadd.f32 1.0, %v4098_v31  ;;  %v2038_v6 = vmul.f32 %v7138_v17, %v7152_v18  ;;  %v7160_v25 = vld [vmem:[#allocation28_spill] sm:$0xff]  ;;  %v2402_v34 = vld [vmem:[#allocation9 + $0x8] sm:$0xff] }
 0x28c   : > { %v6257_v12 = vadd.f32 %v1994_v0, %v1953_v55  ;;  %v3361_v4 = vmul.f32 -1.442695, %v6230_v52  ;;  %v2039_v49 = vmul.f32 %v7138_v17, %v7153_v9  ;;  %v3362_v43 = vmul.f32 -1.442695, %v6247_v39  ;;  %v2401_v31 = vld [vmem:[#allocation9] sm:$0xff] }
 0x28d   : > { %v6262_v16 = vadd.f32 %v1995_v45, %v1954_v14  ;;  %v2040_v62 = vmul.f32 %v7138_v17, %v7154_v24  ;;  %v6270_v59 = vadd.f32 %v7145_v63, %v2036_v61  ;;  %4099 = vpow2.f32 %v3360_v50  ;;  %v7161_v61 = vld [vmem:[#allocation21_spill] sm:$0xff] }
 0x28e   : > { %v3363_v58 = vmul.f32 -1.442695, %v6253_v5  ;;  %v2041_v33 = vmul.f32 %v7138_v17, %v7155_v42  ;;  %v6276_v51 = vadd.f32 %v7145_v63, %v2037_v40  ;;  %4101 = vrcp.f32 %v2220_v38  ;;  %v2404_v40 = vld [vmem:[#allocation9 + $0x18] sm:$0xff] }
 0x28f   : > { %v2042_v29 = vmul.f32 %v7138_v17, %v7156_v60  ;;  %v6281_v7 = vadd.f32 %v7145_v63, %v2038_v6  ;;  %4103 = vpow2.f32 %v3361_v4  ;;  %v2046_v53 = vmul.f32 %v7138_v17, %v7157_v15  ;;  %v2406_v60 = vld [vmem:[#allocation9 + $0x28] sm:$0xff] }
 0x290   : > { %v2043_v22 = vmul.f32 %v7138_v17, %v7158_v54  ;;  %v6288_v48 = vadd.f32 %v7145_v63, %v2039_v49  ;;  %4105 = vpow2.f32 %v3362_v43  ;;  %v2044_v56 = vmul.f32 %v7138_v17, %v7159_v28 }
 0x291   : > { %v6293_v57 = vadd.f32 %v7145_v63, %v2040_v62  ;;  %v3341_v13 = vmul.f32 -1.442695, %v6270_v59  ;;  %4107 = vpow2.f32 %v3363_v58  ;;  %v6297_v41 = vadd.f32 %v7145_v63, %v2041_v33  ;;  %v2405_v33 = vld [vmem:[#allocation9 + $0x20] sm:$0xff] }
 0x292   : > { %v3342_v10 = vmul.f32 -1.442695, %v6276_v51  ;;  %v2047_v11 = vmul.f32 %v7138_v17, %v7160_v25  ;;  %v2048_v27 = vmul.f32 %v7138_v17, %v6167_v32  ;;  %v6305_v26 = vadd.f32 %v7145_v63, %v2042_v29 }
 0x293   : > { %v3343_v0 = vmul.f32 -1.442695, %v6281_v7  ;;  %v6309_v45 = vadd.f32 %v7145_v63, %v2046_v53  ;;  %v2049_v37 = vmul.f32 %v7138_v17, %v6169_v35  ;;  %v6314_v55 = vadd.f32 %v7145_v63, %v2043_v22 }
 0x294   : > { %v3344_v2 = vmul.f32 -1.442695, %v6288_v48  ;;  %v2045_v32 = vmul.f32 %v7138_v17, %v7161_v61  ;;  %v6320_v50 = vadd.f32 %v7145_v63, %v2044_v56  ;;  %4109 = vpow2.f32 %v3341_v13 }
 0x295   : > { %v3345_v14 = vmul.f32 -1.442695, %v6293_v57  ;;  %4111 = vpow2.f32 %v3342_v10  ;;  %v3346_v38 = vmul.f32 -1.442695, %v6297_v41  ;;  %v3777_v35 = vpack.c.bf16 %v2402_v34, %v2401_v31 }
 0x296   : > { %v6325_v18 = vadd.f32 %v7145_v63, %v2048_v27  ;;  %4113 = vpow2.f32 %v3343_v0  ;;  %v3347_v6 = vmul.f32 -1.442695, %v6305_v26  ;;  %v4461_v4 = vmov 0.0|0.0   ;;  %v2407_v27 = vld [vmem:[#allocation9 + $0x30] sm:$0xff]  ;;  %v2408_v0 = vld [vmem:[#allocation9 + $0x38] sm:$0xff] }
 0x297   : > { %3776 = vmatprep.subr.bf16.mxu1 %v4461_v4  ;;  %v6329_v9 = vpop.eup %4099  ;;  %v6332_v49 = vadd.f32 %v7145_v63, %v2049_v37  ;;  %4115 = vpow2.f32 %v3344_v2  ;;  %v3348_v43 = vmul.f32 -1.442695, %v6314_v55  ;;  %v3780_v24 = vpack.c.bf16 %v2404_v40, %v2403_v23 }
 0x298   : > { %3778 = vmatpush3.bf16.msra.mxu1 %v3777_v35  ;;  %v6335_v62 = vpop.eup %4101  ;;  %v6338_v58 = vadd.f32 %v7145_v63, %v2045_v32  ;;  %4117 = vpow2.f32 %v3345_v14  ;;  %v3349_v42 = vmul.f32 -1.442695, %v6320_v50  ;;  %v3351_v15 = vmul.f32 -1.442695, %v6309_v45  ;;  %v2410_v35 = vld [vmem:[#allocation9 + $0x48] sm:$0xff] }
 0x299   : > { %3779 = vmatprep.subr.bf16.mxu1 %v4461_v4  ;;  %v6342_v29 = vpop.eup %4103  ;;  %v6346_v53 = vadd.f32 %v7145_v63, %v2047_v11  ;;  %4119 = vpow2.f32 %v3346_v38  ;;  %v7162_v54 = vmov 0.0   ;;  %v2050_v28 = vmul.f32 %v7138_v17, %v6181_v21  ;;  %v2409_v38 = vld [vmem:[#allocation9 + $0x40] sm:$0xff] }
 0x29a   : > { %3626 = vmatprep.mubr.msk.f32.mxu1 %vm4462_vm2, %v7162_v54  ;;  %v6350_v22 = vpop.eup %4105  ;;  %v3353_v56 = vmul.f32 -1.442695, %v6325_v18  ;;  %4121 = vpow2.f32 %v3347_v6  ;;  %v3354_v10 = vmul.f32 -1.442695, %v6332_v49  ;;  %v3783_v25 = vpack.c.bf16 %v2406_v60, %v2405_v33 }
 0x29b   : > { %v6355_v13 = vpop.eup %4107  ;;  %4123 = vpow2.f32 %v3348_v43  ;;  %v3350_v11 = vmul.f32 -1.442695, %v6338_v58  ;;  %v3352_v21 = vmul.f32 -1.442695, %v6346_v53  ;;  %v2052_v34 = vmul.f32 %v7138_v17, %v6197_v30 }
 0x29c   : > { %3781 = vmatpush3.bf16.msra.mxu1 %v3780_v24  ;;  %4125 = vpow2.f32 %v3349_v42  ;;  %v6364_v37 = vadd.f32 %v7145_v63, %v2050_v28  ;;  %v2051_v61 = vmul.f32 %v7138_v17, %v6184_v1  ;;  %v3786_v14 = vpack.c.bf16 %v2408_v0, %v2407_v27  ;;  %v2412_v27 = vld [vmem:[#allocation9 + $0x58] sm:$0xff] }
 0x29d   : > { %3782 = vmatprep.subr.bf16.mxu1 %v4461_v4  ;;  %4127 = vpow2.f32 %v3351_v15  ;;  %v6370_v24 = vadd.f32 %v7145_v63, %v2052_v34  ;;  %v3789_v28 = vpack.c.bf16 %v2410_v35, %v2409_v38  ;;  %v7163_v34 = vld [vmem:[#allocation54_spill] sm:$0xff]  ;;  %v2413_v35 = vld [vmem:[#allocation9 + $0x60] sm:$0xff] }
 0x29e   : > { %v4110_v31 = vpop.eup %4109  ;;  %4129 = vpow2.f32 %v3353_v56  ;;  %v3355_v1 = vmul.f32 -1.442695, %v6364_v37  ;;  %v6374_v60 = vadd.f32 %v7145_v63, %v2051_v61 }
 0x29f   : > { %v4112_v2 = vpop.eup %4111  ;;  %4131 = vpow2.f32 %v3354_v10  ;;  %v2202_v32 = vadd.f32 1.0, %v4110_v31  ;;  %v2053_v10 = vmul.f32 %v7138_v17, %v6204_v44  ;;  %v3357_v61 = vmul.f32 -1.442695, %v6370_v24 }
 0x2a0   : > { %3784 = vmatpush3.bf16.msra.mxu1 %v3783_v25  ;;  %v4114_v23 = vpop.eup %4113  ;;  %4133 = vpow2.f32 %v3350_v11  ;;  %v2203_v40 = vadd.f32 1.0, %v4112_v2  ;;  %v2411_v11 = vld [vmem:[#allocation9 + $0x50] sm:$0xff]  ;;  %v2059_v2 = vmul.f32 %v7138_v17, %v7163_v34  ;;  %v3356_v44 = vmul.f32 -1.442695, %v6374_v60 }
 0x2a1   : > { %3785 = vmatprep.subr.bf16.mxu1 %v4461_v4  ;;  %v4116_v30 = vpop.eup %4115  ;;  %4135 = vpow2.f32 %v3352_v21  ;;  %v2204_v6 = vadd.f32 1.0, %v4114_v23 }
 0x2a2   : > { %v4118_v43 = vpop.eup %4117  ;;  %v2205_v42 = vadd.f32 1.0, %v4116_v30  ;;  %4137 = vrcp.f32 %v2202_v32  ;;  %v2414_v30 = vld [vmem:[#allocation9 + $0x68] sm:$0xff] }
 0x2a3   : > { %v4120_v33 = vpop.eup %4119  ;;  %v2206_v15 = vadd.f32 1.0, %v4118_v43  ;;  %4139 = vrcp.f32 %v2203_v40  ;;  %v6384_v40 = vadd.f32 %v7145_v63, %v2053_v10  ;;  %v3795_v10 = vpack.c.bf16 %v2414_v30, %v2413_v35 }
 0x2a4   : > { %3787 = vmatpush3.bf16.msra.mxu1 %v3786_v14  ;;  %v4122_v56 = vpop.eup %4121  ;;  %v2207_v25 = vadd.f32 1.0, %v4120_v33  ;;  %4141 = vrcp.f32 %v2204_v6  ;;  %v3792_v14 = vpack.c.bf16 %v2412_v27, %v2411_v11  ;;  %v2415_v27 = vld [vmem:[#allocation9 + $0x70] sm:$0xff] }
 0x2a5   : > { %3788 = vmatprep.subr.bf16.mxu1 %v4461_v4  ;;  %v4124_v0 = vpop.eup %4123  ;;  %v2208_v21 = vadd.f32 1.0, %v4122_v56  ;;  %4143 = vrcp.f32 %v2205_v42  ;;  %v3358_v11 = vmul.f32 -1.442695, %v6384_v40 }
 0x2a6   : > { %v4126_v31 = vpop.eup %4125  ;;  %4145 = vrcp.f32 %v2206_v15  ;;  %v2209_v38 = vadd.f32 1.0, %v4124_v0  ;;  %v7164_v15 = vld [vmem:[#allocation69_spill] sm:$0xff]  ;;  %v2416_v0 = vld [vmem:[#allocation9 + $0x78] sm:$0xff] }
 0x2a7   : > { %v4128_v32 = vpop.eup %4127  ;;  %4147 = vpow2.f32 %v3355_v1  ;;  %v2210_v43 = vadd.f32 1.0, %v4126_v31  ;;  %v6388_v1 = vadd.f32 %v7145_v63, %v2059_v2 }
 0x2a8   : > { %3790 = vmatpush3.bf16.msra.mxu1 %v3789_v28  ;;  %v4130_v23 = vpop.eup %4129  ;;  %4149 = vrcp.f32 %v2207_v25  ;;  %v2060_v28 = vmul.f32 %v7138_v17, %v7164_v15  ;;  %v2212_v56 = vadd.f32 1.0, %v4128_v32  ;;  %v7165_v32 = vld [vmem:[#allocation56_spill] sm:$0xff] }
 0x2a9   : > { %3791 = vmatprep.subr.bf16.mxu1 %v4461_v4  ;;  %v4132_v6 = vpop.eup %4131  ;;  %4151 = vrcp.f32 %v2208_v21  ;;  %v2214_v15 = vadd.f32 1.0, %v4130_v23 }
 0x2aa   : > { %v4134_v42 = vpop.eup %4133  ;;  %4153 = vpow2.f32 %v3357_v61  ;;  %v3364_v61 = vmul.f32 -1.442695, %v6388_v1  ;;  %v6404_v30 = vadd.f32 %v7145_v63, %v2060_v28 }
 0x2ab   : > { %v4136_v33 = vpop.eup %4135  ;;  %4155 = vpow2.f32 %v3356_v44  ;;  %v2211_v31 = vadd.f32 1.0, %v4134_v42  ;;  %v2061_v44 = vmul.f32 %v7138_v17, %v7165_v32 }
 0x2ac   : > { %3793 = vmatpush3.bf16.msra.mxu1 %v3792_v14  ;;  %v4138_v25 = vpop.eup %4137  ;;  %4157 = vrcp.f32 %v2209_v38  ;;  %v1855_v14 = vmul.f32 %v5087_v20, %v4950_v47  ;;  %v1923_v20 = vmul.f32 0.0, %v5051_v3  ;;  %v3365_v3 = vmul.f32 -1.442695, %v6404_v30 }
 0x2ad   : > { %3794 = vmatprep.subr.bf16.mxu1 %v4461_v4  ;;  %v4140_v21 = vpop.eup %4139  ;;  %4159 = vrcp.f32 %v2210_v43  ;;  %v2298_v34 = vmul.f32 %v4138_v25, %v6270_v59  ;;  %v3798_v59 = vpack.c.bf16 %v2416_v0, %v2415_v27  ;;  %v6421_v27 = vadd.f32 %v7145_v63, %v2061_v44 }
 0x2ae   : > { %v4142_v2 = vpop.eup %4141  ;;  %v6401_v38 = vmul.f32 %v4140_v21, %v6276_v51  ;;  %4161 = vrcp.f32 %v2212_v56  ;;  %v2213_v51 = vadd.f32 1.0, %v4136_v33  ;;  %v1887_v56 = vadd.f32 %v1855_v14, %v6244_v8  ;;  %v7166_v33 = vld [vmem:[#allocation59_spill] sm:$0xff] }
 0x2af   : > { %v4144_v35 = vpop.eup %4143  ;;  %v6407_v43 = vmul.f32 %v4142_v2, %v6281_v7  ;;  %3696 = vmatprep.mubr.f32.mxu0 %v2298_v34  ;;  %4163 = vpow2.f32 %v3358_v11  ;;  %v2062_v0 = vmul.f32 %v7138_v17, %v7166_v33  ;;  %v2215_v21 = vadd.f32 1.0, %v4132_v6  ;;  %v7167_v2 = vld [vmem:[#allocation22_spill] sm:$0xff] }
 0x2b0   : > { %3796 = vmatpush3.bf16.msra.mxu1 %v3795_v10  ;;  %v4146_v42 = vpop.eup %4145  ;;  %v2330_v25 = vadd.f32 %v6401_v38, %v2298_v34  ;;  %4165 = vrcp.f32 %v2211_v31  ;;  %v6414_v7 = vmul.f32 %v4144_v35, %v6288_v48  ;;  %v1888_v48 = vadd.f32 %v1855_v14, %v6236_v46 }
 0x2b1   : > { %3797 = vmatprep.subr.bf16.mxu1 %v4461_v4  ;;  %v4148_v47 = vpop.eup %4147  ;;  %v6417_v10 = vmul.f32 %v4146_v42, %v6293_v57  ;;  %4167 = vpow2.f32 %v3364_v61  ;;  %v1996_v61 = vmul.f32 %v5076_v19, %v7167_v2  ;;  %v1955_v44 = vadd.f32 %v1923_v20, %v1887_v56  ;;  %v7168_v42 = vld [vmem:[#allocation23_spill] sm:$0xff] }
 0x2b2   : > { %v4150_v28 = vpop.eup %4149  ;;  %v2331_v23 = vadd.f32 %v2330_v25, %v6407_v43  ;;  %4169 = vrcp.f32 %v2214_v15  ;;  %v2216_v34 = vadd.f32 1.0, %v4148_v47  ;;  %v2063_v15 = vmul.f32 %v7138_v17, %v7168_v42 }
 0x2b3   : > { %v4152_v11 = vpop.eup %4151  ;;  %4171 = vrcp.f32 %v2213_v51  ;;  %v6432_v35 = vmul.f32 %v4150_v28, %v6297_v41  ;;  %v6442_v19 = vadd.f32 %v7145_v63, %v2062_v0  ;;  %v1956_v47 = vadd.f32 %v1923_v20, %v1888_v48 }
 0x2b4   : > { %3799 = vmatpush3.bf16.msra.mxu1 %v3798_v59  ;;  %v4154_v8 = vpop.eup %4153  ;;  %v2332_v57 = vadd.f32 %v2331_v23, %v6414_v7  ;;  %v6435_v6 = vmul.f32 %v4152_v11, %v6305_v26  ;;  %4173 = vpow2.f32 %v3365_v3  ;;  %v3366_v59 = vmul.f32 -1.442695, %v6421_v27 }
 0x2b5   : > { %3800 = vmatprep.subr.bf16.mxu1 %v4461_v4  ;;  %v4156_v31 = vpop.eup %4155  ;;  %v2218_v25 = vadd.f32 1.0, %v4154_v8  ;;  %4175 = vrcp.f32 %v2215_v21  ;;  %v2064_v26 = vmul.f32 %v7138_v17, %v6257_v12  ;;  %v2028_v23 = vadd.f32 %v1996_v61, %v1955_v44 }
 0x2b6   : > { %v4158_v32 = vpop.eup %4157  ;;  %v2333_v46 = vadd.f32 %v2332_v57, %v6417_v10  ;;  %4177 = vrcp.f32 %v2216_v34  ;;  %v2217_v28 = vadd.f32 1.0, %v4156_v31  ;;  %v3367_v20 = vmul.f32 -1.442695, %v6442_v19 }
 0x2b7   : > { %v4160_v14 = vpop.eup %4159  ;;  %v6448_v11 = vmul.f32 %v4158_v32, %v6314_v55  ;;  %4179 = vpow2.f32 %v3366_v59  ;;  %v2065_v8 = vmul.f32 %v7138_v17, %v6262_v16  ;;  %v2029_v21 = vadd.f32 %v1996_v61, %v1956_v47 }
 0x2b8   : > { %v2334_v41 = vadd.f32 %v2333_v46, %v6432_v35  ;;  %v4162_v51 = vpop.eup %4161  ;;  %v6451_v3 = vmul.f32 %v4160_v14, %v6320_v50  ;;  %4181 = vrcp.f32 %v2218_v25  ;;  %v6459_v48 = vadd.f32 %v7145_v63, %v2063_v15 }
 0x2b9   : > { %v4164_v56 = vpop.eup %4163  ;;  %v6462_v50 = vadd.f32 %v7145_v63, %v2064_v26  ;;  %4183 = vrcp.f32 %v2217_v28  ;;  %v2066_v34 = vmul.f32 %v7138_v17, %v2028_v23  ;;  %v6469_v16 = vmul.f32 %v4162_v51, %v6309_v45 }
 0x2ba   : > { %v2335_v33 = vadd.f32 %v2334_v41, %v6435_v6  ;;  %v4166_v0 = vpop.eup %4165  ;;  %v2219_v57 = vadd.f32 1.0, %v4164_v56  ;;  %v2221_v44 = vadd.f32 1.0, %v6329_v9  ;;  %4185 = vpow2.f32 %v3367_v20 }
 0x2bb   : > { %v4168_v55 = vpop.eup %4167  ;;  %v6466_v2 = vmul.f32 %v4166_v0, %v6338_v58  ;;  %v2067_v14 = vmul.f32 %v7138_v17, %v2029_v21  ;;  %v6476_v59 = vadd.f32 %v7145_v63, %v2065_v8  ;;  %v3368_v42 = vmul.f32 -1.442695, %v6459_v48 }
 0x2bc   : > { %v2336_v12 = vadd.f32 %v2335_v33, %v6448_v11  ;;  %v4170_v31 = vpop.eup %4169  ;;  %v3369_v15 = vmul.f32 -1.442695, %v6462_v50  ;;  %4187 = vrcp.f32 %v2219_v57  ;;  %v6488_v17 = vadd.f32 %v7145_v63, %v2066_v34 }
 0x2bd   : > { %v4172_v32 = vpop.eup %4171  ;;  %v6481_v25 = vmul.f32 %v4170_v31, %v6325_v18  ;;  %4189 = vrcp.f32 %v2221_v44  ;;  %v2222_v51 = vadd.f32 1.0, %v6342_v29  ;;  %v6493_v28 = vadd.f32 %v7145_v63, %v2067_v14 }
 0x2be   : > { %v2337_v61 = vadd.f32 %v2336_v12, %v6451_v3  ;;  %v4174_v58 = vpop.eup %4173  ;;  %v6484_v9 = vmul.f32 %v4172_v32, %v6346_v53  ;;  %4191 = vpow2.f32 %v3368_v42  ;;  %v3370_v18 = vmul.f32 -1.442695, %v6476_v59  ;;  %v7169_v42 = vld [vmem:[#allocation67_spill] sm:$0xff] }
 0x2bf   : > { %v4176_v45 = vpop.eup %4175  ;;  %v2223_v53 = vadd.f32 1.0, %v6350_v22  ;;  %4193 = vpow2.f32 %v3369_v15  ;;  %v3371_v20 = vmul.f32 -1.442695, %v6488_v17  ;;  %v2224_v8 = vadd.f32 1.0, %v6355_v13 }
 0x2c0   : > { %v2338_v46 = vadd.f32 %v2337_v61, %v6466_v2  ;;  %v4178_v41 = vpop.eup %4177  ;;  %v6501_v0 = vmul.f32 %v4176_v45, %v6332_v49  ;;  %4195 = vrcp.f32 %v2222_v51  ;;  %v3372_v22 = vmul.f32 -1.442695, %v6493_v28 }
 0x2c1   : > { %v4180_v56 = vpop.eup %4179  ;;  %v6498_v33 = vmul.f32 %v4178_v41, %v6364_v37  ;;  %4197 = vpow2.f32 %v3370_v18  ;;  %v2225_v37 = vadd.f32 1.0, %v4168_v55  ;;  %v2226_v13 = vadd.f32 1.0, %v4174_v58 }
 0x2c2   : > { %v2339_v47 = vadd.f32 %v2338_v46, %v6469_v16  ;;  %v4182_v23 = vpop.eup %4181  ;;  %4199 = vrcp.f32 %v2223_v53  ;;  %v2227_v44 = vadd.f32 1.0, %v4180_v56  ;;  %v6522_v15 = vmul.f32 %v6335_v62, %v7169_v42 }
 0x2c3   : > { %v4184_v63 = vpop.eup %4183  ;;  %v6512_v49 = vmul.f32 %v4182_v23, %v6370_v24  ;;  %4201 = vpow2.f32 %v3371_v20 }
 0x2c4   : > { %v2340_v26 = vadd.f32 %v2339_v47, %v6484_v9  ;;  %v4186_v21 = vpop.eup %4185  ;;  %v6509_v57 = vmul.f32 %v4184_v63, %v6374_v60  ;;  %4203 = vrcp.f32 %v2224_v8 }
 0x2c5   : > { %4205 = vpow2.f32 %v3372_v22  ;;  %v2228_v14 = vadd.f32 1.0, %v4186_v21 }
 0x2c6   : > { %v2341_v29 = vadd.f32 %v2340_v26, %v6481_v25  ;;  %v4188_v34 = vpop.eup %4187  ;;  %4207 = vrcp.f32 %v2225_v37 }
 0x2c7   : > { %v4190_v32 = vpop.eup %4189  ;;  %v6517_v55 = vmul.f32 %v4188_v34, %v6384_v40  ;;  %4209 = vrcp.f32 %v2226_v13 }
 0x2c8   : > { %v2342_v12 = vadd.f32 %v2341_v29, %v6501_v0  ;;  %v4192_v46 = vpop.eup %4191  ;;  %4211 = vrcp.f32 %v2227_v44  ;;  %v6526_v51 = vmul.f32 %v4190_v32, %v6219_v36 }
 0x2c9   : > { %v4194_v24 = vpop.eup %4193  ;;  %v2229_v47 = vadd.f32 1.0, %v4192_v46  ;;  %4213 = vrcp.f32 %v2228_v14 }
 0x2ca   : > { %v2343_v31 = vadd.f32 %v2342_v12, %v6498_v33  ;;  %v4196_v45 = vpop.eup %4195  ;;  %v2230_v18 = vadd.f32 1.0, %v4194_v24 }
 0x2cb   : > { %v4198_v41 = vpop.eup %4197  ;;  %v6530_v53 = vmul.f32 %v4196_v45, %v6230_v52  ;;  %4215 = vrcp.f32 %v2229_v47 }
 0x2cc   : > { %v2344_v61 = vadd.f32 %v2343_v31, %v6509_v57  ;;  %v4200_v26 = vpop.eup %4199  ;;  %v2231_v29 = vadd.f32 1.0, %v4198_v41  ;;  %4217 = vrcp.f32 %v2230_v18 }
 0x2cd   : > { %v4202_v56 = vpop.eup %4201  ;;  %v6534_v63 = vmul.f32 %v4200_v26, %v6247_v39 }
 0x2ce   : > { %v2345_v60 = vadd.f32 %v2344_v61, %v6512_v49  ;;  %v4204_v23 = vpop.eup %4203  ;;  %v2232_v12 = vadd.f32 1.0, %v4202_v56  ;;  %4219 = vrcp.f32 %v2231_v29 }
 0x2cf   : > { %v4206_v20 = vpop.eup %4205  ;;  %v6538_v22 = vmul.f32 %v4204_v23, %v6253_v5 }
 0x2d0   : > { %v2346_v58 = vadd.f32 %v2345_v60, %v6517_v55  ;;  %v4208_v8 = vpop.eup %4207  ;;  %v2233_v37 = vadd.f32 1.0, %v4206_v20  ;;  %4221 = vrcp.f32 %v2232_v12 }
 0x2d1   : > { %v4210_v21 = vpop.eup %4209  ;;  %v6542_v31 = vmul.f32 %v4208_v8, %v6388_v1  ;;  %v2496_v8 = vld [vmem:[#allocation10 + $0x8] sm:$0xff] }
 0x2d2   : > { %v2347_v40 = vadd.f32 %v2346_v58, %v6522_v15  ;;  %v4212_v39 = vpop.eup %4211  ;;  %v6546_v13 = vmul.f32 %v4210_v21, %v6404_v30  ;;  %4223 = vrcp.f32 %v2233_v37  ;;  %v2499_v37 = vld [vmem:[#allocation10 + $0x20] sm:$0xff] }
 0x2d3   : > { %v4214_v32 = vpop.eup %4213  ;;  %v6550_v5 = vmul.f32 %v4212_v39, %v6421_v27 }
 0x2d4   : > { %v2348_v62 = vadd.f32 %v2347_v40, %v6526_v51  ;;  %v6554_v1 = vmul.f32 %v4214_v32, %v6442_v19 }
 0x2d5   : > { %v4216_v46 = vpop.eup %4215 }
 0x2d6   : > { %v2349_v36 = vadd.f32 %v2348_v62, %v6530_v53  ;;  %v4218_v24 = vpop.eup %4217  ;;  %v6558_v14 = vmul.f32 %v4216_v46, %v6459_v48  ;;  %v2504_v46 = vld [vmem:[#allocation10 + $0x48] sm:$0xff] }
 0x2d7   : > { %v6562_v58 = vmul.f32 %v4218_v24, %v6462_v50  ;;  %v2505_v24 = vld [vmem:[#allocation10 + $0x50] sm:$0xff] }
 0x2d8   : > { %v2350_v52 = vadd.f32 %v2349_v36, %v6534_v63  ;;  %v4220_v42 = vpop.eup %4219 }
 0x2d9   : > { %v6566_v47 = vmul.f32 %v4220_v42, %v6476_v59 }
 0x2da   : > { %v2351_v34 = vadd.f32 %v2350_v52, %v6538_v22  ;;  %v4222_v45 = vpop.eup %4221  ;;  %v2498_v52 = vld [vmem:[#allocation10 + $0x18] sm:$0xff] }
 0x2db   : > { %v6570_v40 = vmul.f32 %v4222_v45, %v6488_v17  ;;  %v2495_v17 = vld [vmem:[#allocation10] sm:$0xff]  ;;  %v2508_v45 = vld [vmem:[#allocation10 + $0x68] sm:$0xff] }
 0x2dc   : > { %v2352_v61 = vadd.f32 %v2351_v34, %v6542_v31  ;;  %v4224_v41 = vpop.eup %4223  ;;  %v3801_v12 = vpack.c.bf16 %v2496_v8, %v2495_v17  ;;  %v2500_v34 = vld [vmem:[#allocation10 + $0x28] sm:$0xff]  ;;  %v4463_v8 = vmov 0  }
 0x2dd   : > { %v6574_v26 = vmul.f32 %v4224_v41, %v6493_v28  ;;  %v2497_v28 = vld [vmem:[#allocation10 + $0x10] sm:$0xff]  ;;  %v3807_v39 = vpack.c.bf16 %v2500_v34, %v2499_v37  ;;  %3968 = vset.pattern.permute.xlu1 %v4463_v8 }
 0x2de   : > { %v2353_v44 = vadd.f32 %v2352_v61, %v6546_v13  ;;  %v3804_v21 = vpack.c.bf16 %v2498_v52, %v2497_v28  ;;  %v2501_v61 = vld [vmem:[#allocation10 + $0x30] sm:$0xff] }
 0x2df   : > { %v2509_v41 = vld [vmem:[#allocation10 + $0x70] sm:$0xff] }
 0x2e0   : > { %v2354_v60 = vadd.f32 %v2353_v44, %v6550_v5  ;;  %v2503_v44 = vld [vmem:[#allocation10 + $0x40] sm:$0xff] }
 0x2e2   : > { %v2355_v30 = vadd.f32 %v2354_v60, %v6554_v1  ;;  %v3813_v60 = vpack.c.bf16 %v2504_v46, %v2503_v44 }
 0x2e4   : > { %v2356_v27 = vadd.f32 %v2355_v30, %v6558_v14  ;;  %v2506_v30 = vld [vmem:[#allocation10 + $0x58] sm:$0xff] }
 0x2e5   : > { %v3816_v42 = vpack.c.bf16 %v2506_v30, %v2505_v24 }
 0x2e6   : > { %v2357_v19 = vadd.f32 %v2356_v27, %v6562_v58  ;;  %v2507_v27 = vld [vmem:[#allocation10 + $0x60] sm:$0xff] }
 0x2e8   : > { %v2358_v48 = vadd.f32 %v2357_v19, %v6566_v47  ;;  %v3819_v19 = vpack.c.bf16 %v2508_v45, %v2507_v27 }
 0x2ea   : > { %v2359_v50 = vadd.f32 %v2358_v48, %v6570_v40  ;;  %v2510_v48 = vld [vmem:[#allocation10 + $0x78] sm:$0xff] }
 0x2ec   : > { %v2360_v18 = vadd.f32 %v2359_v50, %v6574_v26  ;;  %v3822_v50 = vpack.c.bf16 %v2510_v48, %v2509_v41 }
 0x2ee   : > { %v2361_v56 = vrot.slane %v2360_v18, 4 }
 0x2f0   : > { %v2362_v62 = vadd.f32 %v2361_v56, %v2360_v18  ;;  %v2417_v18 = vld [vmem:[%s7170_s10] sm:$0x1] }
 0x2f2   : > { %v2363_v23 = vrot.slane %v2362_v62, 2 }
 0x2f4   : > { %v2364_v59 = vadd.f32 %v2363_v23, %v2362_v62 }
 0x2f6   : > { %v2365_v29 = vrot.slane %v2364_v59, 1 }
 0x2f8   : > { %v2366_v20 = vadd.f32 %v2365_v29, %v2364_v59 }
 0x2fa   : > { %v2400_v36 = vmul.f32 0.00390625, %v2366_v20 }
 0x2fc   : > { %3627 = vmatmul.mubr.f32.vlgmr.msra.gmra.mrb[16].mxu1 %v2400_v36 }
 0x2fd   : > { %3661 = vmatprep.mubr.msk.f32.mxu1 %vm4462_vm2, %v7162_v54  ;;  %3802 = vmatpush3.bf16.msra.mxu1 %v3801_v12  ;;  %v2502_v54 = vld [vmem:[#allocation10 + $0x38] sm:$0xff] }
 0x2fe   : > { %3803 = vmatprep.subr.bf16.mxu1 %v4461_v4  ;;  %v3810_v32 = vpack.c.bf16 %v2502_v54, %v2501_v61 }
 0x301   : > { %3805 = vmatpush3.bf16.msra.mxu1 %v3804_v21 }
 0x302   : > { %3806 = vmatprep.subr.bf16.mxu1 %v4461_v4 }
 0x305   : > { %3808 = vmatpush3.bf16.msra.mxu1 %v3807_v39 }
 0x306   : > { %3809 = vmatprep.subr.bf16.mxu1 %v4461_v4 }
 0x309   : > { %3811 = vmatpush3.bf16.msra.mxu1 %v3810_v32 }
 0x30a   : > { %3812 = vmatprep.subr.bf16.mxu1 %v4461_v4 }
 0x30d   : > { %3814 = vmatpush3.bf16.msra.mxu1 %v3813_v60 }
 0x30e   : > { %3815 = vmatprep.subr.bf16.mxu1 %v4461_v4 }
 0x311   : > { %3817 = vmatpush3.bf16.msra.mxu1 %v3816_v42 }
 0x312   : > { %3818 = vmatprep.subr.bf16.mxu1 %v4461_v4 }
 0x315   : > { %3820 = vmatpush3.bf16.msra.mxu1 %v3819_v19 }
 0x316   : > { %3821 = vmatprep.subr.bf16.mxu1 %v4461_v4  ;;  %v2511_v4 = vld [vmem:[%s7171_s19] sm:$0x1]  ;;  %s6769_s19 = scalar_lea.hbm %s7174_s28, %s3383_s27 }
 0x319   : > { %3823 = vmatpush3.bf16.msra.mxu1 %v3822_v50 }
 0x3cf   : > { %v2484_v56 = vpop.f32.mrb[16].mxu1 }
 0x3d0   : > { %v2485_v62 = vadd.f32 %v2484_v56, %v2417_v18  ;;  %v3628_v23 = vpop.f32.mrb[17].mxu1  ;;  %v2620_v56 = vld [vmem:[#allocation12] sm:$0xff] }
 0x3d1   : > { %v2621_v23 = vld [vmem:[#allocation12 + $0x8] sm:$0xff] }
 0x3d2   : > { %v3373_v59 = vmul.f32 -1.442695, %v2485_v62 }
 0x3d4   : > { %4225 = vpow2.f32 %v3373_v59 }
 0x3de   : > { %v4226_v29 = vpop.eup %4225 }
 0x3df   : > { %v2491_v20 = vadd.f32 1.0, %v4226_v29 }
 0x3e1   : > { %4227 = vrcp.f32 %v2491_v20 }
 0x3eb   : > { %v4228_v36 = vpop.eup %4227 }
 0x3ec   : > { %v2494_v17 = vmul.f32 %v4228_v36, %v2485_v62 }
 0x3ee   : > { %3662 = vmatmul.mubr.f32.vlgmr.msra.gmra.mrb[18].mxu1 %v2494_v17 }
 0x4c1   : > { %v2578_v12 = vpop.f32.mrb[18].mxu1 }
 0x4c2   : > { %v2579_v28 = vadd.f32 %v2578_v12, %v2511_v4  ;;  %v3663_v52 = vpop.f32.mrb[19].mxu1  ;;  %v2623_v4 = vld [vmem:[#allocation12 + $0x18] sm:$0xff] }
 0x4c4   : > { %v3374_v21 = vmul.f32 -1.442695, %v2579_v28 }
 0x4c6   : > { %4229 = vpow2.f32 %v3374_v21 }
 0x4d0   : > { %v4230_v37 = vpop.eup %4229 }
 0x4d1   : > { %v2585_v34 = vadd.f32 1.0, %v4230_v37 }
 0x4d3   : > { %4231 = vrcp.f32 %v2585_v34  ;;  %v2624_v34 = vld [vmem:[#allocation12 + $0x20] sm:$0xff] }
 0x4dd   : > { %v4232_v39 = vpop.eup %4231 }
 0x4de   : > { %2588 = vxpose.xlu0.b32.start.end [1/1] (short) %v4232_v39, 128  ;;  %v2625_v39 = vld [vmem:[#allocation12 + $0x28] sm:$0xff] }
 0x507   : > { %3967 = vset.pattern.permute.xlu0 %v4463_v8  ;;  %v2622_v8 = vld [vmem:[#allocation12 + $0x10] sm:$0xff] }
 0x55e   : > { %v2604_v61 = vpop.trf.xlu0 }
 0x55f   : > { %2638 = vperm.xlu0 %3967, %v2604_v61  }
 0x562   : > { %v2605_v54 = vpop.trf.xlu0 }
 0x563   : > { %2643 = vperm.xlu1 %3968, %v2605_v54  }
 0x566   : > { %v2606_v32 = vpop.trf.xlu0 }
 0x567   : > { %2648 = vperm.xlu1 %3968, %v2606_v32  }
 0x56a   : > { %v2607_v44 = vpop.trf.xlu0 }
 0x56b   : > { %2653 = vperm.xlu1 %3968, %v2607_v44  }
 0x56e   : > { %v2608_v46 = vpop.trf.xlu0 }
 0x56f   : > { %2658 = vperm.xlu1 %3968, %v2608_v46  }
 0x572   : > { %v2609_v60 = vpop.trf.xlu0 }
 0x573   : > { %2663 = vperm.xlu1 %3968, %v2609_v60   ;;  %v2626_v60 = vld [vmem:[#allocation12 + $0x30] sm:$0xff] }
 0x576   : > { %v2610_v24 = vpop.trf.xlu0 }
 0x577   : > { %2668 = vperm.xlu1 %3968, %v2610_v24   ;;  %v2627_v24 = vld [vmem:[#allocation12 + $0x38] sm:$0xff] }
 0x57a   : > { %v2611_v30 = vpop.trf.xlu0 }
 0x57b   : > { %2673 = vperm.xlu1 %3968, %v2611_v30  }
 0x57e   : > { %v2612_v42 = vpop.trf.xlu0 }
 0x57f   : > { %2678 = vperm.xlu1 %3968, %v2612_v42  }
 0x582   : > { %v2613_v27 = vpop.trf.xlu0 }
 0x583   : > { %2683 = vperm.xlu1 %3968, %v2613_v27  }
 0x586   : > { %v2614_v45 = vpop.trf.xlu0 }
 0x587   : > { %2688 = vperm.xlu1 %3968, %v2614_v45  }
 0x58a   : > { %v2615_v19 = vpop.trf.xlu0 }
 0x58b   : > { %2693 = vperm.xlu1 %3968, %v2615_v19  }
 0x58e   : > { %v2616_v41 = vpop.trf.xlu0 }
 0x58f   : > { %2698 = vperm.xlu1 %3968, %v2616_v41   ;;  %v2628_v41 = vld [vmem:[#allocation12 + $0x40] sm:$0xff] }
 0x592   : > { %v2617_v48 = vpop.trf.xlu0 }
 0x593   : > { %2703 = vperm.xlu1 %3968, %v2617_v48   ;;  %v2629_v48 = vld [vmem:[#allocation12 + $0x48] sm:$0xff] }
 0x596   : > { %v2618_v50 = vpop.trf.xlu0 }
 0x597   : > { %2708 = vperm.xlu1 %3968, %v2618_v50  }
 0x59a   : > { %v2619_v18 = vpop.trf.xlu0 }
 0x59b   : > { %2713 = vperm.xlu1 %3968, %v2619_v18  }
 0x5de   : > { %v2639_v62 = vpop.permute.xlu0 %2638 }
 0x5df   : > { %v2716_v29 = vmul.f32 %v2639_v62, %v2620_v56 }
 0x5e2   : > { %v2644_v59 = vpop.permute.xlu1 %2643 }
 0x5e3   : > { %v2717_v20 = vmul.f32 %v2644_v59, %v2621_v23  ;;  %v2630_v59 = vld [vmem:[#allocation12 + $0x50] sm:$0xff] }
 0x5e5   : > { %v3824_v36 = vpack.c.bf16 %v2717_v20, %v2716_v29  ;;  %v2631_v29 = vld [vmem:[#allocation12 + $0x58] sm:$0xff] }
 0x5e6   : > { %v2649_v17 = vpop.permute.xlu1 %2648 }
 0x5e7   : > { %3825 = vmatprep.subr.bf16.mxu0 %v3824_v36  ;;  %v2718_v28 = vmul.f32 %v2649_v17, %v2622_v8 }
 0x5e8   : > { %3827 = vmatpush3.bf16.msra.mxu0 %v3824_v36 }
 0x5ea   : > { %v2654_v12 = vpop.permute.xlu1 %2653 }
 0x5eb   : > { %v2719_v52 = vmul.f32 %v2654_v12, %v2623_v4  ;;  %v2632_v12 = vld [vmem:[#allocation12 + $0x60] sm:$0xff] }
 0x5ed   : > { %v3828_v21 = vpack.c.bf16 %v2719_v52, %v2718_v28  ;;  %v2633_v28 = vld [vmem:[#allocation12 + $0x68] sm:$0xff] }
 0x5ee   : > { %v2659_v37 = vpop.permute.xlu1 %2658 }
 0x5ef   : > { %3829 = vmatprep.subr.bf16.mxu0 %v3828_v21  ;;  %v2720_v54 = vmul.f32 %v2659_v37, %v2624_v34 }
 0x5f0   : > { %3831 = vmatpush3.bf16.msra.mxu0 %v3828_v21 }
 0x5f2   : > { %v2664_v61 = vpop.permute.xlu1 %2663 }
 0x5f3   : > { %v2721_v32 = vmul.f32 %v2664_v61, %v2625_v39  ;;  %v2634_v61 = vld [vmem:[#allocation12 + $0x70] sm:$0xff] }
 0x5f5   : > { %v3832_v44 = vpack.c.bf16 %v2721_v32, %v2720_v54  ;;  %v2635_v54 = vld [vmem:[#allocation12 + $0x78] sm:$0xff] }
 0x5f6   : > { %v2669_v46 = vpop.permute.xlu1 %2668 }
 0x5f7   : > { %3833 = vmatprep.subr.bf16.mxu0 %v3832_v44  ;;  %v2722_v42 = vmul.f32 %v2669_v46, %v2626_v60 }
 0x5f8   : > { %3835 = vmatpush3.bf16.msra.mxu0 %v3832_v44 }
 0x5fa   : > { %v2674_v30 = vpop.permute.xlu1 %2673 }
 0x5fb   : > { %v2723_v27 = vmul.f32 %v2674_v30, %v2627_v24 }
 0x5fd   : > { %v3836_v45 = vpack.c.bf16 %v2723_v27, %v2722_v42 }
 0x5fe   : > { %v2679_v19 = vpop.permute.xlu1 %2678 }
 0x5ff   : > { %3837 = vmatprep.subr.bf16.mxu0 %v3836_v45  ;;  %v2724_v18 = vmul.f32 %v2679_v19, %v2628_v41 }
 0x600   : > { %3839 = vmatpush3.bf16.msra.mxu0 %v3836_v45  ;;  %v3074_v45 = vld [vmem:[%s4774_s6 + $0x38] sm:$0xff] }
 0x602   : > { %v2684_v50 = vpop.permute.xlu1 %2683 }
 0x603   : > { %v2725_v56 = vmul.f32 %v2684_v50, %v2629_v48  ;;  %v3073_v48 = vld [vmem:[%s4774_s6 + $0x30] sm:$0xff] }
 0x605   : > { %v3840_v62 = vpack.c.bf16 %v2725_v56, %v2724_v18 }
 0x606   : > { %v2689_v23 = vpop.permute.xlu1 %2688 }
 0x607   : > { %3841 = vmatprep.subr.bf16.mxu0 %v3840_v62  ;;  %v2726_v36 = vmul.f32 %v2689_v23, %v2630_v59 }
 0x608   : > { %3843 = vmatpush3.bf16.msra.mxu0 %v3840_v62 }
 0x60a   : > { %v2694_v20 = vpop.permute.xlu1 %2693 }
 0x60b   : > { %v2727_v17 = vmul.f32 %v2694_v20, %v2631_v29  ;;  %v3076_v29 = vld [vmem:[%s4774_s6 + $0x48] sm:$0xff] }
 0x60d   : > { %v3844_v8 = vpack.c.bf16 %v2727_v17, %v2726_v36  ;;  %v3075_v17 = vld [vmem:[%s4774_s6 + $0x40] sm:$0xff] }
 0x60e   : > { %v2699_v4 = vpop.permute.xlu1 %2698 }
 0x60f   : > { %3845 = vmatprep.subr.bf16.mxu0 %v3844_v8  ;;  %v2728_v21 = vmul.f32 %v2699_v4, %v2632_v12 }
 0x610   : > { %3847 = vmatpush3.bf16.msra.mxu0 %v3844_v8 }
 0x612   : > { %v2704_v52 = vpop.permute.xlu1 %2703 }
 0x613   : > { %v2729_v37 = vmul.f32 %v2704_v52, %v2633_v28 }
 0x615   : > { %v3848_v34 = vpack.c.bf16 %v2729_v37, %v2728_v21  ;;  %v3078_v37 = vld [vmem:[%s4774_s6 + $0x58] sm:$0xff] }
 0x616   : > { %v2709_v39 = vpop.permute.xlu1 %2708 }
 0x617   : > { %3849 = vmatprep.subr.bf16.mxu0 %v3848_v34  ;;  %v2730_v44 = vmul.f32 %v2709_v39, %v2634_v61  ;;  %v3077_v61 = vld [vmem:[%s4774_s6 + $0x50] sm:$0xff] }
 0x618   : > { %3851 = vmatpush3.bf16.msra.mxu0 %v3848_v34 }
 0x61a   : > { %v2714_v32 = vpop.permute.xlu1 %2713 }
 0x61b   : > { %v2731_v46 = vmul.f32 %v2714_v32, %v2635_v54 }
 0x61d   : > { %v3852_v60 = vpack.c.bf16 %v2731_v46, %v2730_v44 }
 0x61f   : > { %3853 = vmatprep.subr.bf16.mxu0 %v3852_v60 }
 0x620   : > { %3855 = vmatpush3.bf16.msra.mxu0 %v3852_v60 }
 0x623   : > { %3697 = vmatmul.mubr.f32.vlgmr.msra.gmra.mrb[16].mxu0 %v6401_v38  ;;  %v6627_v38 = vld [vmem:[%s7172_s20] ss:$0 sm:$0xff] }
 0x624   : > { %3699 = vmatprep.mubr.f32.mxu0 %v6407_v43  ;;  %v6632_v43 = vld [vmem:[%s7173_s24] ss:$0 sm:$0xff] }
 0x627   : > { %3700 = vmatmul.mubr.f32.gmra.mrb[18].mxu0 %v6414_v7 }
 0x628   : > { %3702 = vmatprep.mubr.f32.mxu0 %v6417_v10 }
 0x62b   : > { %3703 = vmatmul.mubr.f32.gmra.mrb[20].mxu0 %v6432_v35 }
 0x62c   : > { %3705 = vmatprep.mubr.f32.mxu0 %v6435_v6  ;;  %v3068_v6 = vld [vmem:[%s4774_s6 + $0x8] sm:$0xff] }
 0x62f   : > { %3706 = vmatmul.mubr.f32.gmra.mrb[22].mxu0 %v6448_v11 }
 0x630   : > { %3708 = vmatprep.mubr.f32.mxu0 %v6451_v3 }
 0x633   : > { %3709 = vmatmul.mubr.f32.gmra.mrb[24].mxu0 %v6466_v2  ;;  %v3067_v2 = vld [vmem:[%s4774_s6] sm:$0xff] }
 0x634   : > { %3711 = vmatprep.mubr.f32.mxu0 %v6469_v16 }
 0x637   : > { %3712 = vmatmul.mubr.f32.gmra.mrb[26].mxu0 %v6484_v9 }
 0x638   : > { %3714 = vmatprep.mubr.f32.mxu0 %v6481_v25 }
 0x63b   : > { %3715 = vmatmul.mubr.f32.gmra.mrb[28].mxu0 %v6501_v0 }
 0x63c   : > { %3717 = vmatprep.mubr.f32.mxu0 %v6498_v33 }
 0x63f   : > { %3718 = vmatmul.mubr.f32.gmra.mrb[30].mxu0 %v6509_v57 }
 0x640   : > { %3720 = vmatprep.mubr.f32.mxu0 %v6512_v49  ;;  %v3070_v49 = vld [vmem:[%s4774_s6 + $0x18] sm:$0xff] }
 0x643   : > { %3721 = vmatmul.mubr.f32.gmra.mrb[32].mxu0 %v6517_v55 }
 0x644   : > { %3723 = vmatprep.mubr.f32.mxu0 %v6522_v15 }
 0x647   : > { %3724 = vmatmul.mubr.f32.gmra.mrb[34].mxu0 %v6526_v51  ;;  %v3069_v51 = vld [vmem:[%s4774_s6 + $0x10] sm:$0xff] }
 0x648   : > { %3726 = vmatprep.mubr.f32.mxu0 %v6530_v53 }
 0x64b   : > { %3727 = vmatmul.mubr.f32.gmra.mrb[36].mxu0 %v6534_v63 }
 0x64c   : > { %3729 = vmatprep.mubr.f32.mxu0 %v6538_v22 }
 0x64f   : > { %3730 = vmatmul.mubr.f32.gmra.mrb[38].mxu0 %v6542_v31 }
 0x650   : > { %3732 = vmatprep.mubr.f32.mxu0 %v6546_v13 }
 0x653   : > { %3733 = vmatmul.mubr.f32.gmra.mrb[40].mxu0 %v6550_v5 }
 0x654   : > { %3735 = vmatprep.mubr.f32.mxu0 %v6554_v1  ;;  %v3072_v1 = vld [vmem:[%s4774_s6 + $0x28] sm:$0xff] }
 0x657   : > { %3736 = vmatmul.mubr.f32.gmra.mrb[42].mxu0 %v6558_v14 }
 0x658   : > { %3738 = vmatprep.mubr.f32.mxu0 %v6562_v58 }
 0x65b   : > { %3739 = vmatmul.mubr.f32.gmra.mrb[44].mxu0 %v6566_v47  ;;  %v3071_v47 = vld [vmem:[%s4774_s6 + $0x20] sm:$0xff] }
 0x65c   : > { %3741 = vmatprep.mubr.f32.mxu0 %v6570_v40 }
 0x65f   : > { %3742 = vmatmul.mubr.f32.gmra.mrb[46].mxu0 %v6574_v26 }
 0x6f6   : > { %v3698_v7 = vpop.f32.mrb[16].mxu0 }
 0x6f7   : > { %v2998_v10 = vmul.f32 %v3698_v7, %v6627_v38  ;;  %v2832_v35 = vpop.f32.mrb[17].mxu0 }
 0x6f8   : > { %v2997_v11 = vmul.f32 %v6627_v38, %v2832_v35 }
 0x6f9   : > { %v3036_v3 = vadd.f32 %v6632_v43, %v2998_v10  ;;  %v3080_v10 = vld [vmem:[%s4774_s6 + $0x68] sm:$0xff] }
 0x6fa   : > { %v3035_v16 = vadd.f32 %v6632_v43, %v2997_v11  ;;  %v3701_v25 = vpop.f32.mrb[18].mxu0  ;;  %v3079_v11 = vld [vmem:[%s4774_s6 + $0x60] sm:$0xff] }
 0x6fb   : > { %v3100_v9 = vadd.f32 %v3068_v6, %v3036_v3  ;;  %v3000_v33 = vmul.f32 %v3701_v25, %v6627_v38  ;;  %v2842_v0 = vpop.f32.mrb[19].mxu0 }
 0x6fc   : > { %v3099_v57 = vadd.f32 %v3067_v2, %v3035_v16  ;;  %v2999_v55 = vmul.f32 %v6627_v38, %v2842_v0  ;;  %v3082_v0 = vld [vmem:[%s4774_s6 + $0x78] sm:$0xff] }
 0x6fd   : > { %3132 = vst [vmem:[%s6645_s22 + $0x8] sm:$0xff] %v3100_v9  ;;  %v3038_v15 = vadd.f32 %v6632_v43, %v3000_v33 }
 0x6fe   : > { %3131 = vst [vmem:[%s6645_s22] sm:$0xff] %v3099_v57  ;;  %v3037_v53 = vadd.f32 %v6632_v43, %v2999_v55  ;;  %v3704_v63 = vpop.f32.mrb[20].mxu0  ;;  %v3081_v55 = vld [vmem:[%s4774_s6 + $0x70] sm:$0xff] }
 0x6ff   : > { %v3102_v22 = vadd.f32 %v3070_v49, %v3038_v15  ;;  %v3002_v31 = vmul.f32 %v3704_v63, %v6627_v38  ;;  %v2852_v13 = vpop.f32.mrb[21].mxu0 }
 0x700   : > { %v3101_v5 = vadd.f32 %v3069_v51, %v3037_v53  ;;  %v3001_v14 = vmul.f32 %v6627_v38, %v2852_v13  ;;  %v3084_v13 = vld [vmem:[%s4774_s6 + $0x88] sm:$0xff] }
 0x701   : > { %3134 = vst [vmem:[%s6645_s22 + $0x18] sm:$0xff] %v3102_v22  ;;  %v3040_v58 = vadd.f32 %v6632_v43, %v3002_v31 }
 0x702   : > { %3133 = vst [vmem:[%s6645_s22 + $0x10] sm:$0xff] %v3101_v5  ;;  %v3039_v40 = vadd.f32 %v6632_v43, %v3001_v14  ;;  %v3707_v26 = vpop.f32.mrb[22].mxu0  ;;  %v3083_v14 = vld [vmem:[%s4774_s6 + $0x80] sm:$0xff] }
 0x703   : > { %v3104_v24 = vadd.f32 %v3072_v1, %v3040_v58  ;;  %v3004_v30 = vmul.f32 %v3707_v26, %v6627_v38  ;;  %v2862_v42 = vpop.f32.mrb[23].mxu0 }
 0x704   : > { %v3103_v27 = vadd.f32 %v3071_v47, %v3039_v40  ;;  %v3003_v19 = vmul.f32 %v6627_v38, %v2862_v42  ;;  %v3086_v42 = vld [vmem:[%s4774_s6 + $0x98] sm:$0xff] }
 0x705   : > { %3136 = vst [vmem:[%s6645_s22 + $0x28] sm:$0xff] %v3104_v24  ;;  %v3042_v41 = vadd.f32 %v6632_v43, %v3004_v30 }
 0x706   : > { %3135 = vst [vmem:[%s6645_s22 + $0x20] sm:$0xff] %v3103_v27  ;;  %v3041_v50 = vadd.f32 %v6632_v43, %v3003_v19  ;;  %v3710_v18 = vpop.f32.mrb[24].mxu0  ;;  %v3085_v19 = vld [vmem:[%s4774_s6 + $0x90] sm:$0xff] }
 0x707   : > { %v3106_v56 = vadd.f32 %v3074_v45, %v3042_v41  ;;  %v3006_v62 = vmul.f32 %v3710_v18, %v6627_v38  ;;  %v2872_v23 = vpop.f32.mrb[25].mxu0 }
 0x708   : > { %v3105_v59 = vadd.f32 %v3073_v48, %v3041_v50  ;;  %v3005_v20 = vmul.f32 %v6627_v38, %v2872_v23  ;;  %v3088_v23 = vld [vmem:[%s4774_s6 + $0xa8] sm:$0xff] }
 0x709   : > { %3138 = vst [vmem:[%s6645_s22 + $0x38] sm:$0xff] %v3106_v56  ;;  %v3044_v36 = vadd.f32 %v6632_v43, %v3006_v62 }
 0x70a   : > { %3137 = vst [vmem:[%s6645_s22 + $0x30] sm:$0xff] %v3105_v59  ;;  %v3043_v8 = vadd.f32 %v6632_v43, %v3005_v20  ;;  %v3713_v4 = vpop.f32.mrb[26].mxu0  ;;  %v3087_v20 = vld [vmem:[%s4774_s6 + $0xa0] sm:$0xff] }
 0x70b   : > { %v3108_v12 = vadd.f32 %v3076_v29, %v3044_v36  ;;  %v3008_v28 = vmul.f32 %v3713_v4, %v6627_v38  ;;  %v2882_v52 = vpop.f32.mrb[27].mxu0 }
 0x70c   : > { %v3107_v21 = vadd.f32 %v3075_v17, %v3043_v8  ;;  %v3007_v34 = vmul.f32 %v6627_v38, %v2882_v52  ;;  %v3090_v52 = vld [vmem:[%s4774_s6 + $0xb8] sm:$0xff] }
 0x70d   : > { %3140 = vst [vmem:[%s6645_s22 + $0x48] sm:$0xff] %v3108_v12  ;;  %v3046_v39 = vadd.f32 %v6632_v43, %v3008_v28 }
 0x70e   : > { %3139 = vst [vmem:[%s6645_s22 + $0x40] sm:$0xff] %v3107_v21  ;;  %v3045_v54 = vadd.f32 %v6632_v43, %v3007_v34  ;;  %v3716_v32 = vpop.f32.mrb[28].mxu0  ;;  %v3089_v34 = vld [vmem:[%s4774_s6 + $0xb0] sm:$0xff] }
 0x70f   : > { %v3110_v44 = vadd.f32 %v3078_v37, %v3046_v39  ;;  %v3010_v46 = vmul.f32 %v3716_v32, %v6627_v38  ;;  %v2892_v60 = vpop.f32.mrb[29].mxu0 }
 0x710   : > { %v3109_v7 = vadd.f32 %v3077_v61, %v3045_v54  ;;  %v3009_v35 = vmul.f32 %v6627_v38, %v2892_v60  ;;  %v3092_v60 = vld [vmem:[%s4774_s6 + $0xc8] sm:$0xff] }
 0x711   : > { %3142 = vst [vmem:[%s6645_s22 + $0x58] sm:$0xff] %v3110_v44  ;;  %v3048_v6 = vadd.f32 %v6632_v43, %v3010_v46 }
 0x712   : > { %3141 = vst [vmem:[%s6645_s22 + $0x50] sm:$0xff] %v3109_v7  ;;  %v3047_v3 = vadd.f32 %v6632_v43, %v3009_v35  ;;  %v3719_v2 = vpop.f32.mrb[30].mxu0  ;;  %v3091_v35 = vld [vmem:[%s4774_s6 + $0xc0] sm:$0xff] }
 0x713   : > { %v3112_v16 = vadd.f32 %v3080_v10, %v3048_v6  ;;  %v3012_v25 = vmul.f32 %v3719_v2, %v6627_v38  ;;  %v2902_v9 = vpop.f32.mrb[31].mxu0 }
 0x714   : > { %v3111_v33 = vadd.f32 %v3079_v11, %v3047_v3  ;;  %v3011_v57 = vmul.f32 %v6627_v38, %v2902_v9  ;;  %v3094_v9 = vld [vmem:[%s4774_s6 + $0xd8] sm:$0xff] }
 0x715   : > { %3144 = vst [vmem:[%s6645_s22 + $0x68] sm:$0xff] %v3112_v16  ;;  %v3050_v49 = vadd.f32 %v6632_v43, %v3012_v25 }
 0x716   : > { %3143 = vst [vmem:[%s6645_s22 + $0x60] sm:$0xff] %v3111_v33  ;;  %v3049_v15 = vadd.f32 %v6632_v43, %v3011_v57  ;;  %v3722_v51 = vpop.f32.mrb[32].mxu0  ;;  %v3093_v57 = vld [vmem:[%s4774_s6 + $0xd0] sm:$0xff] }
 0x717   : > { %v3114_v53 = vadd.f32 %v3082_v0, %v3050_v49  ;;  %v3014_v63 = vmul.f32 %v3722_v51, %v6627_v38  ;;  %v2912_v22 = vpop.f32.mrb[33].mxu0 }
 0x718   : > { %v3113_v31 = vadd.f32 %v3081_v55, %v3049_v15  ;;  %v3013_v5 = vmul.f32 %v6627_v38, %v2912_v22  ;;  %v3096_v22 = vld [vmem:[%s4774_s6 + $0xe8] sm:$0xff] }
 0x719   : > { %3146 = vst [vmem:[%s6645_s22 + $0x78] sm:$0xff] %v3114_v53  ;;  %v3052_v1 = vadd.f32 %v6632_v43, %v3014_v63 }
 0x71a   : > { %3145 = vst [vmem:[%s6645_s22 + $0x70] sm:$0xff] %v3113_v31  ;;  %v3051_v58 = vadd.f32 %v6632_v43, %v3013_v5  ;;  %v3725_v47 = vpop.f32.mrb[34].mxu0  ;;  %v3095_v5 = vld [vmem:[%s4774_s6 + $0xe0] sm:$0xff] }
 0x71b   : > { %v3116_v40 = vadd.f32 %v3084_v13, %v3052_v1  ;;  %v3016_v26 = vmul.f32 %v3725_v47, %v6627_v38  ;;  %v2922_v24 = vpop.f32.mrb[35].mxu0 }
 0x71c   : > { %v3115_v30 = vadd.f32 %v3083_v14, %v3051_v58  ;;  %v3015_v27 = vmul.f32 %v6627_v38, %v2922_v24  ;;  %v3098_v24 = vld [vmem:[%s4774_s6 + $0xf8] sm:$0xff] }
 0x71d   : > { %3148 = vst [vmem:[%s6645_s22 + $0x88] sm:$0xff] %v3116_v40  ;;  %v3054_v45 = vadd.f32 %v6632_v43, %v3016_v26 }
 0x71e   : > { %3147 = vst [vmem:[%s6645_s22 + $0x80] sm:$0xff] %v3115_v30  ;;  %v3053_v41 = vadd.f32 %v6632_v43, %v3015_v27  ;;  %v3728_v48 = vpop.f32.mrb[36].mxu0  ;;  %v3097_v27 = vld [vmem:[%s4774_s6 + $0xf0] sm:$0xff]  ;;  %s4464_s6 = smov [#allocation13]  }
 0x71f   : > { %v3118_v50 = vadd.f32 %v3086_v42, %v3054_v45  ;;  %v3018_v18 = vmul.f32 %v3728_v48, %v6627_v38  ;;  %v2932_v56 = vpop.f32.mrb[37].mxu0  ;;  %s4381_s29 = sshll.u32 %s4464_s6, 4  ;;  %s4382_s29 = int_to_ptr.vmem [resolvable:$false] %s4381_s29 }
 0x720   : > { %v3117_v62 = vadd.f32 %v3085_v19, %v3053_v41  ;;  %v3017_v59 = vmul.f32 %v6627_v38, %v2932_v56  ;;  %s4383_s20 = scalar_lea.vmem %s4382_s29, 8192  ;;  %p4384_p12 = scmp.lt.s32.totalorder %s6771_s25, %s4382_s29 }
 0x721   : > { %3150 = vst [vmem:[%s6645_s22 + $0x98] sm:$0xff] %v3118_v50  ;;  %v3056_v29 = vadd.f32 %v6632_v43, %v3018_v18  ;;  %p4385_p1 = scmp.lt.s32.totalorder %s4383_s20, %s4377_s21 }
 0x722   : > { %3149 = vst [vmem:[%s6645_s22 + $0x90] sm:$0xff] %v3117_v62  ;;  %v3055_v36 = vadd.f32 %v6632_v43, %v3017_v59  ;;  %v3731_v17 = vpop.f32.mrb[38].mxu0 }
 0x723   : > { %v3120_v8 = vadd.f32 %v3088_v23, %v3056_v29  ;;  %v3020_v4 = vmul.f32 %v3731_v17, %v6627_v38  ;;  %v2942_v12 = vpop.f32.mrb[39].mxu0  ;;  %p4386_p2 = por %p4385_p1, %p4384_p12 }
 0x724   : > { %v3119_v28 = vadd.f32 %v3087_v20, %v3055_v36  ;;  %v3019_v21 = vmul.f32 %v6627_v38, %v2942_v12 }
 0x725   : > { %3152 = vst [vmem:[%s6645_s22 + $0xa8] sm:$0xff] %v3120_v8  ;;  %v3058_v37 = vadd.f32 %v6632_v43, %v3020_v4  ;;  %p4387_p13 = pnand %p4386_p2, %p4380_p7 }
 0x726   : > { %3151 = vst [vmem:[%s6645_s22 + $0xa0] sm:$0xff] %v3119_v28  ;;  %v3057_v39 = vadd.f32 %v6632_v43, %v3019_v21  ;;  %v3734_v61 = vpop.f32.mrb[40].mxu0 }
 0x727   : > { %v3122_v54 = vadd.f32 %v3090_v52, %v3058_v37  ;;  %v3022_v32 = vmul.f32 %v3734_v61, %v6627_v38  ;;  %v2952_v44 = vpop.f32.mrb[41].mxu0 }
 0x728   : > { %v3121_v46 = vadd.f32 %v3089_v34, %v3057_v39  ;;  %v3021_v7 = vmul.f32 %v6627_v38, %v2952_v44 }
 0x729   : > { %3154 = vst [vmem:[%s6645_s22 + $0xb8] sm:$0xff] %v3122_v54  ;;  %v3060_v10 = vadd.f32 %v6632_v43, %v3022_v32 }
 0x72a   : > { %3153 = vst [vmem:[%s6645_s22 + $0xb0] sm:$0xff] %v3121_v46  ;;  %v3059_v6 = vadd.f32 %v6632_v43, %v3021_v7  ;;  %v3737_v11 = vpop.f32.mrb[42].mxu0 }
 0x72b   : > { %v3124_v3 = vadd.f32 %v3092_v60, %v3060_v10  ;;  %v3024_v2 = vmul.f32 %v3737_v11, %v6627_v38  ;;  %v2962_v16 = vpop.f32.mrb[43].mxu0 }
 0x72c   : > { %v3123_v25 = vadd.f32 %v3091_v35, %v3059_v6  ;;  %v3023_v33 = vmul.f32 %v6627_v38, %v2962_v16 }
 0x72d   : > { %3156 = vst [vmem:[%s6645_s22 + $0xc8] sm:$0xff] %v3124_v3  ;;  %v3062_v0 = vadd.f32 %v6632_v43, %v3024_v2 }
 0x72e   : > { %3155 = vst [vmem:[%s6645_s22 + $0xc0] sm:$0xff] %v3123_v25  ;;  %v3061_v49 = vadd.f32 %v6632_v43, %v3023_v33  ;;  %v3740_v55 = vpop.f32.mrb[44].mxu0 }
 0x72f   : > { %v3126_v15 = vadd.f32 %v3094_v9, %v3062_v0  ;;  %v3026_v51 = vmul.f32 %v3740_v55, %v6627_v38  ;;  %v2972_v53 = vpop.f32.mrb[45].mxu0 }
 0x730   : > { %v3125_v63 = vadd.f32 %v3093_v57, %v3061_v49  ;;  %v3025_v31 = vmul.f32 %v6627_v38, %v2972_v53 }
 0x731   : > { %3158 = vst [vmem:[%s6645_s22 + $0xd8] sm:$0xff] %v3126_v15  ;;  %v3064_v13 = vadd.f32 %v6632_v43, %v3026_v51 }
 0x732   : > { %3157 = vst [vmem:[%s6645_s22 + $0xd0] sm:$0xff] %v3125_v63  ;;  %v3063_v1 = vadd.f32 %v6632_v43, %v3025_v31  ;;  %v3743_v14 = vpop.f32.mrb[46].mxu0 }
 0x733   : > { %v3128_v58 = vadd.f32 %v3096_v22, %v3064_v13  ;;  %v3028_v47 = vmul.f32 %v3743_v14, %v6627_v38  ;;  %v2982_v40 = vpop.f32.mrb[47].mxu0 }
 0x734   : > { %v3127_v26 = vadd.f32 %v3095_v5, %v3063_v1  ;;  %v3027_v30 = vmul.f32 %v6627_v38, %v2982_v40 }
 0x735   : > { %3160 = vst [vmem:[%s6645_s22 + $0xe8] sm:$0xff] %v3128_v58  ;;  %v3066_v42 = vadd.f32 %v6632_v43, %v3028_v47 }
 0x736   : > { %3159 = vst [vmem:[%s6645_s22 + $0xe0] sm:$0xff] %v3127_v26  ;;  %v3065_v45 = vadd.f32 %v6632_v43, %v3027_v30 }
 0x737   : > { %v3130_v19 = vadd.f32 %v3098_v24, %v3066_v42 }
 0x738   : > { %v3129_v38 = vadd.f32 %v3097_v27, %v3065_v45 }
 0x739   : > { %3162 = vst [vmem:[%s6645_s22 + $0xf8] sm:$0xff] %v3130_v19 }
 0x73a   : > { %3161 = vst [vmem:[%s6645_s22 + $0xf0] sm:$0xff] %v3129_v38 }
 0x73b   : > { %4390 = shalt.err (!%p4387_p13)
}
 0x73c   : > { %s4391_s23 = scalar_lea.hbm %s6769_s19, 4096  ;;  %s4395_s22 = scalar_lea.hbm %s7174_s28, 8192 }
 0x73d   : > { %p4392_p9 = scmp.ne.s32.totalorder %s6769_s19, %s4391_s23  ;;  %p4396_p4 = scmp.lt.u32.totalorder %s6769_s19, %s7174_s28 }
 0x73e   : > { %p4397_p8 = scmp.lt.u32.totalorder %s4395_s22, %s4391_s23  ;;  %p4399_p3 = scmp.lt.u32.totalorder %s4391_s23, %s6769_s19 }
 0x73f   : > { %p4393_p0 = pnand %p4392_p9, %p4713_p10 }
 0x740   : > { %p4398_p6 = por %p4397_p8, %p4396_p4 }
 0x741   : > { %p4394_p11 = pneg %p4393_p0 }
 0x742   : > { %p4400_p5 = por %p4399_p3, %p4398_p6 }
 0x744   : > { %p4401_p7 = pnand %p4400_p5, %p4394_p11 }
 0x746   : > { %4404 = shalt.err (!%p4401_p7)
}
 0x747   : > { %s4465_s14 = smov 128   ;;  %s4466_s21 = smov 8  }
 0x748   : > { %3890 = dma.vmem_to_hbm [thread:$0]  (%p4713_p10), %s6771_s25, 4096, %s6769_s19, %s3164_s17, %s4465_s14, %s4465_s14, %s4466_s21  }
 0x749 PF: > { %s7175_s6 = sld [smem:[#allocation18_spill]]  ;;  %s7176_s29 = sld [smem:[#allocation19_spill]] }
 0x74a   : > { %p7178_p1 = scmp.ge.s32.totalorder %s4451_s16, 2 }
 0x74f   : > { %s3192_s20 = sand.u32 1, %s7175_s6   ;;  %p7177_p12 = scmp.ne.s32.totalorder %s7176_s29, 0 }
 0x750   : > { %s3193_s23 = scalar_lea.sflag [#allocation6], %s3192_s20 }
 0x751   : > { %p3910_p2 = pnand %p7178_p1, %p7177_p12 }
 0x753   : > { %4434 = dma.done.wait (!%p3910_p2), %s3193_s23, 4096  }
 0x754   : > { %4436 = vsyncadd (!%p3910_p2), %s3193_s23, 4294963200  ;;  %p29_p13 = scmp.ge.s32.totalorder %s4703_s13, 4   ;;  %s7179_s29 = smov %s4443_s30 }
 0x755   : > { %s7180_s30 = smov %s4447_s15  ;;  %s7181_s15 = smov %s4719_s18 }
 0x756   : > { %s7182_s16 = smov %s4703_s13  ;;  %31 = sbr.rel (!%p29_p13) target bundleno = 14 (0xe), region = 139 }
 0x75d   :  { %3198 = vsyncpa [#allocation5], 1 }
 0x75e   :  { %3200 = vsyncpa [#allocation5 + $0x1], 1 }
 0x75f   :  { %3201 = vsyncpa [#allocation8], 1 }
 0x760   :  { %3202 = vsyncpa [#allocation11], 1 }
 0x761   :  { %3203 = vsyncpa [#allocation6], 1 }
 0x762   :  { %3205 = vsyncpa [#allocation6 + $0x1], 1 }

</bundles_post_ra>
